<compile_context>
chip_gen: v5e
topology: v5e:2x2
jax: 0.10.0
libtpu: 0.0.40
codegen_flags: <defaults>
</compile_context>

<pallas_src>
import functools

import jax
import jax.numpy as jnp
from jax.experimental import pallas as pl
from jax.experimental.pallas import tpu as pltpu

LANE = 128        # pad all OUTPUT feature dims to a multiple of this
SUBLANE = 16      # bf16 sublane packing (also satisfies f32's 8)
MAX_TILE_B = 512  # large tiles amortize per-step overhead; still tiny in VMEM


def _round_up(n, m):
    return ((n + m - 1) // m) * m


def fcn_kernel(x_ref,
               w_in_ref, b_in_ref,
               w1_ref, b1_ref,
               w2_ref, b2_ref,
               w3_ref, b3_ref,
               w4_ref, b4_ref,
               w5_ref, b5_ref,
               o_ref):
    bf16 = jnp.bfloat16
    f32 = jnp.float32

    # f32 -> bf16 cast of the activation tile on the VPU (it has slack); this
    # replaces the wrapper-side pad+cast pass over x in HBM.
    x = x_ref[...].astype(bf16)

    # Layer "input": Linear, no activation (matches the PyTorch forward).
    h = jnp.dot(x, w_in_ref[...], preferred_element_type=f32) + b_in_ref[...]

    # fc1..fc4: Linear + ReLU. bf16 operands on the MXU, f32 accumulation,
    # bias add / ReLU in f32 on the VPU. Padded columns stay exactly zero.
    h = jnp.maximum(
        jnp.dot(h.astype(bf16), w1_ref[...], preferred_element_type=f32) + b1_ref[...], 0.0)
    h = jnp.maximum(
        jnp.dot(h.astype(bf16), w2_ref[...], preferred_element_type=f32) + b2_ref[...], 0.0)
    h = jnp.maximum(
        jnp.dot(h.astype(bf16), w3_ref[...], preferred_element_type=f32) + b3_ref[...], 0.0)
    h = jnp.maximum(
        jnp.dot(h.astype(bf16), w4_ref[...], preferred_element_type=f32) + b4_ref[...], 0.0)

    # fc5: final Linear, no activation. Store bf16 (halves output DMA bytes);
    # the 128-lane block keeps the store an unmasked vst.
    o_ref[...] = (jnp.dot(h.astype(bf16), w5_ref[...], preferred_element_type=f32)
                  + b5_ref[...]).astype(o_ref.dtype)


def prepare_padded_params(params):
    """Cast weights to bf16 and zero-pad for lane-dense MXU tiles.

    - First layer: contraction dim (n_features) is left UNPADDED — x is fed to
      the kernel unpadded.
    - Every output dim (and hence the contraction dim of the following layer,
      which consumes the 128-wide intermediate) is padded to a multiple of LANE.
    - Padded bias entries are exactly zero so padded hidden columns remain zero
      through ReLU and contribute nothing via the zero-padded weight rows of
      the next layer (correctness invariant — keep zero padding).
    """
    padded = []
    prev_out_pad = None
    for idx, (w, b) in enumerate(params):
        fi, fo = w.shape
        fi_p = fi if idx == 0 else prev_out_pad
        fo_p = _round_up(fo, LANE)
        w_p = jnp.pad(w, ((0, fi_p - fi), (0, fo_p - fo))).astype(jnp.bfloat16)
        b_p = jnp.pad(b, ((0, 0), (0, fo_p - fo))).astype(jnp.float32)
        padded.append((w_p, b_p))
        prev_out_pad = fo_p
    return padded


def _choose_tile_b(batch):
    """Largest tile <= MAX_TILE_B (multiple of SUBLANE), preferring >= 4 grid
    steps for large batches so both v7x TensorCores get work and each core
    still double-buffers its x / output tiles."""
    tile = _round_up(max(1, -(-batch // 4)), SUBLANE)
    tile = min(tile, MAX_TILE_B, _round_up(batch, SUBLANE))
    return max(tile, SUBLANE)


@functools.partial(jax.jit, static_argnames=("n_classes", "single_buffer_weights"))
def fcn_forward(x, padded_params, n_classes, single_buffer_weights=True):
    """x: [B, n_features] f32; padded_params from prepare_padded_params()."""
    B, F = x.shape
    C_pad = padded_params[-1][0].shape[1]

    tile_b = _choose_tile_b(B)
    B_pad = _round_up(B, tile_b)
    # Batch-only padding, and only when there is a remainder tile. No feature
    # padding and no dtype cast in the wrapper (no extra HBM pass over x).
    x_in = x if B_pad == B else jnp.pad(x, ((0, B_pad - B), (0, 0)))

    def resident_spec(shape):
        # Constant index map -> block never changes across grid steps; a second
        # pipeline buffer would be pure VMEM waste.
        if single_buffer_weights:
            return pl.BlockSpec(shape, lambda i: (0, 0),
                                pipeline_mode=pl.Buffered(1))
        return pl.BlockSpec(shape, lambda i: (0, 0))

    flat_args = [x_in]
    in_specs = [pl.BlockSpec((tile_b, F), lambda i: (i, 0))]
    flops = 0
    bytes_accessed = x_in.size * x_in.dtype.itemsize
    for w, b in padded_params:
        flat_args += [w, b]
        in_specs += [resident_spec(w.shape), resident_spec(b.shape)]
        flops += 2 * B_pad * w.shape[0] * w.shape[1]
        bytes_accessed += w.size * w.dtype.itemsize + b.size * b.dtype.itemsize
    bytes_accessed += B_pad * C_pad * 2  # bf16 output writeback

    out_p = pl.pallas_call(
        fcn_kernel,
        out_shape=jax.ShapeDtypeStruct((B_pad, C_pad), jnp.bfloat16),
        grid=(B_pad // tile_b,),
        in_specs=in_specs,
        out_specs=pl.BlockSpec((tile_b, C_pad), lambda i: (i, 0)),
        compiler_params=pltpu.CompilerParams(
            dimension_semantics=("parallel",)),
        cost_estimate=pl.CostEstimate(
            flops=flops, transcendentals=0, bytes_accessed=bytes_accessed),
    )(*flat_args)

    # Slice off padding; cast the tiny [B, n_classes] slab back to f32 to match
    # the PyTorch module's output dtype.
    return out_p[:B, :n_classes].astype(jnp.float32)


def init_params(key, n_features, n_classes, n_nodes):
    """Deterministic synthetic params. Shapes mirror the PyTorch module."""
    dims = [n_features, n_nodes['fc1'], n_nodes['fc2'], n_nodes['fc3'],
            n_nodes['fc4'], n_nodes['fc5'], n_classes]
    params = []
    for i in range(len(dims) - 1):
        key, kw, kb = jax.random.split(key, 3)
        bound = 1.0 / jnp.sqrt(dims[i])
        w = jax.random.uniform(kw, (dims[i], dims[i + 1]),
                               minval=-bound, maxval=bound, dtype=jnp.float32)
        b = jax.random.uniform(kb, (1, dims[i + 1]),
                               minval=-bound, maxval=bound, dtype=jnp.float32)
        params.append((w, b))
    return params


def fcn_reference(x, params):
    """Pure-JAX reference mirroring the kernel's bf16 quantization."""
    def q(a):  # bf16 quantize, compute in f32
        return a.astype(jnp.bfloat16).astype(jnp.float32)

    h = q(x) @ q(params[0][0]) + params[0][1]          # input linear, no relu
    for w, b in params[1:5]:                           # fc1..fc4 with relu
        h = jnp.maximum(q(h) @ q(w) + b, 0.0)
    w, b = params[5]                                   # fc5
    return q(q(h) @ q(w) + b)                          # kernel stores bf16


if __name__ == "__main__":
    key = jax.random.PRNGKey(0)
    kx, kp = jax.random.split(key)

    # Small model dims consistent with the module; batch of 2048 exercises the
    # 4-step parallel grid with 512-row tiles.
    batch = 2048
    n_features = 16
    n_classes = 8
    n_nodes = {'fc1': 32, 'fc2': 32, 'fc3': 32, 'fc4': 32, 'fc5': 32}

    x = jax.random.normal(kx, (batch, n_features), dtype=jnp.float32)
    params = init_params(kp, n_features, n_classes, n_nodes)
    padded_params = prepare_padded_params(params)

    try:
        out = jax.block_until_ready(
            fcn_forward(x, padded_params, n_classes, single_buffer_weights=True))
    except Exception:
        # Fallback if this JAX build rejects Buffered(1) on pallas_call specs.
        out = jax.block_until_ready(
            fcn_forward(x, padded_params, n_classes, single_buffer_weights=False))

    ref = fcn_reference(x, params)
    assert out.shape == (batch, n_classes)
    max_err = float(jnp.max(jnp.abs(out - ref)))
    assert jnp.allclose(out, ref, atol=5e-2, rtol=5e-2), max_err

    print("KERNEL_OK")
</pallas_src>

<mosaic_0001>
module attributes {stable_mosaic.version = 11 : i64} {
  func.func @fcn_kernel(%arg0: i32, %arg1: memref<512x16xf32, #tpu.memory_space<vmem>>, %arg2: memref<16x128xbf16, #tpu.memory_space<vmem>>, %arg3: memref<1x128xf32, #tpu.memory_space<vmem>>, %arg4: memref<128x128xbf16, #tpu.memory_space<vmem>>, %arg5: memref<1x128xf32, #tpu.memory_space<vmem>>, %arg6: memref<128x128xbf16, #tpu.memory_space<vmem>>, %arg7: memref<1x128xf32, #tpu.memory_space<vmem>>, %arg8: memref<128x128xbf16, #tpu.memory_space<vmem>>, %arg9: memref<1x128xf32, #tpu.memory_space<vmem>>, %arg10: memref<128x128xbf16, #tpu.memory_space<vmem>>, %arg11: memref<1x128xf32, #tpu.memory_space<vmem>>, %arg12: memref<128x128xbf16, #tpu.memory_space<vmem>>, %arg13: memref<1x128xf32, #tpu.memory_space<vmem>>, %arg14: memref<512x128xbf16, #tpu.memory_space<vmem>>) attributes {dimension_semantics = [#tpu.dimension_semantics<parallel>], iteration_bounds = array<i64: 4>, scalar_prefetch = 0 : i64, scratch_operands = 0 : i64, tpu.core_type = #tpu.core_type<tc>, window_params = [{transform_indices = @transform_0, window_bounds = array<i64: 512, 16>}, {pipeline_mode = #tpu.pipeline_mode<synchronous>, transform_indices = @transform_1, window_bounds = array<i64: 16, 128>}, {pipeline_mode = #tpu.pipeline_mode<synchronous>, transform_indices = @transform_2, window_bounds = array<i64: 1, 128>}, {pipeline_mode = #tpu.pipeline_mode<synchronous>, transform_indices = @transform_3, window_bounds = array<i64: 128, 128>}, {pipeline_mode = #tpu.pipeline_mode<synchronous>, transform_indices = @transform_4, window_bounds = array<i64: 1, 128>}, {pipeline_mode = #tpu.pipeline_mode<synchronous>, transform_indices = @transform_5, window_bounds = array<i64: 128, 128>}, {pipeline_mode = #tpu.pipeline_mode<synchronous>, transform_indices = @transform_6, window_bounds = array<i64: 1, 128>}, {pipeline_mode = #tpu.pipeline_mode<synchronous>, transform_indices = @transform_7, window_bounds = array<i64: 128, 128>}, {pipeline_mode = #tpu.pipeline_mode<synchronous>, transform_indices = @transform_8, window_bounds = array<i64: 1, 128>}, {pipeline_mode = #tpu.pipeline_mode<synchronous>, transform_indices = @transform_9, window_bounds = array<i64: 128, 128>}, {pipeline_mode = #tpu.pipeline_mode<synchronous>, transform_indices = @transform_10, window_bounds = array<i64: 1, 128>}, {pipeline_mode = #tpu.pipeline_mode<synchronous>, transform_indices = @transform_11, window_bounds = array<i64: 128, 128>}, {pipeline_mode = #tpu.pipeline_mode<synchronous>, transform_indices = @transform_12, window_bounds = array<i64: 1, 128>}, {transform_indices = @transform_13, window_bounds = array<i64: 512, 128>}]} {
    %c0 = arith.constant 0 : index
    %c0_0 = arith.constant 0 : index
    %0 = vector.load %arg1[%c0, %c0_0] : memref<512x16xf32, #tpu.memory_space<vmem>>, vector<512x16xf32>
    %1 = arith.truncf %0 : vector<512x16xf32> to vector<512x16xbf16>
    %c0_1 = arith.constant 0 : index
    %c0_2 = arith.constant 0 : index
    %2 = vector.load %arg2[%c0_1, %c0_2] : memref<16x128xbf16, #tpu.memory_space<vmem>>, vector<16x128xbf16>
    %cst = arith.constant dense<0.000000e+00> : vector<512x128xf32>
    %3 = tpu.matmul %1, %2, %cst {dimension_numbers = #tpu.dot_dimension_numbers<[1], [0], [0], [1], [0, 0, 1, 1], [], []>} : vector<512x16xbf16>, vector<16x128xbf16>, vector<512x128xf32> -> vector<512x128xf32>
    %c0_3 = arith.constant 0 : index
    %c0_4 = arith.constant 0 : index
    %4 = vector.load %arg3[%c0_3, %c0_4] : memref<1x128xf32, #tpu.memory_space<vmem>>, vector<1x128xf32>
    %5 = vector.broadcast %4 : vector<1x128xf32> to vector<512x128xf32>
    %6 = arith.addf %3, %5 : vector<512x128xf32>
    %7 = arith.truncf %6 : vector<512x128xf32> to vector<512x128xbf16>
    %c0_5 = arith.constant 0 : index
    %c0_6 = arith.constant 0 : index
    %8 = vector.load %arg4[%c0_5, %c0_6] : memref<128x128xbf16, #tpu.memory_space<vmem>>, vector<128x128xbf16>
    %cst_7 = arith.constant dense<0.000000e+00> : vector<512x128xf32>
    %9 = tpu.matmul %7, %8, %cst_7 {dimension_numbers = #tpu.dot_dimension_numbers<[1], [0], [0], [1], [0, 0, 1, 1], [], []>} : vector<512x128xbf16>, vector<128x128xbf16>, vector<512x128xf32> -> vector<512x128xf32>
    %c0_8 = arith.constant 0 : index
    %c0_9 = arith.constant 0 : index
    %10 = vector.load %arg5[%c0_8, %c0_9] : memref<1x128xf32, #tpu.memory_space<vmem>>, vector<1x128xf32>
    %11 = vector.broadcast %10 : vector<1x128xf32> to vector<512x128xf32>
    %12 = arith.addf %9, %11 : vector<512x128xf32>
    %cst_10 = arith.constant 0.000000e+00 : f32
    %13 = vector.broadcast %cst_10 : f32 to vector<512x128xf32>
    %14 = arith.maximumf %12, %13 : vector<512x128xf32>
    %15 = arith.truncf %14 : vector<512x128xf32> to vector<512x128xbf16>
    %c0_11 = arith.constant 0 : index
    %c0_12 = arith.constant 0 : index
    %16 = vector.load %arg6[%c0_11, %c0_12] : memref<128x128xbf16, #tpu.memory_space<vmem>>, vector<128x128xbf16>
    %cst_13 = arith.constant dense<0.000000e+00> : vector<512x128xf32>
    %17 = tpu.matmul %15, %16, %cst_13 {dimension_numbers = #tpu.dot_dimension_numbers<[1], [0], [0], [1], [0, 0, 1, 1], [], []>} : vector<512x128xbf16>, vector<128x128xbf16>, vector<512x128xf32> -> vector<512x128xf32>
    %c0_14 = arith.constant 0 : index
    %c0_15 = arith.constant 0 : index
    %18 = vector.load %arg7[%c0_14, %c0_15] : memref<1x128xf32, #tpu.memory_space<vmem>>, vector<1x128xf32>
    %19 = vector.broadcast %18 : vector<1x128xf32> to vector<512x128xf32>
    %20 = arith.addf %17, %19 : vector<512x128xf32>
    %cst_16 = arith.constant 0.000000e+00 : f32
    %21 = vector.broadcast %cst_16 : f32 to vector<512x128xf32>
    %22 = arith.maximumf %20, %21 : vector<512x128xf32>
    %23 = arith.truncf %22 : vector<512x128xf32> to vector<512x128xbf16>
    %c0_17 = arith.constant 0 : index
    %c0_18 = arith.constant 0 : index
    %24 = vector.load %arg8[%c0_17, %c0_18] : memref<128x128xbf16, #tpu.memory_space<vmem>>, vector<128x128xbf16>
    %cst_19 = arith.constant dense<0.000000e+00> : vector<512x128xf32>
    %25 = tpu.matmul %23, %24, %cst_19 {dimension_numbers = #tpu.dot_dimension_numbers<[1], [0], [0], [1], [0, 0, 1, 1], [], []>} : vector<512x128xbf16>, vector<128x128xbf16>, vector<512x128xf32> -> vector<512x128xf32>
    %c0_20 = arith.constant 0 : index
    %c0_21 = arith.constant 0 : index
    %26 = vector.load %arg9[%c0_20, %c0_21] : memref<1x128xf32, #tpu.memory_space<vmem>>, vector<1x128xf32>
    %27 = vector.broadcast %26 : vector<1x128xf32> to vector<512x128xf32>
    %28 = arith.addf %25, %27 : vector<512x128xf32>
    %cst_22 = arith.constant 0.000000e+00 : f32
    %29 = vector.broadcast %cst_22 : f32 to vector<512x128xf32>
    %30 = arith.maximumf %28, %29 : vector<512x128xf32>
    %31 = arith.truncf %30 : vector<512x128xf32> to vector<512x128xbf16>
    %c0_23 = arith.constant 0 : index
    %c0_24 = arith.constant 0 : index
    %32 = vector.load %arg10[%c0_23, %c0_24] : memref<128x128xbf16, #tpu.memory_space<vmem>>, vector<128x128xbf16>
    %cst_25 = arith.constant dense<0.000000e+00> : vector<512x128xf32>
    %33 = tpu.matmul %31, %32, %cst_25 {dimension_numbers = #tpu.dot_dimension_numbers<[1], [0], [0], [1], [0, 0, 1, 1], [], []>} : vector<512x128xbf16>, vector<128x128xbf16>, vector<512x128xf32> -> vector<512x128xf32>
    %c0_26 = arith.constant 0 : index
    %c0_27 = arith.constant 0 : index
    %34 = vector.load %arg11[%c0_26, %c0_27] : memref<1x128xf32, #tpu.memory_space<vmem>>, vector<1x128xf32>
    %35 = vector.broadcast %34 : vector<1x128xf32> to vector<512x128xf32>
    %36 = arith.addf %33, %35 : vector<512x128xf32>
    %cst_28 = arith.constant 0.000000e+00 : f32
    %37 = vector.broadcast %cst_28 : f32 to vector<512x128xf32>
    %38 = arith.maximumf %36, %37 : vector<512x128xf32>
    %39 = arith.truncf %38 : vector<512x128xf32> to vector<512x128xbf16>
    %c0_29 = arith.constant 0 : index
    %c0_30 = arith.constant 0 : index
    %40 = vector.load %arg12[%c0_29, %c0_30] : memref<128x128xbf16, #tpu.memory_space<vmem>>, vector<128x128xbf16>
    %cst_31 = arith.constant dense<0.000000e+00> : vector<512x128xf32>
    %41 = tpu.matmul %39, %40, %cst_31 {dimension_numbers = #tpu.dot_dimension_numbers<[1], [0], [0], [1], [0, 0, 1, 1], [], []>} : vector<512x128xbf16>, vector<128x128xbf16>, vector<512x128xf32> -> vector<512x128xf32>
    %c0_32 = arith.constant 0 : index
    %c0_33 = arith.constant 0 : index
    %42 = vector.load %arg13[%c0_32, %c0_33] : memref<1x128xf32, #tpu.memory_space<vmem>>, vector<1x128xf32>
    %43 = vector.broadcast %42 : vector<1x128xf32> to vector<512x128xf32>
    %44 = arith.addf %41, %43 : vector<512x128xf32>
    %45 = arith.truncf %44 : vector<512x128xf32> to vector<512x128xbf16>
    %c0_34 = arith.constant 0 : index
    %c0_35 = arith.constant 0 : index
    %46 = vector.load %arg14[%c0_34, %c0_35] : memref<512x128xbf16, #tpu.memory_space<vmem>>, vector<512x128xbf16>
    tpu.vector_store %arg14[%c0_34, %c0_35], %45 {strides = array<i32>} : memref<512x128xbf16, #tpu.memory_space<vmem>>, vector<512x128xbf16>,
    return
  }
  func.func @transform_0(%arg0: i32) -> (i32, i32) {
    %c0_i32 = arith.constant 0 : i32
    %c0_i32_0 = arith.constant 0 : i32
    return %arg0, %c0_i32 : i32, i32
  }
  func.func @transform_1(%arg0: i32) -> (i32, i32) {
    %c0_i32 = arith.constant 0 : i32
    %c0_i32_0 = arith.constant 0 : i32
    %c0_i32_1 = arith.constant 0 : i32
    return %c0_i32, %c0_i32_0 : i32, i32
  }
  func.func @transform_2(%arg0: i32) -> (i32, i32) {
    %c0_i32 = arith.constant 0 : i32
    %c0_i32_0 = arith.constant 0 : i32
    %c0_i32_1 = arith.constant 0 : i32
    return %c0_i32, %c0_i32_0 : i32, i32
  }
  func.func @transform_3(%arg0: i32) -> (i32, i32) {
    %c0_i32 = arith.constant 0 : i32
    %c0_i32_0 = arith.constant 0 : i32
    %c0_i32_1 = arith.constant 0 : i32
    return %c0_i32, %c0_i32_0 : i32, i32
  }
  func.func @transform_4(%arg0: i32) -> (i32, i32) {
    %c0_i32 = arith.constant 0 : i32
    %c0_i32_0 = arith.constant 0 : i32
    %c0_i32_1 = arith.constant 0 : i32
    return %c0_i32, %c0_i32_0 : i32, i32
  }
  func.func @transform_5(%arg0: i32) -> (i32, i32) {
    %c0_i32 = arith.constant 0 : i32
    %c0_i32_0 = arith.constant 0 : i32
    %c0_i32_1 = arith.constant 0 : i32
    return %c0_i32, %c0_i32_0 : i32, i32
  }
  func.func @transform_6(%arg0: i32) -> (i32, i32) {
    %c0_i32 = arith.constant 0 : i32
    %c0_i32_0 = arith.constant 0 : i32
    %c0_i32_1 = arith.constant 0 : i32
    return %c0_i32, %c0_i32_0 : i32, i32
  }
  func.func @transform_7(%arg0: i32) -> (i32, i32) {
    %c0_i32 = arith.constant 0 : i32
    %c0_i32_0 = arith.constant 0 : i32
    %c0_i32_1 = arith.constant 0 : i32
    return %c0_i32, %c0_i32_0 : i32, i32
  }
  func.func @transform_8(%arg0: i32) -> (i32, i32) {
    %c0_i32 = arith.constant 0 : i32
    %c0_i32_0 = arith.constant 0 : i32
    %c0_i32_1 = arith.constant 0 : i32
    return %c0_i32, %c0_i32_0 : i32, i32
  }
  func.func @transform_9(%arg0: i32) -> (i32, i32) {
    %c0_i32 = arith.constant 0 : i32
    %c0_i32_0 = arith.constant 0 : i32
    %c0_i32_1 = arith.constant 0 : i32
    return %c0_i32, %c0_i32_0 : i32, i32
  }
  func.func @transform_10(%arg0: i32) -> (i32, i32) {
    %c0_i32 = arith.constant 0 : i32
    %c0_i32_0 = arith.constant 0 : i32
    %c0_i32_1 = arith.constant 0 : i32
    return %c0_i32, %c0_i32_0 : i32, i32
  }
  func.func @transform_11(%arg0: i32) -> (i32, i32) {
    %c0_i32 = arith.constant 0 : i32
    %c0_i32_0 = arith.constant 0 : i32
    %c0_i32_1 = arith.constant 0 : i32
    return %c0_i32, %c0_i32_0 : i32, i32
  }
  func.func @transform_12(%arg0: i32) -> (i32, i32) {
    %c0_i32 = arith.constant 0 : i32
    %c0_i32_0 = arith.constant 0 : i32
    %c0_i32_1 = arith.constant 0 : i32
    return %c0_i32, %c0_i32_0 : i32, i32
  }
  func.func @transform_13(%arg0: i32) -> (i32, i32) {
    %c0_i32 = arith.constant 0 : i32
    %c0_i32_0 = arith.constant 0 : i32
    return %arg0, %c0_i32 : i32, i32
  }
}

module attributes {stable_mosaic.version = 11 : i64} {
  func.func @fcn_kernel(%arg0: i32, %arg1: memref<512x16xf32, #tpu.memory_space<vmem>>, %arg2: memref<16x128xbf16, #tpu.memory_space<vmem>>, %arg3: memref<1x128xf32, #tpu.memory_space<vmem>>, %arg4: memref<128x128xbf16, #tpu.memory_space<vmem>>, %arg5: memref<1x128xf32, #tpu.memory_space<vmem>>, %arg6: memref<128x128xbf16, #tpu.memory_space<vmem>>, %arg7: memref<1x128xf32, #tpu.memory_space<vmem>>, %arg8: memref<128x128xbf16, #tpu.memory_space<vmem>>, %arg9: memref<1x128xf32, #tpu.memory_space<vmem>>, %arg10: memref<128x128xbf16, #tpu.memory_space<vmem>>, %arg11: memref<1x128xf32, #tpu.memory_space<vmem>>, %arg12: memref<128x128xbf16, #tpu.memory_space<vmem>>, %arg13: memref<1x128xf32, #tpu.memory_space<vmem>>, %arg14: memref<512x128xbf16, #tpu.memory_space<vmem>>) attributes {dimension_semantics = [#tpu.dimension_semantics<parallel>], iteration_bounds = array<i64: 4>, scalar_prefetch = 0 : i64, scratch_operands = 0 : i64, tpu.core_type = #tpu.core_type<tc>, window_params = [{transform_indices = @transform_0, window_bounds = array<i64: 512, 16>}, {pipeline_mode = #tpu.pipeline_mode<synchronous>, transform_indices = @transform_1, window_bounds = array<i64: 16, 128>}, {pipeline_mode = #tpu.pipeline_mode<synchronous>, transform_indices = @transform_2, window_bounds = array<i64: 1, 128>}, {pipeline_mode = #tpu.pipeline_mode<synchronous>, transform_indices = @transform_3, window_bounds = array<i64: 128, 128>}, {pipeline_mode = #tpu.pipeline_mode<synchronous>, transform_indices = @transform_4, window_bounds = array<i64: 1, 128>}, {pipeline_mode = #tpu.pipeline_mode<synchronous>, transform_indices = @transform_5, window_bounds = array<i64: 128, 128>}, {pipeline_mode = #tpu.pipeline_mode<synchronous>, transform_indices = @transform_6, window_bounds = array<i64: 1, 128>}, {pipeline_mode = #tpu.pipeline_mode<synchronous>, transform_indices = @transform_7, window_bounds = array<i64: 128, 128>}, {pipeline_mode = #tpu.pipeline_mode<synchronous>, transform_indices = @transform_8, window_bounds = array<i64: 1, 128>}, {pipeline_mode = #tpu.pipeline_mode<synchronous>, transform_indices = @transform_9, window_bounds = array<i64: 128, 128>}, {pipeline_mode = #tpu.pipeline_mode<synchronous>, transform_indices = @transform_10, window_bounds = array<i64: 1, 128>}, {pipeline_mode = #tpu.pipeline_mode<synchronous>, transform_indices = @transform_11, window_bounds = array<i64: 128, 128>}, {pipeline_mode = #tpu.pipeline_mode<synchronous>, transform_indices = @transform_12, window_bounds = array<i64: 1, 128>}, {transform_indices = @transform_13, window_bounds = array<i64: 512, 128>}]} {
    %c0 = arith.constant 0 : index
    %c0_0 = arith.constant 0 : index
    %0 = vector.load %arg1[%c0, %c0_0] : memref<512x16xf32, #tpu.memory_space<vmem>>, vector<512x16xf32>
    %1 = arith.truncf %0 : vector<512x16xf32> to vector<512x16xbf16>
    %c0_1 = arith.constant 0 : index
    %c0_2 = arith.constant 0 : index
    %2 = vector.load %arg2[%c0_1, %c0_2] : memref<16x128xbf16, #tpu.memory_space<vmem>>, vector<16x128xbf16>
    %cst = arith.constant dense<0.000000e+00> : vector<512x128xf32>
    %3 = tpu.matmul %1, %2, %cst {dimension_numbers = #tpu.dot_dimension_numbers<[1], [0], [0], [1], [0, 0, 1, 1], [], []>} : vector<512x16xbf16>, vector<16x128xbf16>, vector<512x128xf32> -> vector<512x128xf32>
    %c0_3 = arith.constant 0 : index
    %c0_4 = arith.constant 0 : index
    %4 = vector.load %arg3[%c0_3, %c0_4] : memref<1x128xf32, #tpu.memory_space<vmem>>, vector<1x128xf32>
    %5 = vector.broadcast %4 : vector<1x128xf32> to vector<512x128xf32>
    %6 = arith.addf %3, %5 : vector<512x128xf32>
    %7 = arith.truncf %6 : vector<512x128xf32> to vector<512x128xbf16>
    %c0_5 = arith.constant 0 : index
    %c0_6 = arith.constant 0 : index
    %8 = vector.load %arg4[%c0_5, %c0_6] : memref<128x128xbf16, #tpu.memory_space<vmem>>, vector<128x128xbf16>
    %cst_7 = arith.constant dense<0.000000e+00> : vector<512x128xf32>
    %9 = tpu.matmul %7, %8, %cst_7 {dimension_numbers = #tpu.dot_dimension_numbers<[1], [0], [0], [1], [0, 0, 1, 1], [], []>} : vector<512x128xbf16>, vector<128x128xbf16>, vector<512x128xf32> -> vector<512x128xf32>
    %c0_8 = arith.constant 0 : index
    %c0_9 = arith.constant 0 : index
    %10 = vector.load %arg5[%c0_8, %c0_9] : memref<1x128xf32, #tpu.memory_space<vmem>>, vector<1x128xf32>
    %11 = vector.broadcast %10 : vector<1x128xf32> to vector<512x128xf32>
    %12 = arith.addf %9, %11 : vector<512x128xf32>
    %cst_10 = arith.constant 0.000000e+00 : f32
    %13 = vector.broadcast %cst_10 : f32 to vector<512x128xf32>
    %14 = arith.maximumf %12, %13 : vector<512x128xf32>
    %15 = arith.truncf %14 : vector<512x128xf32> to vector<512x128xbf16>
    %c0_11 = arith.constant 0 : index
    %c0_12 = arith.constant 0 : index
    %16 = vector.load %arg6[%c0_11, %c0_12] : memref<128x128xbf16, #tpu.memory_space<vmem>>, vector<128x128xbf16>
    %cst_13 = arith.constant dense<0.000000e+00> : vector<512x128xf32>
    %17 = tpu.matmul %15, %16, %cst_13 {dimension_numbers = #tpu.dot_dimension_numbers<[1], [0], [0], [1], [0, 0, 1, 1], [], []>} : vector<512x128xbf16>, vector<128x128xbf16>, vector<512x128xf32> -> vector<512x128xf32>
    %c0_14 = arith.constant 0 : index
    %c0_15 = arith.constant 0 : index
    %18 = vector.load %arg7[%c0_14, %c0_15] : memref<1x128xf32, #tpu.memory_space<vmem>>, vector<1x128xf32>
    %19 = vector.broadcast %18 : vector<1x128xf32> to vector<512x128xf32>
    %20 = arith.addf %17, %19 : vector<512x128xf32>
    %cst_16 = arith.constant 0.000000e+00 : f32
    %21 = vector.broadcast %cst_16 : f32 to vector<512x128xf32>
    %22 = arith.maximumf %20, %21 : vector<512x128xf32>
    %23 = arith.truncf %22 : vector<512x128xf32> to vector<512x128xbf16>
    %c0_17 = arith.constant 0 : index
    %c0_18 = arith.constant 0 : index
    %24 = vector.load %arg8[%c0_17, %c0_18] : memref<128x128xbf16, #tpu.memory_space<vmem>>, vector<128x128xbf16>
    %cst_19 = arith.constant dense<0.000000e+00> : vector<512x128xf32>
    %25 = tpu.matmul %23, %24, %cst_19 {dimension_numbers = #tpu.dot_dimension_numbers<[1], [0], [0], [1], [0, 0, 1, 1], [], []>} : vector<512x128xbf16>, vector<128x128xbf16>, vector<512x128xf32> -> vector<512x128xf32>
    %c0_20 = arith.constant 0 : index
    %c0_21 = arith.constant 0 : index
    %26 = vector.load %arg9[%c0_20, %c0_21] : memref<1x128xf32, #tpu.memory_space<vmem>>, vector<1x128xf32>
    %27 = vector.broadcast %26 : vector<1x128xf32> to vector<512x128xf32>
    %28 = arith.addf %25, %27 : vector<512x128xf32>
    %cst_22 = arith.constant 0.000000e+00 : f32
    %29 = vector.broadcast %cst_22 : f32 to vector<512x128xf32>
    %30 = arith.maximumf %28, %29 : vector<512x128xf32>
    %31 = arith.truncf %30 : vector<512x128xf32> to vector<512x128xbf16>
    %c0_23 = arith.constant 0 : index
    %c0_24 = arith.constant 0 : index
    %32 = vector.load %arg10[%c0_23, %c0_24] : memref<128x128xbf16, #tpu.memory_space<vmem>>, vector<128x128xbf16>
    %cst_25 = arith.constant dense<0.000000e+00> : vector<512x128xf32>
    %33 = tpu.matmul %31, %32, %cst_25 {dimension_numbers = #tpu.dot_dimension_numbers<[1], [0], [0], [1], [0, 0, 1, 1], [], []>} : vector<512x128xbf16>, vector<128x128xbf16>, vector<512x128xf32> -> vector<512x128xf32>
    %c0_26 = arith.constant 0 : index
    %c0_27 = arith.constant 0 : index
    %34 = vector.load %arg11[%c0_26, %c0_27] : memref<1x128xf32, #tpu.memory_space<vmem>>, vector<1x128xf32>
    %35 = vector.broadcast %34 : vector<1x128xf32> to vector<512x128xf32>
    %36 = arith.addf %33, %35 : vector<512x128xf32>
    %cst_28 = arith.constant 0.000000e+00 : f32
    %37 = vector.broadcast %cst_28 : f32 to vector<512x128xf32>
    %38 = arith.maximumf %36, %37 : vector<512x128xf32>
    %39 = arith.truncf %38 : vector<512x128xf32> to vector<512x128xbf16>
    %c0_29 = arith.constant 0 : index
    %c0_30 = arith.constant 0 : index
    %40 = vector.load %arg12[%c0_29, %c0_30] : memref<128x128xbf16, #tpu.memory_space<vmem>>, vector<128x128xbf16>
    %cst_31 = arith.constant dense<0.000000e+00> : vector<512x128xf32>
    %41 = tpu.matmul %39, %40, %cst_31 {dimension_numbers = #tpu.dot_dimension_numbers<[1], [0], [0], [1], [0, 0, 1, 1], [], []>} : vector<512x128xbf16>, vector<128x128xbf16>, vector<512x128xf32> -> vector<512x128xf32>
    %c0_32 = arith.constant 0 : index
    %c0_33 = arith.constant 0 : index
    %42 = vector.load %arg13[%c0_32, %c0_33] : memref<1x128xf32, #tpu.memory_space<vmem>>, vector<1x128xf32>
    %43 = vector.broadcast %42 : vector<1x128xf32> to vector<512x128xf32>
    %44 = arith.addf %41, %43 : vector<512x128xf32>
    %45 = arith.truncf %44 : vector<512x128xf32> to vector<512x128xbf16>
    %c0_34 = arith.constant 0 : index
    %c0_35 = arith.constant 0 : index
    %46 = vector.load %arg14[%c0_34, %c0_35] : memref<512x128xbf16, #tpu.memory_space<vmem>>, vector<512x128xbf16>
    tpu.vector_store %arg14[%c0_34, %c0_35], %45 {strides = array<i32>} : memref<512x128xbf16, #tpu.memory_space<vmem>>, vector<512x128xbf16>,
    return
  }
  func.func @transform_0(%arg0: i32) -> (i32, i32) {
    %c0_i32 = arith.constant 0 : i32
    %c0_i32_0 = arith.constant 0 : i32
    return %arg0, %c0_i32 : i32, i32
  }
  func.func @transform_1(%arg0: i32) -> (i32, i32) {
    %c0_i32 = arith.constant 0 : i32
    %c0_i32_0 = arith.constant 0 : i32
    %c0_i32_1 = arith.constant 0 : i32
    return %c0_i32, %c0_i32_0 : i32, i32
  }
  func.func @transform_2(%arg0: i32) -> (i32, i32) {
    %c0_i32 = arith.constant 0 : i32
    %c0_i32_0 = arith.constant 0 : i32
    %c0_i32_1 = arith.constant 0 : i32
    return %c0_i32, %c0_i32_0 : i32, i32
  }
  func.func @transform_3(%arg0: i32) -> (i32, i32) {
    %c0_i32 = arith.constant 0 : i32
    %c0_i32_0 = arith.constant 0 : i32
    %c0_i32_1 = arith.constant 0 : i32
    return %c0_i32, %c0_i32_0 : i32, i32
  }
  func.func @transform_4(%arg0: i32) -> (i32, i32) {
    %c0_i32 = arith.constant 0 : i32
    %c0_i32_0 = arith.constant 0 : i32
    %c0_i32_1 = arith.constant 0 : i32
    return %c0_i32, %c0_i32_0 : i32, i32
  }
  func.func @transform_5(%arg0: i32) -> (i32, i32) {
    %c0_i32 = arith.constant 0 : i32
    %c0_i32_0 = arith.constant 0 : i32
    %c0_i32_1 = arith.constant 0 : i32
    return %c0_i32, %c0_i32_0 : i32, i32
  }
  func.func @transform_6(%arg0: i32) -> (i32, i32) {
    %c0_i32 = arith.constant 0 : i32
    %c0_i32_0 = arith.constant 0 : i32
    %c0_i32_1 = arith.constant 0 : i32
    return %c0_i32, %c0_i32_0 : i32, i32
  }
  func.func @transform_7(%arg0: i32) -> (i32, i32) {
    %c0_i32 = arith.constant 0 : i32
    %c0_i32_0 = arith.constant 0 : i32
    %c0_i32_1 = arith.constant 0 : i32
    return %c0_i32, %c0_i32_0 : i32, i32
  }
  func.func @transform_8(%arg0: i32) -> (i32, i32) {
    %c0_i32 = arith.constant 0 : i32
    %c0_i32_0 = arith.constant 0 : i32
    %c0_i32_1 = arith.constant 0 : i32
    return %c0_i32, %c0_i32_0 : i32, i32
  }
  func.func @transform_9(%arg0: i32) -> (i32, i32) {
    %c0_i32 = arith.constant 0 : i32
    %c0_i32_0 = arith.constant 0 : i32
    %c0_i32_1 = arith.constant 0 : i32
    return %c0_i32, %c0_i32_0 : i32, i32
  }
  func.func @transform_10(%arg0: i32) -> (i32, i32) {
    %c0_i32 = arith.constant 0 : i32
    %c0_i32_0 = arith.constant 0 : i32
    %c0_i32_1 = arith.constant 0 : i32
    return %c0_i32, %c0_i32_0 : i32, i32
  }
  func.func @transform_11(%arg0: i32) -> (i32, i32) {
    %c0_i32 = arith.constant 0 : i32
    %c0_i32_0 = arith.constant 0 : i32
    %c0_i32_1 = arith.constant 0 : i32
    return %c0_i32, %c0_i32_0 : i32, i32
  }
  func.func @transform_12(%arg0: i32) -> (i32, i32) {
    %c0_i32 = arith.constant 0 : i32
    %c0_i32_0 = arith.constant 0 : i32
    %c0_i32_1 = arith.constant 0 : i32
    return %c0_i32, %c0_i32_0 : i32, i32
  }
  func.func @transform_13(%arg0: i32) -> (i32, i32) {
    %c0_i32 = arith.constant 0 : i32
    %c0_i32_0 = arith.constant 0 : i32
    return %arg0, %c0_i32 : i32, i32
  }
}

</mosaic_0001>

<bundles_post_ra>
// kernel: fcn_forward.1
= control target key start
LH: loop header
LB: loop body
LE: loop exit
PB: predicated region body
PF: predicated region fallthrough
CT: control target
= control target key end

     0   :  { %s3149_s25 = smov 0   ;;  %s3912_s0 = inlined_call_operand.vmem [shape: f32[2048,16], index: 0, kind: input, shape index: {}]   ;;  %s3913_s1 = inlined_call_operand.vmem [shape: bf16[16,128], index: 1, kind: input, shape index: {}]   ;;  %s3914_s2 = inlined_call_operand.vmem [shape: f32[1,128], index: 2, kind: input, shape index: {}]   ;;  %s3915_s3 = inlined_call_operand.vmem [shape: bf16[128,128], index: 3, kind: input, shape index: {}]   ;;  %s3916_s4 = inlined_call_operand.vmem [shape: f32[1,128], index: 4, kind: input, shape index: {}]   ;;  %s3917_s5 = inlined_call_operand.vmem [shape: bf16[128,128], index: 5, kind: input, shape index: {}]   ;;  %s3918_s6 = inlined_call_operand.vmem [shape: f32[1,128], index: 6, kind: input, shape index: {}]   ;;  %s3919_s7 = inlined_call_operand.vmem [shape: bf16[128,128], index: 7, kind: input, shape index: {}]   ;;  %s3920_s8 = inlined_call_operand.vmem [shape: f32[1,128], index: 8, kind: input, shape index: {}]   ;;  %s3921_s9 = inlined_call_operand.vmem [shape: bf16[128,128], index: 9, kind: input, shape index: {}]   ;;  %s3922_s10 = inlined_call_operand.vmem [shape: f32[1,128], index: 10, kind: input, shape index: {}]   ;;  %s3923_s11 = inlined_call_operand.vmem [shape: bf16[128,128], index: 11, kind: input, shape index: {}]   ;;  %s3924_s12 = inlined_call_operand.vmem [shape: f32[1,128], index: 12, kind: input, shape index: {}]   ;;  %s3925_s13 = inlined_call_operand.vmem [shape: bf16[2048,128], index: 13, kind: output, shape index: {}]  }
   0x1 LB: > { %s2604_s26 = sadd.s32 4294967295, %s3077_s25   ;;  %p2608_p0 = scmp.ge.s32.totalorder %s3077_s25, 1  ;;  %s3077_s25 = sphi %s3149_s25, %s23_s25  }
   0x2   : > { %p388_p1 = scmp.lt.s32.totalorder %s3077_s25, 5 }
   0x4   : > { %p389_p2 = pnand %p2608_p0, %p388_p1 }
   0x5   : > { %s2609_s29 = sshll.u32 (!%p389_p2), %s2604_s26, 6 }
   0x6   : > { %392 = sbr.rel (%p389_p2) target bundleno = 1734 (0x6c6), region = 72  ;;  %p433_p3 = scmp.lt.s32.totalorder (!%p389_p2), %s2609_s29, 255 }
   0xb   : > { %v2811_v0 = vld [vmem:[%s3913_s1] sm:$0xff]  ;;  %s3927_s29 = smov (!%p433_p3, %s2609_s29), 255  ;;  %vm553_vm0 = vcmask 130048   ;;  %v2819_v16 = vld [vmem:[%s3915_s3 + $0x38] sm:$0xff]  ;;  %v2818_v17 = vld [vmem:[%s3915_s3 + $0x30] sm:$0xff] }
   0xc   : > { %657 = vmatpush.bf16.msra.mxu0 %v2811_v0  ;;  %3043 = vmatpush.bf16.msra.mxu3 %v2811_v0  ;;  %s2610_s30 = sshll.u32 %s3927_s29, 3  ;;  %v2817_v21 = vld [vmem:[%s3915_s3 + $0x28] sm:$0xff]  ;;  %v2816_v22 = vld [vmem:[%s3915_s3 + $0x20] sm:$0xff]  ;;  %v2815_v23 = vld [vmem:[%s3915_s3 + $0x18] sm:$0xff]  ;;  %s2612_s22 = sshll.u32 %s3927_s29, 2 }
   0xd   : > { %s3166_s16 = scalar_lea.vmem %s3912_s0, %s2610_s30  ;;  %919 = vmatpush.bf16.msra.mxu1 %v2819_v16  ;;  %3044 = vmatpush.bf16.msra.mxu2 %v2819_v16  ;;  %v2814_v27 = vld [vmem:[%s3915_s3 + $0x10] sm:$0xff]  ;;  %v2813_v28 = vld [vmem:[%s3915_s3 + $0x8] sm:$0xff]  ;;  %v2812_v29 = vld [vmem:[%s3915_s3] sm:$0xff]  ;;  %s3717_s26 = scalar_lea.vmem %s3925_s13, %s2612_s22 }
   0xe   : > { %v445_v1 = vld [vmem:[%s3166_s16] sm:$0xff]  ;;  %v446_v2 = vld [vmem:[%s3166_s16 + $0x8] sm:$0xff]  ;;  %v447_v4 = vld [vmem:[%s3166_s16 + $0x10] sm:$0xff] }
   0xf   : > { %v509_v3 = vpack.c.bf16 %v446_v2, %v445_v1  ;;  %v448_v5 = vld [vmem:[%s3166_s16 + $0x18] sm:$0xff]  ;;  %v449_v7 = vld [vmem:[%s3166_s16 + $0x20] sm:$0xff]  ;;  %v450_v8 = vld [vmem:[%s3166_s16 + $0x28] sm:$0xff] }
  0x10   : > { %v510_v6 = vpack.c.bf16 %v448_v5, %v447_v4  ;;  %v511_v9 = vpack.c.bf16 %v450_v8, %v449_v7  ;;  %v451_v10 = vld [vmem:[%s3166_s16 + $0x30] sm:$0xff]  ;;  %v452_v11 = vld [vmem:[%s3166_s16 + $0x38] sm:$0xff]  ;;  %v453_v13 = vld [vmem:[%s3166_s16 + $0x40] sm:$0xff] }
  0x11   : > { %2617 = vmatmul.msk.bf16.vlgmr.msra.gmra.mxu0 %vm553_vm0, %v509_v3  ;;  %v512_v12 = vpack.c.bf16 %v452_v11, %v451_v10  ;;  %v454_v14 = vld [vmem:[%s3166_s16 + $0x48] sm:$0xff]  ;;  %920 = vmatpush.bf16.msra.mxu1 %v2818_v17  ;;  %v455_v18 = vld [vmem:[%s3166_s16 + $0x50] sm:$0xff]  ;;  %v456_v19 = vld [vmem:[%s3166_s16 + $0x58] sm:$0xff] }
  0x12   : > { %v513_v15 = vpack.c.bf16 %v454_v14, %v453_v13  ;;  %3045 = vmatpush.bf16.msra.mxu2 %v2818_v17  ;;  %v514_v20 = vpack.c.bf16 %v456_v19, %v455_v18  ;;  %v457_v24 = vld [vmem:[%s3166_s16 + $0x60] sm:$0xff]  ;;  %v458_v25 = vld [vmem:[%s3166_s16 + $0x68] sm:$0xff]  ;;  %v459_v30 = vld [vmem:[%s3166_s16 + $0x70] sm:$0xff] }
  0x13   : > { %v515_v26 = vpack.c.bf16 %v458_v25, %v457_v24  ;;  %v460_v31 = vld [vmem:[%s3166_s16 + $0x78] sm:$0xff]  ;;  %v461_v33 = vld [vmem:[%s3166_s16 + $0x80] sm:$0xff]  ;;  %v462_v34 = vld [vmem:[%s3166_s16 + $0x88] sm:$0xff] }
  0x14   : > { %v516_v32 = vpack.c.bf16 %v460_v31, %v459_v30  ;;  %v517_v35 = vpack.c.bf16 %v462_v34, %v461_v33  ;;  %v3222_v37 = vld [vmem:[%s3914_s2] ss:$0 sm:$0xff]  ;;  %v463_v42 = vld [vmem:[%s3166_s16 + $0x90] sm:$0xff]  ;;  %v464_v43 = vld [vmem:[%s3166_s16 + $0x98] sm:$0xff] }
  0x15   : > { %921 = vmatpush.bf16.msra.mxu1 %v2817_v21  ;;  %v518_v44 = vpack.c.bf16 %v464_v43, %v463_v42  ;;  %v465_v50 = vld [vmem:[%s3166_s16 + $0xa0] sm:$0xff]  ;;  %v466_v51 = vld [vmem:[%s3166_s16 + $0xa8] sm:$0xff]  ;;  %v467_v58 = vld [vmem:[%s3166_s16 + $0xb0] sm:$0xff] }
  0x16   : > { %3046 = vmatpush.bf16.msra.mxu2 %v2817_v21  ;;  %v519_v52 = vpack.c.bf16 %v466_v51, %v465_v50  ;;  %v468_v59 = vld [vmem:[%s3166_s16 + $0xb8] sm:$0xff]  ;;  %v469_v2 = vld [vmem:[%s3166_s16 + $0xc0] sm:$0xff]  ;;  %v470_v3 = vld [vmem:[%s3166_s16 + $0xc8] sm:$0xff] }
  0x17   : > { %v520_v60 = vpack.c.bf16 %v468_v59, %v467_v58  ;;  %v521_v4 = vpack.c.bf16 %v470_v3, %v469_v2  ;;  %v471_v10 = vld [vmem:[%s3166_s16 + $0xd0] sm:$0xff]  ;;  %v472_v11 = vld [vmem:[%s3166_s16 + $0xd8] sm:$0xff]  ;;  %v473_v18 = vld [vmem:[%s3166_s16 + $0xe0] sm:$0xff] }
  0x18   : > { %v474_v19 = vld [vmem:[%s3166_s16 + $0xe8] sm:$0xff]  ;;  %v476_v30 = vld [vmem:[%s3166_s16 + $0xf8] sm:$0xff]  ;;  %v481_v33 = vld [vmem:[%s3166_s16 + $0x120] sm:$0xff] }
  0x19   : > { %922 = vmatpush.bf16.msra.mxu1 %v2816_v22  ;;  %v482_v34 = vld [vmem:[%s3166_s16 + $0x128] sm:$0xff] }
  0x1a   : > { %3047 = vmatpush.bf16.msra.mxu2 %v2816_v22  ;;  %v479_v22 = vld [vmem:[%s3166_s16 + $0x110] sm:$0xff]  ;;  %v478_v42 = vld [vmem:[%s3166_s16 + $0x108] sm:$0xff] }
  0x1b   : > { %v486_v58 = vld [vmem:[%s3166_s16 + $0x148] sm:$0xff] }
  0x1d   : > { %923 = vmatpush.bf16.msra.mxu1 %v2815_v23 }
  0x1e   : > { %3048 = vmatpush.bf16.msra.mxu2 %v2815_v23  ;;  %v480_v23 = vld [vmem:[%s3166_s16 + $0x118] sm:$0xff] }
  0x1f   : > { %v526_v24 = vpack.c.bf16 %v480_v23, %v479_v22  ;;  %v489_v23 = vld [vmem:[%s3166_s16 + $0x160] sm:$0xff] }
  0x21   : > { %2618 = vmatmul.msk.bf16.gmra.mxu0 %vm553_vm0, %v510_v6  ;;  %924 = vmatpush.bf16.msra.mxu1 %v2814_v27 }
  0x22   : > { %3049 = vmatpush.bf16.msra.mxu2 %v2814_v27  ;;  %2634 = vmatmul.msk.bf16.vlgmr.msra.gmra.mxu3 %vm553_vm0, %v526_v24  ;;  %v490_v24 = vld [vmem:[%s3166_s16 + $0x168] sm:$0xff] }
  0x25   : > { %925 = vmatpush.bf16.msra.mxu1 %v2813_v28 }
  0x26   : > { %3050 = vmatpush.bf16.msra.mxu2 %v2813_v28 }
  0x29   : > { %926 = vmatpush.bf16.msra.mxu1 %v2812_v29 }
  0x2a   : > { %3051 = vmatpush.bf16.msra.mxu2 %v2812_v29  ;;  %v475_v29 = vld [vmem:[%s3166_s16 + $0xf0] sm:$0xff] }
  0x2b   : > { %v524_v31 = vpack.c.bf16 %v476_v30, %v475_v29 }
  0x31   : > { %2619 = vmatmul.msk.bf16.gmra.mxu0 %vm553_vm0, %v511_v9 }
  0x41   : > { %2620 = vmatmul.msk.bf16.gmra.mxu0 %vm553_vm0, %v512_v12  ;;  %v522_v12 = vpack.c.bf16 %v472_v11, %v471_v10 }
  0x51   : > { %2621 = vmatmul.msk.bf16.gmra.mxu0 %vm553_vm0, %v513_v15 }
  0x61   : > { %2622 = vmatmul.msk.bf16.gmra.mxu0 %vm553_vm0, %v514_v20  ;;  %v523_v20 = vpack.c.bf16 %v474_v19, %v473_v18 }
  0x71   : > { %2623 = vmatmul.msk.bf16.gmra.mxu0 %vm553_vm0, %v515_v26 }
  0x81   : > { %2624 = vmatmul.msk.bf16.gmra.mxu0 %vm553_vm0, %v516_v32 }
  0x8e   : > { %v659_v36 = vpop.f32.mrf.mxu0 }
  0x8f   : > { %v660_v39 = vadd.f32 %v3222_v37, %v659_v36 }
  0x91   : > { %2625 = vmatmul.msk.bf16.gmra.mxu0 %vm553_vm0, %v517_v35  ;;  %v527_v35 = vpack.c.bf16 %v482_v34, %v481_v33 }
  0x93   : > { %2635 = vmatmul.msk.bf16.gmra.mxu3 %vm553_vm0, %v527_v35 }
  0x96   : > { %v661_v38 = vpop.f32.mrf.mxu0 }
  0x97   : > { %v662_v40 = vadd.f32 %v3222_v37, %v661_v38 }
  0x99   : > { %v819_v41 = vpack.c.bf16 %v662_v40, %v660_v39 }
  0x9b   : > { %927 = vmatmul.bf16.vlgmr.msra.gmra.mxu1 %v819_v41  ;;  %v477_v41 = vld [vmem:[%s3166_s16 + $0x100] sm:$0xff] }
  0x9c   : > { %v525_v43 = vpack.c.bf16 %v478_v42, %v477_v41 }
  0x9e   : > { %v664_v45 = vpop.f32.mrf.mxu0 }
  0x9f   : > { %v665_v47 = vadd.f32 %v3222_v37, %v664_v45  ;;  %v483_v45 = vld [vmem:[%s3166_s16 + $0x130] sm:$0xff] }
  0xa1   : > { %2626 = vmatmul.msk.bf16.gmra.mxu0 %vm553_vm0, %v518_v44 }
  0xa6   : > { %v666_v46 = vpop.f32.mrf.mxu0 }
  0xa7   : > { %v667_v48 = vadd.f32 %v3222_v37, %v666_v46  ;;  %v484_v46 = vld [vmem:[%s3166_s16 + $0x138] sm:$0xff] }
  0xa9   : > { %v820_v49 = vpack.c.bf16 %v667_v48, %v665_v47  ;;  %v528_v47 = vpack.c.bf16 %v484_v46, %v483_v45 }
  0xab   : > { %932 = vmatmul.bf16.gmra.mxu1 %v820_v49  ;;  %2636 = vmatmul.msk.bf16.gmra.mxu3 %vm553_vm0, %v528_v47 }
  0xae   : > { %v669_v53 = vpop.f32.mrf.mxu0 }
  0xaf   : > { %v670_v55 = vadd.f32 %v3222_v37, %v669_v53  ;;  %v3278_v53 = vld [vmem:[%s3916_s4] ss:$0 sm:$0xff] }
  0xb1   : > { %2627 = vmatmul.msk.bf16.gmra.mxu0 %vm553_vm0, %v519_v52 }
  0xb6   : > { %v671_v54 = vpop.f32.mrf.mxu0 }
  0xb7   : > { %v672_v56 = vadd.f32 %v3222_v37, %v671_v54 }
  0xb9   : > { %v821_v57 = vpack.c.bf16 %v672_v56, %v670_v55 }
  0xbb   : > { %937 = vmatmul.bf16.gmra.mxu1 %v821_v57  ;;  %v485_v57 = vld [vmem:[%s3166_s16 + $0x140] sm:$0xff] }
  0xbe   : > { %v674_v61 = vpop.f32.mrf.mxu0 }
  0xbf   : > { %v675_v63 = vadd.f32 %v3222_v37, %v674_v61 }
  0xc1   : > { %2628 = vmatmul.msk.bf16.gmra.mxu0 %vm553_vm0, %v520_v60  ;;  %v529_v60 = vpack.c.bf16 %v486_v58, %v485_v57 }
  0xc3   : > { %2637 = vmatmul.msk.bf16.gmra.mxu3 %vm553_vm0, %v529_v60  ;;  %v495_v60 = vld [vmem:[%s3166_s16 + $0x190] sm:$0xff] }
  0xc6   : > { %v676_v62 = vpop.f32.mrf.mxu0 }
  0xc7   : > { %v677_v0 = vadd.f32 %v3222_v37, %v676_v62 }
  0xc9   : > { %v822_v1 = vpack.c.bf16 %v677_v0, %v675_v63 }
  0xcb   : > { %942 = vmatmul.bf16.gmra.mxu1 %v822_v1 }
  0xce   : > { %v679_v5 = vpop.f32.mrf.mxu0 }
  0xcf   : > { %v680_v7 = vadd.f32 %v3222_v37, %v679_v5 }
  0xd1   : > { %2629 = vmatmul.msk.bf16.gmra.mxu0 %vm553_vm0, %v521_v4 }
  0xd6   : > { %v681_v6 = vpop.f32.mrf.mxu0 }
  0xd7   : > { %v682_v8 = vadd.f32 %v3222_v37, %v681_v6 }
  0xd9   : > { %v823_v9 = vpack.c.bf16 %v682_v8, %v680_v7  ;;  %v487_v8 = vld [vmem:[%s3166_s16 + $0x150] sm:$0xff] }
  0xdb   : > { %947 = vmatmul.bf16.gmra.mxu1 %v823_v9  ;;  %v488_v9 = vld [vmem:[%s3166_s16 + $0x158] sm:$0xff] }
  0xdc   : > { %v530_v11 = vpack.c.bf16 %v488_v9, %v487_v8  ;;  %v497_v8 = vld [vmem:[%s3166_s16 + $0x1a0] sm:$0xff]  ;;  %v498_v9 = vld [vmem:[%s3166_s16 + $0x1a8] sm:$0xff] }
  0xde   : > { %v684_v13 = vpop.f32.mrf.mxu0  ;;  %2638 = vmatmul.msk.bf16.gmra.mxu3 %vm553_vm0, %v530_v11 }
  0xdf   : > { %v685_v15 = vadd.f32 %v3222_v37, %v684_v13 }
  0xe1   : > { %2630 = vmatmul.msk.bf16.gmra.mxu0 %vm553_vm0, %v522_v12 }
  0xe6   : > { %v686_v14 = vpop.f32.mrf.mxu0 }
  0xe7   : > { %v687_v16 = vadd.f32 %v3222_v37, %v686_v14 }
  0xe9   : > { %v824_v17 = vpack.c.bf16 %v687_v16, %v685_v15 }
  0xeb   : > { %952 = vmatmul.bf16.gmra.mxu1 %v824_v17 }
  0xee   : > { %v689_v21 = vpop.f32.mrf.mxu0 }
  0xef   : > { %v690_v26 = vadd.f32 %v3222_v37, %v689_v21 }
  0xf1   : > { %2631 = vmatmul.msk.bf16.gmra.mxu0 %vm553_vm0, %v523_v20 }
  0xf6   : > { %v691_v25 = vpop.f32.mrf.mxu0 }
  0xf7   : > { %v692_v27 = vadd.f32 %v3222_v37, %v691_v25 }
  0xf9   : > { %v825_v28 = vpack.c.bf16 %v692_v27, %v690_v26  ;;  %v531_v26 = vpack.c.bf16 %v490_v24, %v489_v23 }
  0xfb   : > { %957 = vmatmul.bf16.gmra.mxu1 %v825_v28  ;;  %2639 = vmatmul.msk.bf16.gmra.mxu3 %vm553_vm0, %v531_v26 }
  0xfe   : > { %v694_v32 = vpop.f32.mrf.mxu0 }
  0xff   : > { %v695_v38 = vadd.f32 %v3222_v37, %v694_v32 }
 0x101   : > { %2632 = vmatmul.msk.bf16.gmra.mxu0 %vm553_vm0, %v524_v31 }
 0x106   : > { %v696_v36 = vpop.f32.mrf.mxu0 }
 0x107   : > { %v697_v39 = vadd.f32 %v3222_v37, %v696_v36 }
 0x109   : > { %v826_v40 = vpack.c.bf16 %v697_v39, %v695_v38  ;;  %v491_v39 = vld [vmem:[%s3166_s16 + $0x170] sm:$0xff] }
 0x10b   : > { %962 = vmatmul.bf16.gmra.mxu1 %v826_v40  ;;  %v492_v40 = vld [vmem:[%s3166_s16 + $0x178] sm:$0xff] }
 0x10c   : > { %v532_v42 = vpack.c.bf16 %v492_v40, %v491_v39  ;;  %v503_v39 = vld [vmem:[%s3166_s16 + $0x1d0] sm:$0xff]  ;;  %v504_v40 = vld [vmem:[%s3166_s16 + $0x1d8] sm:$0xff] }
 0x10e   : > { %v699_v44 = vpop.f32.mrf.mxu0  ;;  %2640 = vmatmul.msk.bf16.gmra.mxu3 %vm553_vm0, %v532_v42 }
 0x10f   : > { %v700_v49 = vadd.f32 %v3222_v37, %v699_v44 }
 0x111   : > { %2633 = vmatmul.msk.bf16.gmra.mxu0 %vm553_vm0, %v525_v43 }
 0x116   : > { %v701_v48 = vpop.f32.mrf.mxu0 }
 0x117   : > { %v702_v50 = vadd.f32 %v3222_v37, %v701_v48 }
 0x118   : > { %v928_v51 = vpop.f32.mrf.mxu1 }
 0x119   : > { %v827_v52 = vpack.c.bf16 %v702_v50, %v700_v49  ;;  %v929_v55 = vadd.f32 %v3278_v53, %v928_v51  ;;  %v493_v51 = vld [vmem:[%s3166_s16 + $0x180] sm:$0xff] }
 0x11b   : > { %967 = vmatmul.bf16.gmra.mxu1 %v827_v52  ;;  %v1088_v61 = vmax.f32 %v929_v55, 0.0  ;;  %v494_v52 = vld [vmem:[%s3166_s16 + $0x188] sm:$0xff] }
 0x11e   : > { %v704_v54 = vpop.f32.mrf.mxu0 }
 0x11f   : > { %v705_v1 = vadd.f32 %v3222_v37, %v704_v54  ;;  %v533_v54 = vpack.c.bf16 %v494_v52, %v493_v51 }
 0x120   : > { %v930_v56 = vpop.f32.mrf.mxu1 }
 0x121   : > { %v931_v59 = vadd.f32 %v3278_v53, %v930_v56  ;;  %2641 = vmatmul.msk.bf16.gmra.mxu3 %vm553_vm0, %v533_v54 }
 0x123   : > { %v1089_v62 = vmax.f32 %v931_v59, 0.0 }
 0x125   : > { %v3285_v63 = vpack.c.bf16 %v1089_v62, %v1088_v61  ;;  %v496_v61 = vld [vmem:[%s3166_s16 + $0x198] sm:$0xff] }
 0x126   : > { %v706_v0 = vpop.f32.mrf.mxu0  ;;  %v534_v62 = vpack.c.bf16 %v496_v61, %v495_v60 }
 0x127   : > { %v707_v2 = vadd.f32 %v3222_v37, %v706_v0 }
 0x128   : > { %v933_v3 = vpop.f32.mrf.mxu1 }
 0x129   : > { %v828_v4 = vpack.c.bf16 %v707_v2, %v705_v1  ;;  %v934_v6 = vadd.f32 %v3278_v53, %v933_v3  ;;  %v744_v1 = vpop.f32.mrf.mxu3 }
 0x12b   : > { %972 = vmatmul.bf16.gmra.mxu1 %v828_v4  ;;  %v1090_v12 = vmax.f32 %v934_v6, 0.0 }
 0x12e   : > { %v709_v5 = vpop.f32.mrf.mxu0 }
 0x12f   : > { %v710_v16 = vadd.f32 %v3222_v37, %v709_v5  ;;  %v2827_v5 = vld [vmem:[%s3917_s5 + $0x38] sm:$0xff] }
 0x130   : > { %v935_v7 = vpop.f32.mrf.mxu1  ;;  %1252 = vmatpush.bf16.msrb.mxu2 %v2827_v5 }
 0x131   : > { %v936_v10 = vadd.f32 %v3278_v53, %v935_v7  ;;  %2642 = vmatmul.msk.bf16.gmra.mxu3 %vm553_vm0, %v534_v62  ;;  %v746_v7 = vpop.f32.mrf.mxu3 }
 0x133   : > { %v1091_v13 = vmax.f32 %v936_v10, 0.0  ;;  %v535_v10 = vpack.c.bf16 %v498_v9, %v497_v8 }
 0x135   : > { %v3294_v14 = vpack.c.bf16 %v1091_v13, %v1090_v12 }
 0x136   : > { %v711_v15 = vpop.f32.mrf.mxu0 }
 0x137   : > { %v712_v17 = vadd.f32 %v3222_v37, %v711_v15 }
 0x138   : > { %v938_v18 = vpop.f32.mrf.mxu1 }
 0x139   : > { %v829_v19 = vpack.c.bf16 %v712_v17, %v710_v16  ;;  %v939_v21 = vadd.f32 %v3278_v53, %v938_v18  ;;  %v749_v12 = vpop.f32.mrf.mxu3 }
 0x13a   : > { %v750_v42 = vadd.f32 %v3222_v37, %v749_v12  ;;  %v2823_v12 = vld [vmem:[%s3917_s5 + $0x18] sm:$0xff] }
 0x13b   : > { %977 = vmatmul.bf16.gmra.mxu1 %v829_v19  ;;  %v1092_v27 = vmax.f32 %v939_v21, 0.0  ;;  %v499_v19 = vld [vmem:[%s3166_s16 + $0x1b0] sm:$0xff] }
 0x13e   : > { %v714_v20 = vpop.f32.mrf.mxu0 }
 0x13f   : > { %v715_v31 = vadd.f32 %v3222_v37, %v714_v20  ;;  %v500_v20 = vld [vmem:[%s3166_s16 + $0x1b8] sm:$0xff] }
 0x140   : > { %v940_v22 = vpop.f32.mrf.mxu1  ;;  %v536_v21 = vpack.c.bf16 %v500_v20, %v499_v19 }
 0x141   : > { %v941_v25 = vadd.f32 %v3278_v53, %v940_v22  ;;  %2643 = vmatmul.msk.bf16.gmra.mxu3 %vm553_vm0, %v535_v10  ;;  %v751_v18 = vpop.f32.mrf.mxu3 }
 0x143   : > { %v1093_v28 = vmax.f32 %v941_v25, 0.0 }
 0x145   : > { %v3303_v29 = vpack.c.bf16 %v1093_v28, %v1092_v27  ;;  %v2826_v27 = vld [vmem:[%s3917_s5 + $0x30] sm:$0xff] }
 0x146   : > { %v716_v30 = vpop.f32.mrf.mxu0  ;;  %1253 = vmatpush.bf16.msrb.mxu2 %v2826_v27 }
 0x147   : > { %v717_v32 = vadd.f32 %v3222_v37, %v716_v30  ;;  %v501_v30 = vld [vmem:[%s3166_s16 + $0x1c0] sm:$0xff] }
 0x148   : > { %v943_v33 = vpop.f32.mrf.mxu1 }
 0x149   : > { %v830_v34 = vpack.c.bf16 %v717_v32, %v715_v31  ;;  %v944_v36 = vadd.f32 %v3278_v53, %v943_v33  ;;  %v754_v23 = vpop.f32.mrf.mxu3  ;;  %v502_v31 = vld [vmem:[%s3166_s16 + $0x1c8] sm:$0xff]  ;;  %v745_v33 = vadd.f32 %v3222_v37, %v744_v1 }
 0x14a   : > { %v537_v32 = vpack.c.bf16 %v502_v31, %v501_v30  ;;  %v755_v52 = vadd.f32 %v3222_v37, %v754_v23  ;;  %v2822_v23 = vld [vmem:[%s3917_s5 + $0x10] sm:$0xff] }
 0x14b   : > { %982 = vmatmul.bf16.gmra.mxu1 %v830_v34  ;;  %v1094_v43 = vmax.f32 %v944_v36, 0.0  ;;  %v747_v34 = vadd.f32 %v3222_v37, %v746_v7 }
 0x14d   : > { %v836_v36 = vpack.c.bf16 %v747_v34, %v745_v33 }
 0x14e   : > { %v719_v35 = vpop.f32.mrf.mxu0 }
 0x14f   : > { %v720_v47 = vadd.f32 %v3222_v37, %v719_v35 }
 0x150   : > { %v945_v38 = vpop.f32.mrf.mxu1 }
 0x151   : > { %v946_v41 = vadd.f32 %v3278_v53, %v945_v38  ;;  %2644 = vmatmul.msk.bf16.gmra.mxu3 %vm553_vm0, %v536_v21  ;;  %v756_v28 = vpop.f32.mrf.mxu3 }
 0x152   : > { %v757_v54 = vadd.f32 %v3222_v37, %v756_v28 }
 0x153   : > { %v1095_v44 = vmax.f32 %v946_v41, 0.0  ;;  %v538_v41 = vpack.c.bf16 %v504_v40, %v503_v39 }
 0x155   : > { %v3312_v45 = vpack.c.bf16 %v1095_v44, %v1094_v43  ;;  %v752_v43 = vadd.f32 %v3222_v37, %v751_v18 }
 0x156   : > { %v721_v46 = vpop.f32.mrf.mxu0 }
 0x157   : > { %v722_v48 = vadd.f32 %v3222_v37, %v721_v46  ;;  %v837_v46 = vpack.c.bf16 %v752_v43, %v750_v42 }
 0x159   : > { %v831_v49 = vpack.c.bf16 %v722_v48, %v720_v47  ;;  %v759_v35 = vpop.f32.mrf.mxu3  ;;  %v2825_v47 = vld [vmem:[%s3917_s5 + $0x28] sm:$0xff] }
 0x15a   : > { %1254 = vmatpush.bf16.msrb.mxu2 %v2825_v47  ;;  %v760_v61 = vadd.f32 %v3222_v37, %v759_v35 }
 0x15b   : > { %987 = vmatmul.bf16.gmra.mxu1 %v831_v49  ;;  %v505_v49 = vld [vmem:[%s3166_s16 + $0x1e0] sm:$0xff] }
 0x15e   : > { %v724_v50 = vpop.f32.mrf.mxu0 }
 0x15f   : > { %v725_v56 = vadd.f32 %v3222_v37, %v724_v50  ;;  %v506_v50 = vld [vmem:[%s3166_s16 + $0x1e8] sm:$0xff] }
 0x160   : > { %v539_v51 = vpack.c.bf16 %v506_v50, %v505_v49  ;;  %v2821_v50 = vld [vmem:[%s3917_s5 + $0x8] sm:$0xff] }
 0x161   : > { %2645 = vmatmul.msk.bf16.gmra.mxu3 %vm553_vm0, %v537_v32  ;;  %v761_v38 = vpop.f32.mrf.mxu3 }
 0x162   : > { %v762_v62 = vadd.f32 %v3222_v37, %v761_v38 }
 0x164   : > { %v839_v1 = vpack.c.bf16 %v762_v62, %v760_v61 }
 0x166   : > { %v726_v55 = vpop.f32.mrf.mxu0 }
 0x167   : > { %v727_v57 = vadd.f32 %v3222_v37, %v726_v55 }
 0x169   : > { %v832_v58 = vpack.c.bf16 %v727_v57, %v725_v56  ;;  %v764_v44 = vpop.f32.mrf.mxu3  ;;  %v838_v56 = vpack.c.bf16 %v757_v54, %v755_v52 }
 0x16b   : > { %992 = vmatmul.bf16.gmra.mxu1 %v832_v58  ;;  %v507_v58 = vld [vmem:[%s3166_s16 + $0x1f0] sm:$0xff] }
 0x16e   : > { %v729_v59 = vpop.f32.mrf.mxu0 }
 0x16f   : > { %v730_v2 = vadd.f32 %v3222_v37, %v729_v59  ;;  %v508_v59 = vld [vmem:[%s3166_s16 + $0x1f8] sm:$0xff] }
 0x170   : > { %v540_v60 = vpack.c.bf16 %v508_v59, %v507_v58 }
 0x171   : > { %2646 = vmatmul.msk.bf16.gmra.mxu3 %vm553_vm0, %v538_v41  ;;  %v766_v48 = vpop.f32.mrf.mxu3 }
 0x172   : > { %v767_v5 = vadd.f32 %v3222_v37, %v766_v48 }
 0x176   : > { %v731_v0 = vpop.f32.mrf.mxu0 }
 0x177   : > { %v732_v3 = vadd.f32 %v3222_v37, %v731_v0 }
 0x179   : > { %v833_v4 = vpack.c.bf16 %v732_v3, %v730_v2  ;;  %v2824_v2 = vld [vmem:[%s3917_s5 + $0x20] sm:$0xff] }
 0x17a   : > { %1255 = vmatpush.bf16.msrb.mxu2 %v2824_v2 }
 0x17b   : > { %997 = vmatmul.bf16.gmra.mxu1 %v833_v4  ;;  %v765_v4 = vadd.f32 %v3222_v37, %v764_v44 }
 0x17e   : > { %v734_v6 = vpop.f32.mrf.mxu0  ;;  %v769_v55 = vpop.f32.mrf.mxu3  ;;  %1256 = vmatpush.bf16.msrb.mxu2 %v2823_v12 }
 0x17f   : > { %v735_v13 = vadd.f32 %v3222_v37, %v734_v6  ;;  %v840_v6 = vpack.c.bf16 %v767_v5, %v765_v4  ;;  %v770_v8 = vadd.f32 %v3222_v37, %v769_v55 }
 0x181   : > { %2647 = vmatmul.msk.bf16.gmra.mxu3 %vm553_vm0, %v539_v51  ;;  %v2834_v51 = vld [vmem:[%s3919_s7 + $0x30] sm:$0xff] }
 0x182   : > { %1257 = vmatpush.bf16.msrb.mxu2 %v2822_v23 }
 0x186   : > { %v736_v11 = vpop.f32.mrf.mxu0  ;;  %v771_v57 = vpop.f32.mrf.mxu3  ;;  %1258 = vmatpush.bf16.msrb.mxu2 %v2821_v50 }
 0x187   : > { %v737_v15 = vadd.f32 %v3222_v37, %v736_v11  ;;  %v772_v9 = vadd.f32 %v3222_v37, %v771_v57 }
 0x189   : > { %v834_v16 = vpack.c.bf16 %v737_v15, %v735_v13  ;;  %v841_v11 = vpack.c.bf16 %v772_v9, %v770_v8 }
 0x18b   : > { %1002 = vmatmul.bf16.gmra.mxu1 %v834_v16 }
 0x18e   : > { %v739_v17 = vpop.f32.mrf.mxu0 }
 0x18f   : > { %v740_v24 = vadd.f32 %v3222_v37, %v739_v17 }
 0x191   : > { %2648 = vmatmul.msk.bf16.gmra.mxu3 %vm553_vm0, %v540_v60  ;;  %v774_v0 = vpop.f32.mrf.mxu3 }
 0x192   : > { %v775_v15 = vadd.f32 %v3222_v37, %v774_v0 }
 0x196   : > { %v741_v22 = vpop.f32.mrf.mxu0 }
 0x197   : > { %v742_v25 = vadd.f32 %v3222_v37, %v741_v22 }
 0x199   : > { %v835_v26 = vpack.c.bf16 %v742_v25, %v740_v24  ;;  %v776_v3 = vpop.f32.mrf.mxu3  ;;  %v2835_v24 = vld [vmem:[%s3919_s7 + $0x38] sm:$0xff] }
 0x19a   : > { %v777_v16 = vadd.f32 %v3222_v37, %v776_v3  ;;  %1585 = vmatpush.bf16.msrb.mxu3 %v2835_v24 }
 0x19b   : > { %1007 = vmatmul.bf16.vlgmr.msra.gmra.mxu2 %v835_v26 }
 0x19c   : > { %v842_v17 = vpack.c.bf16 %v777_v16, %v775_v15  ;;  %v2820_v16 = vld [vmem:[%s3917_s5] sm:$0xff] }
 0x19d   : > { %1259 = vmatpush.bf16.msrb.mxu2 %v2820_v16 }
 0x19e   : > { %1586 = vmatpush.bf16.msrb.mxu3 %v2834_v51 }
 0x1a4   : > { %v779_v7 = vpop.f32.mrf.mxu3 }
 0x1a5   : > { %v780_v20 = vadd.f32 %v3222_v37, %v779_v7 }
 0x1ab   : > { %1012 = vmatmul.bf16.gmra.mxu2 %v836_v36 }
 0x1ac   : > { %v781_v10 = vpop.f32.mrf.mxu3 }
 0x1ad   : > { %v782_v21 = vadd.f32 %v3222_v37, %v781_v10 }
 0x1af   : > { %v843_v22 = vpack.c.bf16 %v782_v21, %v780_v20 }
 0x1b4   : > { %v784_v13 = vpop.f32.mrf.mxu3 }
 0x1b5   : > { %v785_v27 = vadd.f32 %v3222_v37, %v784_v13  ;;  %v2833_v13 = vld [vmem:[%s3919_s7 + $0x28] sm:$0xff] }
 0x1b6   : > { %1587 = vmatpush.bf16.msrb.mxu3 %v2833_v13 }
 0x1bb   : > { %1017 = vmatmul.bf16.gmra.mxu2 %v837_v46 }
 0x1bc   : > { %v786_v18 = vpop.f32.mrf.mxu3 }
 0x1bd   : > { %v787_v28 = vadd.f32 %v3222_v37, %v786_v18 }
 0x1bf   : > { %v844_v36 = vpack.c.bf16 %v787_v28, %v785_v27 }
 0x1c4   : > { %v789_v19 = vpop.f32.mrf.mxu3 }
 0x1c5   : > { %v790_v41 = vadd.f32 %v3222_v37, %v789_v19 }
 0x1cb   : > { %1022 = vmatmul.bf16.gmra.mxu2 %v838_v56 }
 0x1cc   : > { %v791_v26 = vpop.f32.mrf.mxu3 }
 0x1cd   : > { %v792_v42 = vadd.f32 %v3222_v37, %v791_v26 }
 0x1cf   : > { %v845_v49 = vpack.c.bf16 %v792_v42, %v790_v41 }
 0x1d4   : > { %v794_v33 = vpop.f32.mrf.mxu3 }
 0x1d5   : > { %v795_v56 = vadd.f32 %v3222_v37, %v794_v33 }
 0x1db   : > { %1027 = vmatmul.bf16.gmra.mxu2 %v839_v1 }
 0x1dc   : > { %v796_v40 = vpop.f32.mrf.mxu3 }
 0x1dd   : > { %v797_v57 = vadd.f32 %v3222_v37, %v796_v40 }
 0x1df   : > { %v846_v1 = vpack.c.bf16 %v797_v57, %v795_v56 }
 0x1e4   : > { %v799_v54 = vpop.f32.mrf.mxu3 }
 0x1e5   : > { %v800_v5 = vadd.f32 %v3222_v37, %v799_v54 }
 0x1eb   : > { %1032 = vmatmul.bf16.gmra.mxu2 %v840_v6 }
 0x1ec   : > { %v801_v60 = vpop.f32.mrf.mxu3 }
 0x1ed   : > { %v802_v6 = vadd.f32 %v3222_v37, %v801_v60  ;;  %v2843_v60 = vld [vmem:[%s3921_s9 + $0x38] sm:$0xff] }
 0x1ee   : > { %1918 = vmatpush.bf16.msrb.mxu0 %v2843_v60 }
 0x1ef   : > { %v847_v10 = vpack.c.bf16 %v802_v6, %v800_v5 }
 0x1f4   : > { %v804_v4 = vpop.f32.mrf.mxu3 }
 0x1f5   : > { %v805_v20 = vadd.f32 %v3222_v37, %v804_v4 }
 0x1fb   : > { %1037 = vmatmul.bf16.gmra.mxu2 %v841_v11 }
 0x1fc   : > { %v806_v15 = vpop.f32.mrf.mxu3 }
 0x1fd   : > { %v807_v21 = vadd.f32 %v3222_v37, %v806_v15 }
 0x204   : > { %v809_v19 = vpop.f32.mrf.mxu3 }
 0x20b   : > { %1042 = vmatmul.bf16.gmra.mxu2 %v842_v17 }
 0x21b   : > { %1047 = vmatmul.bf16.gmra.mxu2 %v843_v22 }
 0x21e   : > { %v1008_v25 = vpop.f32.mrf.mxu2 }
 0x21f   : > { %v1009_v30 = vadd.f32 %v3278_v53, %v1008_v25  ;;  %v848_v25 = vpack.c.bf16 %v807_v21, %v805_v20 }
 0x221   : > { %v1120_v34 = vmax.f32 %v1009_v30, 0.0  ;;  %v811_v30 = vpop.f32.mrf.mxu3 }
 0x222   : > { %v812_v33 = vadd.f32 %v3222_v37, %v811_v30 }
 0x226   : > { %v1010_v31 = vpop.f32.mrf.mxu2 }
 0x227   : > { %v1011_v32 = vadd.f32 %v3278_v53, %v1010_v31 }
 0x229   : > { %v1121_v35 = vmax.f32 %v1011_v32, 0.0  ;;  %v810_v32 = vadd.f32 %v3222_v37, %v809_v19 }
 0x22b   : > { %1052 = vmatmul.bf16.gmra.mxu2 %v844_v36  ;;  %v3389_v38 = vpack.c.bf16 %v1121_v35, %v1120_v34  ;;  %v849_v40 = vpack.c.bf16 %v812_v33, %v810_v32 }
 0x22e   : > { %v1013_v39 = vpop.f32.mrf.mxu2 }
 0x22f   : > { %v1014_v43 = vadd.f32 %v3278_v53, %v1013_v39  ;;  %v814_v39 = vpop.f32.mrf.mxu3 }
 0x231   : > { %v1122_v47 = vmax.f32 %v1014_v43, 0.0  ;;  %v2832_v43 = vld [vmem:[%s3919_s7 + $0x20] sm:$0xff] }
 0x232   : > { %1588 = vmatpush.bf16.msrb.mxu3 %v2832_v43 }
 0x236   : > { %v1015_v44 = vpop.f32.mrf.mxu2 }
 0x237   : > { %v1016_v46 = vadd.f32 %v3278_v53, %v1015_v44 }
 0x239   : > { %v1123_v48 = vmax.f32 %v1016_v46, 0.0 }
 0x23b   : > { %1057 = vmatmul.bf16.gmra.mxu2 %v845_v49  ;;  %v3401_v52 = vpack.c.bf16 %v1123_v48, %v1122_v47  ;;  %v816_v47 = vpop.f32.mrf.mxu3  ;;  %v815_v48 = vadd.f32 %v3222_v37, %v814_v39 }
 0x23c   : > { %v817_v49 = vadd.f32 %v3222_v37, %v816_v47  ;;  %v2831_v37 = vld [vmem:[%s3919_s7 + $0x18] sm:$0xff] }
 0x23d   : > { %1589 = vmatpush.bf16.msrb.mxu3 %v2831_v37 }
 0x23e   : > { %v1018_v55 = vpop.f32.mrf.mxu2 }
 0x23f   : > { %v1019_v58 = vadd.f32 %v3278_v53, %v1018_v55  ;;  %v850_v55 = vpack.c.bf16 %v817_v49, %v815_v48 }
 0x241   : > { %v1124_v62 = vmax.f32 %v1019_v58, 0.0 }
 0x246   : > { %v1020_v59 = vpop.f32.mrf.mxu2 }
 0x247   : > { %v1021_v61 = vadd.f32 %v3278_v53, %v1020_v59 }
 0x249   : > { %v1125_v0 = vmax.f32 %v1021_v61, 0.0 }
 0x24b   : > { %1062 = vmatmul.bf16.gmra.mxu2 %v846_v1  ;;  %v3407_v2 = vpack.c.bf16 %v1125_v0, %v1124_v62  ;;  %v948_v1 = vpop.f32.mrf.mxu1 }
 0x24e   : > { %v1023_v3 = vpop.f32.mrf.mxu2 }
 0x24f   : > { %v1024_v7 = vadd.f32 %v3278_v53, %v1023_v3 }
 0x251   : > { %v1126_v11 = vmax.f32 %v1024_v7, 0.0 }
 0x253   : > { %v950_v7 = vpop.f32.mrf.mxu1 }
 0x254   : > { %v951_v39 = vadd.f32 %v3278_v53, %v950_v7 }
 0x256   : > { %v1025_v8 = vpop.f32.mrf.mxu2  ;;  %v1097_v43 = vmax.f32 %v951_v39, 0.0 }
 0x257   : > { %v1026_v9 = vadd.f32 %v3278_v53, %v1025_v8 }
 0x259   : > { %v1127_v12 = vmax.f32 %v1026_v9, 0.0 }
 0x25b   : > { %1067 = vmatmul.bf16.gmra.mxu2 %v847_v10  ;;  %v3419_v17 = vpack.c.bf16 %v1127_v12, %v1126_v11  ;;  %v953_v15 = vpop.f32.mrf.mxu1 }
 0x25e   : > { %v1028_v18 = vpop.f32.mrf.mxu2 }
 0x25f   : > { %v1029_v22 = vadd.f32 %v3278_v53, %v1028_v18  ;;  %v2830_v18 = vld [vmem:[%s3919_s7 + $0x10] sm:$0xff] }
 0x260   : > { %1590 = vmatpush.bf16.msrb.mxu3 %v2830_v18 }
 0x261   : > { %v1128_v26 = vmax.f32 %v1029_v22, 0.0 }
 0x263   : > { %v955_v20 = vpop.f32.mrf.mxu1 }
 0x266   : > { %v1030_v23 = vpop.f32.mrf.mxu2 }
 0x267   : > { %v1031_v24 = vadd.f32 %v3278_v53, %v1030_v23 }
 0x269   : > { %v1129_v27 = vmax.f32 %v1031_v24, 0.0 }
 0x26b   : > { %1072 = vmatmul.bf16.gmra.mxu2 %v848_v25  ;;  %v3425_v28 = vpack.c.bf16 %v1129_v27, %v1128_v26  ;;  %v958_v26 = vpop.f32.mrf.mxu1 }
 0x26e   : > { %v1033_v31 = vpop.f32.mrf.mxu2 }
 0x26f   : > { %v1034_v34 = vadd.f32 %v3278_v53, %v1033_v31 }
 0x271   : > { %v1130_v41 = vmax.f32 %v1034_v34, 0.0 }
 0x273   : > { %v960_v34 = vpop.f32.mrf.mxu1 }
 0x276   : > { %v1035_v35 = vpop.f32.mrf.mxu2 }
 0x277   : > { %v1036_v36 = vadd.f32 %v3278_v53, %v1035_v35 }
 0x279   : > { %v1131_v42 = vmax.f32 %v1036_v36, 0.0 }
 0x27b   : > { %1077 = vmatmul.bf16.gmra.mxu2 %v849_v40  ;;  %v3434_v44 = vpack.c.bf16 %v1131_v42, %v1130_v41  ;;  %v2841_v40 = vld [vmem:[%s3921_s9 + $0x28] sm:$0xff]  ;;  %v949_v41 = vadd.f32 %v3278_v53, %v948_v1  ;;  %v963_v42 = vpop.f32.mrf.mxu1 }
 0x27d   : > { %v1096_v47 = vmax.f32 %v949_v41, 0.0 }
 0x27e   : > { %v1038_v46 = vpop.f32.mrf.mxu2 }
 0x27f   : > { %v1039_v50 = vadd.f32 %v3278_v53, %v1038_v46 }
 0x281   : > { %v1132_v56 = vmax.f32 %v1039_v50, 0.0 }
 0x286   : > { %v1040_v51 = vpop.f32.mrf.mxu2 }
 0x287   : > { %v1041_v54 = vadd.f32 %v3278_v53, %v1040_v51  ;;  %v1156_v51 = vpack.c.bf16 %v1097_v43, %v1096_v47 }
 0x289   : > { %v1133_v57 = vmax.f32 %v1041_v54, 0.0 }
 0x28b   : > { %1082 = vmatmul.bf16.gmra.mxu2 %v850_v55  ;;  %v3440_v58 = vpack.c.bf16 %v1133_v57, %v1132_v56  ;;  %v965_v55 = vpop.f32.mrf.mxu1  ;;  %v956_v57 = vadd.f32 %v3278_v53, %v955_v20 }
 0x28d   : > { %v1099_v60 = vmax.f32 %v956_v57, 0.0 }
 0x28e   : > { %v1043_v59 = vpop.f32.mrf.mxu2 }
 0x28f   : > { %v1044_v61 = vadd.f32 %v3278_v53, %v1043_v59  ;;  %v954_v59 = vadd.f32 %v3278_v53, %v953_v15  ;;  %v959_v15 = vadd.f32 %v3278_v53, %v958_v26  ;;  %v964_v26 = vadd.f32 %v3278_v53, %v963_v42 }
 0x291   : > { %v1134_v3 = vmax.f32 %v1044_v61, 0.0 }
 0x293   : > { %v968_v1 = vpop.f32.mrf.mxu1 }
 0x294   : > { %v969_v42 = vadd.f32 %v3278_v53, %v968_v1  ;;  %v3523_v1 = vld [vmem:[%s3918_s6] ss:$0 sm:$0xff] }
 0x296   : > { %v1045_v62 = vpop.f32.mrf.mxu2 }
 0x297   : > { %v1046_v0 = vadd.f32 %v3278_v53, %v1045_v62  ;;  %v1098_v62 = vmax.f32 %v954_v59, 0.0 }
 0x299   : > { %v1135_v4 = vmax.f32 %v1046_v0, 0.0 }
 0x29b   : > { %1260 = vmatmul.bf16.vlgmr.msrb.gmra.mxu2 %v3285_v63  ;;  %v3451_v5 = vpack.c.bf16 %v1135_v4, %v1134_v3  ;;  %v2842_v63 = vld [vmem:[%s3921_s9 + $0x30] sm:$0xff] }
 0x29c   : > { %1919 = vmatpush.bf16.msrb.mxu0 %v2842_v63 }
 0x29e   : > { %v1048_v6 = vpop.f32.mrf.mxu2 }
 0x29f   : > { %v1049_v8 = vadd.f32 %v3278_v53, %v1048_v6  ;;  %v1157_v6 = vpack.c.bf16 %v1099_v60, %v1098_v62  ;;  %v2839_v60 = vld [vmem:[%s3921_s9 + $0x18] sm:$0xff] }
 0x2a0   : > { %1920 = vmatpush.bf16.msrb.mxu0 %v2841_v40 }
 0x2a1   : > { %v1136_v11 = vmax.f32 %v1049_v8, 0.0 }
 0x2a6   : > { %v1050_v9 = vpop.f32.mrf.mxu2 }
 0x2a7   : > { %v1051_v10 = vadd.f32 %v3278_v53, %v1050_v9  ;;  %v961_v9 = vadd.f32 %v3278_v53, %v960_v34 }
 0x2a9   : > { %v1137_v12 = vmax.f32 %v1051_v10, 0.0  ;;  %v2828_v10 = vld [vmem:[%s3919_s7] sm:$0xff] }
 0x2ab   : > { %1265 = vmatmul.bf16.gmra.mxu2 %v3294_v14  ;;  %v3456_v13 = vpack.c.bf16 %v1137_v12, %v1136_v11  ;;  %v2840_v11 = vld [vmem:[%s3921_s9 + $0x20] sm:$0xff]  ;;  %v970_v12 = vpop.f32.mrf.mxu1 }
 0x2ac   : > { %1921 = vmatpush.bf16.msrb.mxu0 %v2840_v11  ;;  %v971_v47 = vadd.f32 %v3278_v53, %v970_v12 }
 0x2ae   : > { %v1053_v16 = vpop.f32.mrf.mxu2 }
 0x2af   : > { %v1054_v19 = vadd.f32 %v3278_v53, %v1053_v16  ;;  %v1101_v16 = vmax.f32 %v961_v9, 0.0 }
 0x2b0   : > { %1922 = vmatpush.bf16.msrb.mxu0 %v2839_v60 }
 0x2b1   : > { %v1138_v22 = vmax.f32 %v1054_v19, 0.0  ;;  %v1100_v19 = vmax.f32 %v959_v15, 0.0 }
 0x2b6   : > { %v1055_v21 = vpop.f32.mrf.mxu2 }
 0x2b7   : > { %v1056_v14 = vadd.f32 %v3278_v53, %v1055_v21 }
 0x2b9   : > { %v1139_v23 = vmax.f32 %v1056_v14, 0.0 }
 0x2bb   : > { %1270 = vmatmul.bf16.gmra.mxu2 %v3303_v29  ;;  %v3467_v24 = vpack.c.bf16 %v1139_v23, %v1138_v22  ;;  %v2829_v29 = vld [vmem:[%s3919_s7 + $0x8] sm:$0xff]  ;;  %v1158_v22 = vpack.c.bf16 %v1101_v16, %v1100_v19 }
 0x2bc   : > { %1591 = vmatpush.bf16.msrb.mxu3 %v2829_v29 }
 0x2be   : > { %v1058_v25 = vpop.f32.mrf.mxu2 }
 0x2bf   : > { %v1059_v27 = vadd.f32 %v3278_v53, %v1058_v25  ;;  %v973_v25 = vpop.f32.mrf.mxu1 }
 0x2c0   : > { %1592 = vmatpush.bf16.msrb.mxu3 %v2828_v10 }
 0x2c1   : > { %v1140_v32 = vmax.f32 %v1059_v27, 0.0 }
 0x2c6   : > { %v1060_v30 = vpop.f32.mrf.mxu2 }
 0x2c7   : > { %v1061_v31 = vadd.f32 %v3278_v53, %v1060_v30  ;;  %v966_v30 = vadd.f32 %v3278_v53, %v965_v55 }
 0x2c9   : > { %v1141_v33 = vmax.f32 %v1061_v31, 0.0  ;;  %v1103_v31 = vmax.f32 %v966_v30, 0.0 }
 0x2cb   : > { %1275 = vmatmul.bf16.gmra.mxu2 %v3312_v45  ;;  %v3472_v35 = vpack.c.bf16 %v1141_v33, %v1140_v32  ;;  %v975_v33 = vpop.f32.mrf.mxu1 }
 0x2ce   : > { %v1063_v36 = vpop.f32.mrf.mxu2 }
 0x2cf   : > { %v1064_v45 = vadd.f32 %v3278_v53, %v1063_v36  ;;  %v1102_v36 = vmax.f32 %v964_v26, 0.0 }
 0x2d1   : > { %v1142_v49 = vmax.f32 %v1064_v45, 0.0  ;;  %v1159_v41 = vpack.c.bf16 %v1103_v31, %v1102_v36  ;;  %v2838_v36 = vld [vmem:[%s3921_s9 + $0x10] sm:$0xff] }
 0x2d2   : > { %1923 = vmatpush.bf16.msrb.mxu0 %v2838_v36 }
 0x2d6   : > { %v1065_v46 = vpop.f32.mrf.mxu2 }
 0x2d7   : > { %v1066_v48 = vadd.f32 %v3278_v53, %v1065_v46  ;;  %v978_v46 = vpop.f32.mrf.mxu1 }
 0x2d9   : > { %v1143_v50 = vmax.f32 %v1066_v48, 0.0  ;;  %v1105_v48 = vmax.f32 %v971_v47, 0.0 }
 0x2db   : > { %1280 = vmatmul.bf16.gmra.mxu2 %v1156_v51  ;;  %v3484_v54 = vpack.c.bf16 %v1143_v50, %v1142_v49  ;;  %v1104_v51 = vmax.f32 %v969_v42, 0.0 }
 0x2dd   : > { %v1160_v59 = vpack.c.bf16 %v1105_v48, %v1104_v51 }
 0x2de   : > { %v1068_v56 = vpop.f32.mrf.mxu2 }
 0x2df   : > { %v1069_v37 = vadd.f32 %v3278_v53, %v1068_v56 }
 0x2e1   : > { %v1144_v3 = vmax.f32 %v1069_v37, 0.0  ;;  %v980_v37 = vpop.f32.mrf.mxu1 }
 0x2e6   : > { %v1070_v61 = vpop.f32.mrf.mxu2 }
 0x2e7   : > { %v1071_v0 = vadd.f32 %v3278_v53, %v1070_v61 }
 0x2e9   : > { %v1145_v4 = vmax.f32 %v1071_v0, 0.0  ;;  %v976_v0 = vadd.f32 %v3278_v53, %v975_v33 }
 0x2eb   : > { %1285 = vmatmul.bf16.gmra.mxu2 %v1157_v6  ;;  %v3490_v7 = vpack.c.bf16 %v1145_v4, %v1144_v3  ;;  %v974_v3 = vadd.f32 %v3278_v53, %v973_v25  ;;  %v983_v4 = vpop.f32.mrf.mxu1  ;;  %v1107_v6 = vmax.f32 %v976_v0, 0.0 }
 0x2ed   : > { %v1106_v10 = vmax.f32 %v974_v3, 0.0 }
 0x2ee   : > { %v1073_v8 = vpop.f32.mrf.mxu2 }
 0x2ef   : > { %v1074_v63 = vadd.f32 %v3278_v53, %v1073_v8  ;;  %v1161_v16 = vpack.c.bf16 %v1107_v6, %v1106_v10 }
 0x2f1   : > { %v1146_v21 = vmax.f32 %v1074_v63, 0.0 }
 0x2f3   : > { %v985_v19 = vpop.f32.mrf.mxu1 }
 0x2f6   : > { %v1075_v18 = vpop.f32.mrf.mxu2 }
 0x2f7   : > { %v1076_v20 = vadd.f32 %v3278_v53, %v1075_v18  ;;  %v2851_v18 = vld [vmem:[%s3923_s11 + $0x38] sm:$0xff] }
 0x2f8   : > { %2251 = vmatpush.bf16.msrb.mxu1 %v2851_v18 }
 0x2f9   : > { %v1147_v14 = vmax.f32 %v1076_v20, 0.0 }
 0x2fb   : > { %1290 = vmatmul.bf16.gmra.mxu2 %v1158_v22  ;;  %v3502_v23 = vpack.c.bf16 %v1147_v14, %v1146_v21  ;;  %v981_v21 = vadd.f32 %v3278_v53, %v980_v37  ;;  %v979_v14 = vadd.f32 %v3278_v53, %v978_v46  ;;  %v988_v31 = vpop.f32.mrf.mxu1 }
 0x2fd   : > { %v1109_v22 = vmax.f32 %v981_v21, 0.0  ;;  %v1108_v30 = vmax.f32 %v979_v14, 0.0 }
 0x2fe   : > { %v1078_v27 = vpop.f32.mrf.mxu2 }
 0x2ff   : > { %v1079_v32 = vadd.f32 %v3278_v53, %v1078_v27 }
 0x301   : > { %v1148_v29 = vmax.f32 %v1079_v32, 0.0 }
 0x306   : > { %v1080_v34 = vpop.f32.mrf.mxu2 }
 0x307   : > { %v1081_v39 = vadd.f32 %v3278_v53, %v1080_v34  ;;  %v1162_v34 = vpack.c.bf16 %v1109_v22, %v1108_v30 }
 0x309   : > { %v1149_v40 = vmax.f32 %v1081_v39, 0.0 }
 0x30b   : > { %1295 = vmatmul.bf16.gmra.mxu2 %v1159_v41  ;;  %v3508_v43 = vpack.c.bf16 %v1149_v40, %v1148_v29  ;;  %v986_v40 = vadd.f32 %v3278_v53, %v985_v19  ;;  %v990_v41 = vpop.f32.mrf.mxu1 }
 0x30c   : > { %v991_v37 = vadd.f32 %v3278_v53, %v990_v41 }
 0x30d   : > { %v1111_v46 = vmax.f32 %v986_v40, 0.0 }
 0x30e   : > { %v1083_v45 = vpop.f32.mrf.mxu2  ;;  %v1113_v0 = vmax.f32 %v991_v37, 0.0 }
 0x30f   : > { %v1084_v49 = vadd.f32 %v3278_v53, %v1083_v45  ;;  %v984_v45 = vadd.f32 %v3278_v53, %v983_v4 }
 0x311   : > { %v1150_v56 = vmax.f32 %v1084_v49, 0.0  ;;  %v1110_v48 = vmax.f32 %v984_v45, 0.0 }
 0x316   : > { %v1085_v50 = vpop.f32.mrf.mxu2 }
 0x317   : > { %v1086_v55 = vadd.f32 %v3278_v53, %v1085_v50 }
 0x319   : > { %v1151_v57 = vmax.f32 %v1086_v55, 0.0  ;;  %v1163_v55 = vpack.c.bf16 %v1111_v46, %v1110_v48 }
 0x31b   : > { %1300 = vmatmul.bf16.gmra.mxu2 %v1160_v59  ;;  %v3517_v61 = vpack.c.bf16 %v1151_v57, %v1150_v56  ;;  %v2850_v57 = vld [vmem:[%s3923_s11 + $0x30] sm:$0xff]  ;;  %v993_v59 = vpop.f32.mrf.mxu1 }
 0x31c   : > { %2252 = vmatpush.bf16.msrb.mxu1 %v2850_v57  ;;  %v3066_v57 = vld [vmem:[%s3916_s4] ss:$0 sm:$0xff] }
 0x31e   : > { %v1261_v62 = vpop.f32.mrf.mxu2 }
 0x31f   : > { %v1262_v8 = vadd.f32 %v3523_v1, %v1261_v62  ;;  %v989_v62 = vadd.f32 %v3278_v53, %v988_v31 }
 0x321   : > { %v1421_v12 = vmax.f32 %v1262_v8, 0.0  ;;  %v1112_v8 = vmax.f32 %v989_v62, 0.0 }
 0x323   : > { %v995_v4 = vpop.f32.mrf.mxu1 }
 0x324   : > { %v996_v19 = vadd.f32 %v3278_v53, %v995_v4 }
 0x326   : > { %v1263_v9 = vpop.f32.mrf.mxu2  ;;  %v1115_v21 = vmax.f32 %v996_v19, 0.0 }
 0x327   : > { %v1264_v11 = vadd.f32 %v3523_v1, %v1263_v9 }
 0x329   : > { %v1422_v15 = vmax.f32 %v1264_v11, 0.0 }
 0x32b   : > { %v1485_v63 = vpack.c.bf16 %v1422_v15, %v1421_v12  ;;  %1305 = vmatmul.bf16.gmra.mxu2 %v1161_v16  ;;  %v1164_v12 = vpack.c.bf16 %v1113_v0, %v1112_v8  ;;  %v2837_v16 = vld [vmem:[%s3921_s9 + $0x8] sm:$0xff]  ;;  %v998_v18 = vpop.f32.mrf.mxu1 }
 0x32c   : > { %1924 = vmatpush.bf16.msrb.mxu0 %v2837_v16 }
 0x32d   : > { %1593 = vmatmul.bf16.vlgmr.msrb.gmra.mxu3 %v1485_v63 }
 0x32e   : > { %v1266_v20 = vpop.f32.mrf.mxu2 }
 0x32f   : > { %v1267_v25 = vadd.f32 %v3523_v1, %v1266_v20  ;;  %v994_v20 = vadd.f32 %v3278_v53, %v993_v59 }
 0x331   : > { %v1423_v32 = vmax.f32 %v1267_v25, 0.0  ;;  %v1114_v25 = vmax.f32 %v994_v20, 0.0 }
 0x333   : > { %v1165_v31 = vpack.c.bf16 %v1115_v21, %v1114_v25 }
 0x336   : > { %v1268_v27 = vpop.f32.mrf.mxu2 }
 0x337   : > { %v1269_v26 = vadd.f32 %v3523_v1, %v1268_v27 }
 0x339   : > { %v1424_v33 = vmax.f32 %v1269_v26, 0.0 }
 0x33b   : > { %1310 = vmatmul.bf16.gmra.mxu2 %v1162_v34  ;;  %v1486_v39 = vpack.c.bf16 %v1424_v33, %v1423_v32  ;;  %v1000_v32 = vpop.f32.mrf.mxu1  ;;  %v2849_v34 = vld [vmem:[%s3923_s11 + $0x28] sm:$0xff] }
 0x33c   : > { %2253 = vmatpush.bf16.msrb.mxu1 %v2849_v34 }
 0x33d   : > { %1598 = vmatmul.bf16.gmra.mxu3 %v1486_v39  ;;  %v1001_v39 = vadd.f32 %v3278_v53, %v1000_v32 }
 0x33e   : > { %v1271_v29 = vpop.f32.mrf.mxu2 }
 0x33f   : > { %v1272_v47 = vadd.f32 %v3523_v1, %v1271_v29  ;;  %v999_v29 = vadd.f32 %v3278_v53, %v998_v18  ;;  %v1117_v41 = vmax.f32 %v1001_v39, 0.0 }
 0x341   : > { %v1425_v50 = vmax.f32 %v1272_v47, 0.0  ;;  %v1116_v47 = vmax.f32 %v999_v29, 0.0 }
 0x343   : > { %v1003_v40 = vpop.f32.mrf.mxu1 }
 0x346   : > { %v1273_v42 = vpop.f32.mrf.mxu2 }
 0x347   : > { %v1274_v49 = vadd.f32 %v3523_v1, %v1273_v42 }
 0x349   : > { %v1426_v51 = vmax.f32 %v1274_v49, 0.0 }
 0x34b   : > { %1315 = vmatmul.bf16.gmra.mxu2 %v1163_v55  ;;  %v1487_v56 = vpack.c.bf16 %v1426_v51, %v1425_v50  ;;  %v1166_v50 = vpack.c.bf16 %v1117_v41, %v1116_v47  ;;  %v2836_v55 = vld [vmem:[%s3921_s9] sm:$0xff] }
 0x34c   : > { %1925 = vmatpush.bf16.msrb.mxu0 %v2836_v55 }
 0x34d   : > { %1603 = vmatmul.bf16.gmra.mxu3 %v1487_v56  ;;  %v1005_v56 = vpop.f32.mrf.mxu1 }
 0x34e   : > { %v1276_v60 = vpop.f32.mrf.mxu2  ;;  %v1006_v59 = vadd.f32 %v3066_v57, %v1005_v56 }
 0x34f   : > { %v1277_v3 = vadd.f32 %v3523_v1, %v1276_v60  ;;  %v1004_v60 = vadd.f32 %v3066_v57, %v1003_v40 }
 0x350   : > { %v1119_v37 = vmax.f32 %v1006_v59, 0.0 }
 0x351   : > { %v1427_v10 = vmax.f32 %v1277_v3, 0.0  ;;  %v1118_v3 = vmax.f32 %v1004_v60, 0.0 }
 0x356   : > { %v1278_v6 = vpop.f32.mrf.mxu2 }
 0x357   : > { %v1279_v9 = vadd.f32 %v3523_v1, %v1278_v6 }
 0x359   : > { %v1428_v11 = vmax.f32 %v1279_v9, 0.0  ;;  %v1167_v9 = vpack.c.bf16 %v1119_v37, %v1118_v3  ;;  %v2846_v3 = vld [vmem:[%s3923_s11 + $0x10] sm:$0xff] }
 0x35b   : > { %1320 = vmatmul.bf16.gmra.mxu2 %v1164_v12  ;;  %v1488_v15 = vpack.c.bf16 %v1428_v11, %v1427_v10  ;;  %v2848_v11 = vld [vmem:[%s3923_s11 + $0x20] sm:$0xff] }
 0x35c   : > { %2254 = vmatpush.bf16.msrb.mxu1 %v2848_v11 }
 0x35d   : > { %1608 = vmatmul.bf16.gmra.mxu3 %v1488_v15 }
 0x35e   : > { %v1281_v63 = vpop.f32.mrf.mxu2 }
 0x35f   : > { %v1282_v14 = vadd.f32 %v3523_v1, %v1281_v63 }
 0x361   : > { %v1429_v30 = vmax.f32 %v1282_v14, 0.0 }
 0x366   : > { %v1283_v22 = vpop.f32.mrf.mxu2 }
 0x367   : > { %v1284_v27 = vadd.f32 %v3523_v1, %v1283_v22 }
 0x369   : > { %v1430_v26 = vmax.f32 %v1284_v27, 0.0 }
 0x36b   : > { %1325 = vmatmul.bf16.gmra.mxu2 %v1165_v31  ;;  %v1489_v33 = vpack.c.bf16 %v1430_v26, %v1429_v30  ;;  %v2847_v31 = vld [vmem:[%s3923_s11 + $0x18] sm:$0xff] }
 0x36c   : > { %2255 = vmatpush.bf16.msrb.mxu1 %v2847_v31 }
 0x36d   : > { %1613 = vmatmul.bf16.gmra.mxu3 %v1489_v33  ;;  %v3586_v33 = vld [vmem:[%s3920_s8] ss:$0 sm:$0xff] }
 0x36e   : > { %v1286_v36 = vpop.f32.mrf.mxu2 }
 0x36f   : > { %v1287_v45 = vadd.f32 %v3523_v1, %v1286_v36 }
 0x370   : > { %2256 = vmatpush.bf16.msrb.mxu1 %v2846_v3 }
 0x371   : > { %v1431_v48 = vmax.f32 %v1287_v45, 0.0 }
 0x376   : > { %v1288_v46 = vpop.f32.mrf.mxu2 }
 0x377   : > { %v1289_v42 = vadd.f32 %v3523_v1, %v1288_v46 }
 0x379   : > { %v1432_v49 = vmax.f32 %v1289_v42, 0.0 }
 0x37b   : > { %1330 = vmatmul.bf16.gmra.mxu2 %v1166_v50  ;;  %v1490_v51 = vpack.c.bf16 %v1432_v49, %v1431_v48 }
 0x37d   : > { %1618 = vmatmul.bf16.gmra.mxu3 %v1490_v51 }
 0x37e   : > { %v1291_v53 = vpop.f32.mrf.mxu2 }
 0x37f   : > { %v1292_v62 = vadd.f32 %v3523_v1, %v1291_v53 }
 0x381   : > { %v1433_v6 = vmax.f32 %v1292_v62, 0.0 }
 0x386   : > { %v1293_v0 = vpop.f32.mrf.mxu2 }
 0x387   : > { %v1294_v4 = vadd.f32 %v3523_v1, %v1293_v0 }
 0x389   : > { %v1434_v8 = vmax.f32 %v1294_v4, 0.0 }
 0x38b   : > { %1335 = vmatmul.bf16.gmra.mxu2 %v1167_v9  ;;  %v1491_v10 = vpack.c.bf16 %v1434_v8, %v1433_v6 }
 0x38d   : > { %1623 = vmatmul.bf16.gmra.mxu3 %v1491_v10 }
 0x38e   : > { %v1296_v12 = vpop.f32.mrf.mxu2 }
 0x38f   : > { %v1297_v15 = vadd.f32 %v3523_v1, %v1296_v12 }
 0x391   : > { %v1435_v18 = vmax.f32 %v1297_v15, 0.0 }
 0x396   : > { %v1298_v16 = vpop.f32.mrf.mxu2 }
 0x397   : > { %v1299_v63 = vadd.f32 %v3523_v1, %v1298_v16 }
 0x399   : > { %v1436_v19 = vmax.f32 %v1299_v63, 0.0 }
 0x39b   : > { %1340 = vmatmul.bf16.gmra.mxu2 %v3389_v38  ;;  %v1492_v20 = vpack.c.bf16 %v1436_v19, %v1435_v18 }
 0x39d   : > { %1628 = vmatmul.bf16.gmra.mxu3 %v1492_v20 }
 0x39e   : > { %v1301_v21 = vpop.f32.mrf.mxu2 }
 0x39f   : > { %v1302_v14 = vadd.f32 %v3523_v1, %v1301_v21 }
 0x3a1   : > { %v1437_v27 = vmax.f32 %v1302_v14, 0.0 }
 0x3a6   : > { %v1303_v22 = vpop.f32.mrf.mxu2 }
 0x3a7   : > { %v1304_v25 = vadd.f32 %v3523_v1, %v1303_v22 }
 0x3a9   : > { %v1438_v30 = vmax.f32 %v1304_v25, 0.0 }
 0x3ab   : > { %1345 = vmatmul.bf16.gmra.mxu2 %v3401_v52  ;;  %v1493_v26 = vpack.c.bf16 %v1438_v30, %v1437_v27 }
 0x3ad   : > { %1633 = vmatmul.bf16.gmra.mxu3 %v1493_v26 }
 0x3ae   : > { %v1306_v38 = vpop.f32.mrf.mxu2 }
 0x3af   : > { %v1307_v34 = vadd.f32 %v3523_v1, %v1306_v38 }
 0x3b0   : > { %v1594_v32 = vpop.f32.mrf.mxu3 }
 0x3b1   : > { %v1595_v39 = vadd.f32 %v3586_v33, %v1594_v32  ;;  %v1439_v40 = vmax.f32 %v1307_v34, 0.0 }
 0x3b3   : > { %v1754_v46 = vmax.f32 %v1595_v39, 0.0 }
 0x3b6   : > { %v1308_v36 = vpop.f32.mrf.mxu2 }
 0x3b7   : > { %v1309_v52 = vadd.f32 %v3523_v1, %v1308_v36 }
 0x3b8   : > { %v1596_v29 = vpop.f32.mrf.mxu3 }
 0x3b9   : > { %v1440_v41 = vmax.f32 %v1309_v52, 0.0  ;;  %v1597_v45 = vadd.f32 %v3586_v33, %v1596_v29  ;;  %v2845_v52 = vld [vmem:[%s3923_s11 + $0x8] sm:$0xff] }
 0x3ba   : > { %2257 = vmatpush.bf16.msrb.mxu1 %v2845_v52 }
 0x3bb   : > { %v1755_v47 = vmax.f32 %v1597_v45, 0.0  ;;  %1350 = vmatmul.bf16.gmra.mxu2 %v3407_v2  ;;  %v1494_v42 = vpack.c.bf16 %v1440_v41, %v1439_v40 }
 0x3bd   : > { %v1818_v48 = vpack.c.bf16 %v1755_v47, %v1754_v46  ;;  %1638 = vmatmul.bf16.gmra.mxu3 %v1494_v42 }
 0x3be   : > { %v1311_v49 = vpop.f32.mrf.mxu2 }
 0x3bf   : > { %1926 = vmatmul.bf16.vlgmr.msrb.gmra.mxu0 %v1818_v48  ;;  %v1312_v51 = vadd.f32 %v3523_v1, %v1311_v49 }
 0x3c0   : > { %v1599_v50 = vpop.f32.mrf.mxu3 }
 0x3c1   : > { %v1600_v56 = vadd.f32 %v3586_v33, %v1599_v50  ;;  %v1441_v59 = vmax.f32 %v1312_v51, 0.0 }
 0x3c3   : > { %v1756_v62 = vmax.f32 %v1600_v56, 0.0 }
 0x3c6   : > { %v1313_v55 = vpop.f32.mrf.mxu2 }
 0x3c7   : > { %v1314_v53 = vadd.f32 %v3523_v1, %v1313_v55 }
 0x3c8   : > { %v1601_v57 = vpop.f32.mrf.mxu3 }
 0x3c9   : > { %v1442_v60 = vmax.f32 %v1314_v53, 0.0  ;;  %v1602_v37 = vadd.f32 %v3586_v33, %v1601_v57 }
 0x3cb   : > { %v1757_v2 = vmax.f32 %v1602_v37, 0.0  ;;  %1355 = vmatmul.bf16.gmra.mxu2 %v3419_v17  ;;  %v1495_v0 = vpack.c.bf16 %v1442_v60, %v1441_v59 }
 0x3cd   : > { %1643 = vmatmul.bf16.gmra.mxu3 %v1495_v0  ;;  %v1819_v4 = vpack.c.bf16 %v1757_v2, %v1756_v62 }
 0x3ce   : > { %v1316_v6 = vpop.f32.mrf.mxu2 }
 0x3cf   : > { %1931 = vmatmul.bf16.gmra.mxu0 %v1819_v4  ;;  %v1317_v9 = vadd.f32 %v3523_v1, %v1316_v6 }
 0x3d0   : > { %v1604_v8 = vpop.f32.mrf.mxu3 }
 0x3d1   : > { %v1605_v11 = vadd.f32 %v3586_v33, %v1604_v8  ;;  %v1443_v17 = vmax.f32 %v1317_v9, 0.0 }
 0x3d3   : > { %v1758_v18 = vmax.f32 %v1605_v11, 0.0 }
 0x3d6   : > { %v1318_v10 = vpop.f32.mrf.mxu2 }
 0x3d7   : > { %v1319_v12 = vadd.f32 %v3523_v1, %v1318_v10  ;;  %v2844_v10 = vld [vmem:[%s3923_s11] sm:$0xff] }
 0x3d8   : > { %v1606_v15 = vpop.f32.mrf.mxu3  ;;  %2258 = vmatpush.bf16.msrb.mxu1 %v2844_v10 }
 0x3d9   : > { %v1444_v16 = vmax.f32 %v1319_v12, 0.0  ;;  %v1607_v63 = vadd.f32 %v3586_v33, %v1606_v15 }
 0x3db   : > { %v1759_v19 = vmax.f32 %v1607_v63, 0.0  ;;  %1360 = vmatmul.bf16.gmra.mxu2 %v3425_v28  ;;  %v1496_v20 = vpack.c.bf16 %v1444_v16, %v1443_v17 }
 0x3dd   : > { %1648 = vmatmul.bf16.gmra.mxu3 %v1496_v20  ;;  %v1820_v21 = vpack.c.bf16 %v1759_v19, %v1758_v18 }
 0x3de   : > { %v1321_v14 = vpop.f32.mrf.mxu2 }
 0x3df   : > { %1936 = vmatmul.bf16.gmra.mxu0 %v1820_v21  ;;  %v1322_v25 = vadd.f32 %v3523_v1, %v1321_v14 }
 0x3e0   : > { %v1609_v22 = vpop.f32.mrf.mxu3 }
 0x3e1   : > { %v1610_v30 = vadd.f32 %v3586_v33, %v1609_v22  ;;  %v1445_v38 = vmax.f32 %v1322_v25, 0.0 }
 0x3e3   : > { %v1760_v36 = vmax.f32 %v1610_v30, 0.0 }
 0x3e6   : > { %v1323_v27 = vpop.f32.mrf.mxu2 }
 0x3e7   : > { %v1324_v26 = vadd.f32 %v3523_v1, %v1323_v27 }
 0x3e8   : > { %v1611_v31 = vpop.f32.mrf.mxu3 }
 0x3e9   : > { %v1446_v32 = vmax.f32 %v1324_v26, 0.0  ;;  %v1612_v34 = vadd.f32 %v3586_v33, %v1611_v31 }
 0x3eb   : > { %v1761_v28 = vmax.f32 %v1612_v34, 0.0  ;;  %1365 = vmatmul.bf16.gmra.mxu2 %v3434_v44  ;;  %v1497_v39 = vpack.c.bf16 %v1446_v32, %v1445_v38 }
 0x3ed   : > { %1653 = vmatmul.bf16.gmra.mxu3 %v1497_v39  ;;  %v1821_v29 = vpack.c.bf16 %v1761_v28, %v1760_v36 }
 0x3ee   : > { %v1326_v40 = vpop.f32.mrf.mxu2 }
 0x3ef   : > { %1941 = vmatmul.bf16.gmra.mxu0 %v1821_v29  ;;  %v1327_v45 = vadd.f32 %v3523_v1, %v1326_v40 }
 0x3f0   : > { %v1614_v41 = vpop.f32.mrf.mxu3 }
 0x3f1   : > { %v1615_v47 = vadd.f32 %v3586_v33, %v1614_v41  ;;  %v1447_v44 = vmax.f32 %v1327_v45, 0.0 }
 0x3f3   : > { %v1762_v51 = vmax.f32 %v1615_v47, 0.0 }
 0x3f6   : > { %v1328_v46 = vpop.f32.mrf.mxu2 }
 0x3f7   : > { %v1329_v42 = vadd.f32 %v3523_v1, %v1328_v46 }
 0x3f8   : > { %v1616_v48 = vpop.f32.mrf.mxu3 }
 0x3f9   : > { %v1448_v49 = vmax.f32 %v1329_v42, 0.0  ;;  %v1617_v50 = vadd.f32 %v3586_v33, %v1616_v48 }
 0x3fb   : > { %v1763_v55 = vmax.f32 %v1617_v50, 0.0  ;;  %1370 = vmatmul.bf16.gmra.mxu2 %v3440_v58  ;;  %v1498_v56 = vpack.c.bf16 %v1448_v49, %v1447_v44 }
 0x3fd   : > { %1658 = vmatmul.bf16.gmra.mxu3 %v1498_v56  ;;  %v1822_v53 = vpack.c.bf16 %v1763_v55, %v1762_v51 }
 0x3fe   : > { %v1331_v57 = vpop.f32.mrf.mxu2 }
 0x3ff   : > { %1946 = vmatmul.bf16.gmra.mxu0 %v1822_v53  ;;  %v1332_v60 = vadd.f32 %v3523_v1, %v1331_v57 }
 0x400   : > { %v1619_v59 = vpop.f32.mrf.mxu3 }
 0x401   : > { %v1620_v62 = vadd.f32 %v3586_v33, %v1619_v59  ;;  %v1449_v3 = vmax.f32 %v1332_v60, 0.0 }
 0x403   : > { %v1764_v8 = vmax.f32 %v1620_v62, 0.0 }
 0x406   : > { %v1333_v37 = vpop.f32.mrf.mxu2 }
 0x407   : > { %v1334_v2 = vadd.f32 %v3523_v1, %v1333_v37  ;;  %v3645_v37 = vld [vmem:[%s3922_s10] ss:$0 sm:$0xff] }
 0x408   : > { %v1621_v0 = vpop.f32.mrf.mxu3 }
 0x409   : > { %v1450_v4 = vmax.f32 %v1334_v2, 0.0  ;;  %v1622_v6 = vadd.f32 %v3586_v33, %v1621_v0 }
 0x40b   : > { %v1765_v58 = vmax.f32 %v1622_v6, 0.0  ;;  %1375 = vmatmul.bf16.gmra.mxu2 %v3451_v5  ;;  %v1499_v9 = vpack.c.bf16 %v1450_v4, %v1449_v3 }
 0x40d   : > { %1663 = vmatmul.bf16.gmra.mxu3 %v1499_v9  ;;  %v1823_v11 = vpack.c.bf16 %v1765_v58, %v1764_v8 }
 0x40e   : > { %v1336_v12 = vpop.f32.mrf.mxu2 }
 0x40f   : > { %1951 = vmatmul.bf16.gmra.mxu0 %v1823_v11  ;;  %v1337_v17 = vadd.f32 %v3523_v1, %v1336_v12 }
 0x410   : > { %v1624_v15 = vpop.f32.mrf.mxu3 }
 0x411   : > { %v1625_v63 = vadd.f32 %v3586_v33, %v1624_v15  ;;  %v1451_v5 = vmax.f32 %v1337_v17, 0.0 }
 0x413   : > { %v1766_v14 = vmax.f32 %v1625_v63, 0.0 }
 0x416   : > { %v1338_v16 = vpop.f32.mrf.mxu2 }
 0x417   : > { %v1339_v18 = vadd.f32 %v3523_v1, %v1338_v16 }
 0x418   : > { %v1626_v19 = vpop.f32.mrf.mxu3 }
 0x419   : > { %v1452_v20 = vmax.f32 %v1339_v18, 0.0  ;;  %v1627_v21 = vadd.f32 %v3586_v33, %v1626_v19 }
 0x41b   : > { %v1767_v22 = vmax.f32 %v1627_v21, 0.0  ;;  %1380 = vmatmul.bf16.gmra.mxu2 %v3456_v13  ;;  %v1500_v25 = vpack.c.bf16 %v1452_v20, %v1451_v5 }
 0x41d   : > { %1668 = vmatmul.bf16.gmra.mxu3 %v1500_v25  ;;  %v1824_v27 = vpack.c.bf16 %v1767_v22, %v1766_v14 }
 0x41e   : > { %v1341_v30 = vpop.f32.mrf.mxu2 }
 0x41f   : > { %1956 = vmatmul.bf16.gmra.mxu0 %v1824_v27  ;;  %v1342_v31 = vadd.f32 %v3523_v1, %v1341_v30 }
 0x420   : > { %v1629_v26 = vpop.f32.mrf.mxu3 }
 0x421   : > { %v1630_v32 = vadd.f32 %v3586_v33, %v1629_v26  ;;  %v1453_v28 = vmax.f32 %v1342_v31, 0.0 }
 0x423   : > { %v1768_v29 = vmax.f32 %v1630_v32, 0.0 }
 0x426   : > { %v1343_v38 = vpop.f32.mrf.mxu2 }
 0x427   : > { %v1344_v34 = vadd.f32 %v3523_v1, %v1343_v38 }
 0x428   : > { %v1631_v36 = vpop.f32.mrf.mxu3 }
 0x429   : > { %v1454_v39 = vmax.f32 %v1344_v34, 0.0  ;;  %v1632_v52 = vadd.f32 %v3586_v33, %v1631_v36 }
 0x42b   : > { %v1769_v13 = vmax.f32 %v1632_v52, 0.0  ;;  %1385 = vmatmul.bf16.gmra.mxu2 %v3467_v24  ;;  %v1501_v40 = vpack.c.bf16 %v1454_v39, %v1453_v28 }
 0x42d   : > { %1673 = vmatmul.bf16.gmra.mxu3 %v1501_v40  ;;  %v1825_v41 = vpack.c.bf16 %v1769_v13, %v1768_v29 }
 0x42e   : > { %v1346_v45 = vpop.f32.mrf.mxu2 }
 0x42f   : > { %1961 = vmatmul.bf16.gmra.mxu0 %v1825_v41  ;;  %v1347_v47 = vadd.f32 %v3523_v1, %v1346_v45 }
 0x430   : > { %v1634_v46 = vpop.f32.mrf.mxu3 }
 0x431   : > { %v1635_v48 = vadd.f32 %v3586_v33, %v1634_v46  ;;  %v1455_v50 = vmax.f32 %v1347_v47, 0.0 }
 0x433   : > { %v1770_v56 = vmax.f32 %v1635_v48, 0.0 }
 0x436   : > { %v1348_v42 = vpop.f32.mrf.mxu2 }
 0x437   : > { %v1349_v44 = vadd.f32 %v3523_v1, %v1348_v42 }
 0x438   : > { %v1636_v49 = vpop.f32.mrf.mxu3 }
 0x439   : > { %v1456_v51 = vmax.f32 %v1349_v44, 0.0  ;;  %v1637_v55 = vadd.f32 %v3586_v33, %v1636_v49 }
 0x43b   : > { %v1771_v24 = vmax.f32 %v1637_v55, 0.0  ;;  %1390 = vmatmul.bf16.gmra.mxu2 %v3472_v35  ;;  %v1502_v53 = vpack.c.bf16 %v1456_v51, %v1455_v50 }
 0x43c   : > { %v1927_v57 = vpop.f32.mrf.mxu0 }
 0x43d   : > { %1678 = vmatmul.bf16.gmra.mxu3 %v1502_v53  ;;  %v1826_v59 = vpack.c.bf16 %v1771_v24, %v1770_v56  ;;  %v1928_v2 = vadd.f32 %v3645_v37, %v1927_v57 }
 0x43e   : > { %v1351_v60 = vpop.f32.mrf.mxu2 }
 0x43f   : > { %1966 = vmatmul.bf16.gmra.mxu0 %v1826_v59  ;;  %v1352_v3 = vadd.f32 %v3523_v1, %v1351_v60  ;;  %v2087_v6 = vmax.f32 %v1928_v2, 0.0 }
 0x440   : > { %v1639_v62 = vpop.f32.mrf.mxu3 }
 0x441   : > { %v1640_v8 = vadd.f32 %v3586_v33, %v1639_v62  ;;  %v1457_v11 = vmax.f32 %v1352_v3, 0.0 }
 0x443   : > { %v1772_v16 = vmax.f32 %v1640_v8, 0.0 }
 0x444   : > { %v1929_v0 = vpop.f32.mrf.mxu0 }
 0x445   : > { %v1930_v4 = vadd.f32 %v3645_v37, %v1929_v0 }
 0x446   : > { %v1353_v35 = vpop.f32.mrf.mxu2 }
 0x447   : > { %v2088_v58 = vmax.f32 %v1930_v4, 0.0  ;;  %v1354_v9 = vadd.f32 %v3523_v1, %v1353_v35 }
 0x448   : > { %v1641_v10 = vpop.f32.mrf.mxu3 }
 0x449   : > { %v2151_v12 = vpack.c.bf16 %v2088_v58, %v2087_v6  ;;  %v1458_v15 = vmax.f32 %v1354_v9, 0.0  ;;  %v1642_v17 = vadd.f32 %v3586_v33, %v1641_v10 }
 0x44b   : > { %v1773_v63 = vmax.f32 %v1642_v17, 0.0  ;;  %1395 = vmatmul.bf16.gmra.mxu2 %v3484_v54  ;;  %2259 = vmatmul.bf16.vlgmr.msrb.gmra.mxu1 %v2151_v12  ;;  %v1503_v18 = vpack.c.bf16 %v1458_v15, %v1457_v11 }
 0x44c   : > { %v1932_v19 = vpop.f32.mrf.mxu0 }
 0x44d   : > { %1683 = vmatmul.bf16.gmra.mxu3 %v1503_v18  ;;  %v1827_v5 = vpack.c.bf16 %v1773_v63, %v1772_v16  ;;  %v1933_v14 = vadd.f32 %v3645_v37, %v1932_v19 }
 0x44e   : > { %v1356_v20 = vpop.f32.mrf.mxu2 }
 0x44f   : > { %1971 = vmatmul.bf16.gmra.mxu0 %v1827_v5  ;;  %v1357_v25 = vadd.f32 %v3523_v1, %v1356_v20  ;;  %v2089_v26 = vmax.f32 %v1933_v14, 0.0 }
 0x450   : > { %v1644_v21 = vpop.f32.mrf.mxu3 }
 0x451   : > { %v1645_v31 = vadd.f32 %v3586_v33, %v1644_v21  ;;  %v1459_v34 = vmax.f32 %v1357_v25, 0.0 }
 0x453   : > { %v1774_v52 = vmax.f32 %v1645_v31, 0.0 }
 0x454   : > { %v1934_v22 = vpop.f32.mrf.mxu0 }
 0x455   : > { %v1935_v27 = vadd.f32 %v3645_v37, %v1934_v22 }
 0x456   : > { %v1358_v30 = vpop.f32.mrf.mxu2 }
 0x457   : > { %v2090_v54 = vmax.f32 %v1935_v27, 0.0  ;;  %v1359_v38 = vadd.f32 %v3523_v1, %v1358_v30 }
 0x458   : > { %v1646_v32 = vpop.f32.mrf.mxu3 }
 0x459   : > { %v1460_v36 = vmax.f32 %v1359_v38, 0.0  ;;  %v1647_v28 = vadd.f32 %v3586_v33, %v1646_v32  ;;  %v2152_v39 = vpack.c.bf16 %v2090_v54, %v2089_v26 }
 0x45b   : > { %v1775_v29 = vmax.f32 %v1647_v28, 0.0  ;;  %1400 = vmatmul.bf16.gmra.mxu2 %v3490_v7  ;;  %2264 = vmatmul.bf16.gmra.mxu1 %v2152_v39  ;;  %v1504_v13 = vpack.c.bf16 %v1460_v36, %v1459_v34 }
 0x45c   : > { %v1937_v40 = vpop.f32.mrf.mxu0 }
 0x45d   : > { %1688 = vmatmul.bf16.gmra.mxu3 %v1504_v13  ;;  %v1828_v41 = vpack.c.bf16 %v1775_v29, %v1774_v52  ;;  %v1938_v47 = vadd.f32 %v3645_v37, %v1937_v40 }
 0x45e   : > { %v1361_v45 = vpop.f32.mrf.mxu2 }
 0x45f   : > { %1976 = vmatmul.bf16.gmra.mxu0 %v1828_v41  ;;  %v1362_v48 = vadd.f32 %v3523_v1, %v1361_v45  ;;  %v2091_v50 = vmax.f32 %v1938_v47, 0.0 }
 0x460   : > { %v1649_v46 = vpop.f32.mrf.mxu3 }
 0x461   : > { %v1650_v51 = vadd.f32 %v3586_v33, %v1649_v46  ;;  %v1461_v24 = vmax.f32 %v1362_v48, 0.0 }
 0x463   : > { %v1776_v60 = vmax.f32 %v1650_v51, 0.0 }
 0x464   : > { %v1939_v42 = vpop.f32.mrf.mxu0 }
 0x465   : > { %v1940_v44 = vadd.f32 %v3645_v37, %v1939_v42 }
 0x466   : > { %v1363_v49 = vpop.f32.mrf.mxu2 }
 0x467   : > { %v2092_v7 = vmax.f32 %v1940_v44, 0.0  ;;  %v1364_v55 = vadd.f32 %v3523_v1, %v1363_v49 }
 0x468   : > { %v1651_v56 = vpop.f32.mrf.mxu3 }
 0x469   : > { %v1462_v53 = vmax.f32 %v1364_v55, 0.0  ;;  %v1652_v57 = vadd.f32 %v3586_v33, %v1651_v56  ;;  %v2153_v59 = vpack.c.bf16 %v2092_v7, %v2091_v50 }
 0x46b   : > { %v1505_v62 = vpack.c.bf16 %v1462_v53, %v1461_v24  ;;  %v1777_v2 = vmax.f32 %v1652_v57, 0.0  ;;  %1405 = vmatmul.bf16.gmra.mxu2 %v3502_v23  ;;  %2269 = vmatmul.bf16.gmra.mxu1 %v2153_v59 }
 0x46c   : > { %v1942_v0 = vpop.f32.mrf.mxu0 }
 0x46d   : > { %1693 = vmatmul.bf16.gmra.mxu3 %v1505_v62  ;;  %v1829_v3 = vpack.c.bf16 %v1777_v2, %v1776_v60  ;;  %v1943_v6 = vadd.f32 %v3645_v37, %v1942_v0 }
 0x46e   : > { %v1366_v4 = vpop.f32.mrf.mxu2 }
 0x46f   : > { %1981 = vmatmul.bf16.gmra.mxu0 %v1829_v3  ;;  %v1367_v58 = vadd.f32 %v3523_v1, %v1366_v4  ;;  %v2093_v11 = vmax.f32 %v1943_v6, 0.0 }
 0x470   : > { %v1654_v35 = vpop.f32.mrf.mxu3 }
 0x471   : > { %v1655_v12 = vadd.f32 %v3586_v33, %v1654_v35  ;;  %v1463_v16 = vmax.f32 %v1367_v58, 0.0 }
 0x473   : > { %v1778_v5 = vmax.f32 %v1655_v12, 0.0 }
 0x474   : > { %v1944_v8 = vpop.f32.mrf.mxu0 }
 0x475   : > { %v1945_v9 = vadd.f32 %v3645_v37, %v1944_v8 }
 0x476   : > { %v1368_v10 = vpop.f32.mrf.mxu2 }
 0x477   : > { %v2094_v15 = vmax.f32 %v1945_v9, 0.0  ;;  %v1369_v23 = vadd.f32 %v3523_v1, %v1368_v10 }
 0x478   : > { %v1656_v17 = vpop.f32.mrf.mxu3 }
 0x479   : > { %v1464_v63 = vmax.f32 %v1369_v23, 0.0  ;;  %v1657_v18 = vadd.f32 %v3586_v33, %v1656_v17  ;;  %v2154_v19 = vpack.c.bf16 %v2094_v15, %v2093_v11 }
 0x47b   : > { %v1506_v20 = vpack.c.bf16 %v1464_v63, %v1463_v16  ;;  %v1779_v21 = vmax.f32 %v1657_v18, 0.0  ;;  %1410 = vmatmul.bf16.gmra.mxu2 %v3508_v43  ;;  %2274 = vmatmul.bf16.gmra.mxu1 %v2154_v19 }
 0x47c   : > { %v1947_v14 = vpop.f32.mrf.mxu0 }
 0x47d   : > { %1698 = vmatmul.bf16.gmra.mxu3 %v1506_v20  ;;  %v1830_v22 = vpack.c.bf16 %v1779_v21, %v1778_v5  ;;  %v1948_v30 = vadd.f32 %v3645_v37, %v1947_v14 }
 0x47e   : > { %v1371_v25 = vpop.f32.mrf.mxu2 }
 0x47f   : > { %1986 = vmatmul.bf16.gmra.mxu0 %v1830_v22  ;;  %v1372_v31 = vadd.f32 %v3523_v1, %v1371_v25  ;;  %v2095_v32 = vmax.f32 %v1948_v30, 0.0 }
 0x480   : > { %v1659_v27 = vpop.f32.mrf.mxu3 }
 0x481   : > { %v1660_v34 = vadd.f32 %v3586_v33, %v1659_v27  ;;  %v1465_v39 = vmax.f32 %v1372_v31, 0.0 }
 0x483   : > { %v1780_v40 = vmax.f32 %v1660_v34, 0.0 }
 0x484   : > { %v1949_v26 = vpop.f32.mrf.mxu0 }
 0x485   : > { %v1950_v54 = vadd.f32 %v3645_v37, %v1949_v26 }
 0x486   : > { %v1373_v38 = vpop.f32.mrf.mxu2 }
 0x487   : > { %v2096_v36 = vmax.f32 %v1950_v54, 0.0  ;;  %v1374_v43 = vadd.f32 %v3523_v1, %v1373_v38 }
 0x488   : > { %v1661_v28 = vpop.f32.mrf.mxu3 }
 0x489   : > { %v1466_v52 = vmax.f32 %v1374_v43, 0.0  ;;  %v1662_v29 = vadd.f32 %v3586_v33, %v1661_v28  ;;  %v2155_v13 = vpack.c.bf16 %v2096_v36, %v2095_v32 }
 0x48b   : > { %v1507_v41 = vpack.c.bf16 %v1466_v52, %v1465_v39  ;;  %v1781_v45 = vmax.f32 %v1662_v29, 0.0  ;;  %1415 = vmatmul.bf16.gmra.mxu2 %v3517_v61  ;;  %2279 = vmatmul.bf16.gmra.mxu1 %v2155_v13 }
 0x48c   : > { %v1952_v46 = vpop.f32.mrf.mxu0 }
 0x48d   : > { %1703 = vmatmul.bf16.gmra.mxu3 %v1507_v41  ;;  %v1831_v47 = vpack.c.bf16 %v1781_v45, %v1780_v40  ;;  %v1953_v44 = vadd.f32 %v3645_v37, %v1952_v46 }
 0x48e   : > { %v1376_v42 = vpop.f32.mrf.mxu2 }
 0x48f   : > { %1991 = vmatmul.bf16.gmra.mxu0 %v1831_v47  ;;  %v1377_v50 = vadd.f32 %v3523_v1, %v1376_v42  ;;  %v2097_v55 = vmax.f32 %v1953_v44, 0.0 }
 0x490   : > { %v1664_v48 = vpop.f32.mrf.mxu3 }
 0x491   : > { %v1665_v56 = vadd.f32 %v3586_v33, %v1664_v48  ;;  %v1467_v57 = vmax.f32 %v1377_v50, 0.0 }
 0x493   : > { %v1782_v2 = vmax.f32 %v1665_v56, 0.0 }
 0x494   : > { %v1954_v49 = vpop.f32.mrf.mxu0 }
 0x495   : > { %v1955_v51 = vadd.f32 %v3645_v37, %v1954_v49 }
 0x496   : > { %v1378_v7 = vpop.f32.mrf.mxu2 }
 0x497   : > { %v2098_v24 = vmax.f32 %v1955_v51, 0.0  ;;  %v1379_v61 = vadd.f32 %v3523_v1, %v1378_v7 }
 0x498   : > { %v1666_v53 = vpop.f32.mrf.mxu3 }
 0x499   : > { %v1468_v59 = vmax.f32 %v1379_v61, 0.0  ;;  %v1667_v60 = vadd.f32 %v3586_v33, %v1666_v53  ;;  %v2156_v62 = vpack.c.bf16 %v2098_v24, %v2097_v55 }
 0x49b   : > { %v1508_v0 = vpack.c.bf16 %v1468_v59, %v1467_v57  ;;  %v1783_v3 = vmax.f32 %v1667_v60, 0.0  ;;  %2284 = vmatmul.bf16.gmra.mxu1 %v2156_v62 }
 0x49c   : > { %v1957_v4 = vpop.f32.mrf.mxu0 }
 0x49d   : > { %1708 = vmatmul.bf16.gmra.mxu3 %v1508_v0  ;;  %v1832_v35 = vpack.c.bf16 %v1783_v3, %v1782_v2  ;;  %v1958_v58 = vadd.f32 %v3645_v37, %v1957_v4 }
 0x49e   : > { %v1381_v6 = vpop.f32.mrf.mxu2 }
 0x49f   : > { %1996 = vmatmul.bf16.gmra.mxu0 %v1832_v35  ;;  %v1382_v10 = vadd.f32 %v3523_v1, %v1381_v6  ;;  %v2099_v15 = vmax.f32 %v1958_v58, 0.0  ;;  %v3709_v58 = vld [vmem:[%s3924_s12] ss:$0 sm:$0xff] }
 0x4a0   : > { %v1669_v8 = vpop.f32.mrf.mxu3 }
 0x4a1   : > { %v1670_v23 = vadd.f32 %v3586_v33, %v1669_v8  ;;  %v1469_v18 = vmax.f32 %v1382_v10, 0.0 }
 0x4a3   : > { %v1784_v21 = vmax.f32 %v1670_v23, 0.0 }
 0x4a4   : > { %v1959_v9 = vpop.f32.mrf.mxu0 }
 0x4a5   : > { %v1960_v11 = vadd.f32 %v3645_v37, %v1959_v9 }
 0x4a6   : > { %v1383_v12 = vpop.f32.mrf.mxu2 }
 0x4a7   : > { %v2100_v17 = vmax.f32 %v1960_v11, 0.0  ;;  %v1384_v16 = vadd.f32 %v3523_v1, %v1383_v12 }
 0x4a8   : > { %v1671_v63 = vpop.f32.mrf.mxu3 }
 0x4a9   : > { %v1470_v19 = vmax.f32 %v1384_v16, 0.0  ;;  %v1672_v5 = vadd.f32 %v3586_v33, %v1671_v63  ;;  %v2157_v20 = vpack.c.bf16 %v2100_v17, %v2099_v15  ;;  %v3723_v63 = vld [vmem:[%s3918_s6] ss:$0 sm:$0xff] }
 0x4ab   : > { %v1509_v14 = vpack.c.bf16 %v1470_v19, %v1469_v18  ;;  %v1785_v22 = vmax.f32 %v1672_v5, 0.0  ;;  %2289 = vmatmul.bf16.gmra.mxu1 %v2157_v20 }
 0x4ac   : > { %v1962_v25 = vpop.f32.mrf.mxu0 }
 0x4ad   : > { %1713 = vmatmul.bf16.gmra.mxu3 %v1509_v14  ;;  %v1833_v27 = vpack.c.bf16 %v1785_v22, %v1784_v21  ;;  %v1963_v31 = vadd.f32 %v3645_v37, %v1962_v25 }
 0x4ae   : > { %v1386_v30 = vpop.f32.mrf.mxu2 }
 0x4af   : > { %2001 = vmatmul.bf16.gmra.mxu0 %v1833_v27  ;;  %v1387_v38 = vadd.f32 %v3523_v1, %v1386_v30  ;;  %v2101_v36 = vmax.f32 %v1963_v31, 0.0 }
 0x4b0   : > { %v1674_v26 = vpop.f32.mrf.mxu3 }
 0x4b1   : > { %v1675_v43 = vadd.f32 %v3586_v33, %v1674_v26  ;;  %v1471_v29 = vmax.f32 %v1387_v38, 0.0 }
 0x4b3   : > { %v1786_v45 = vmax.f32 %v1675_v43, 0.0 }
 0x4b4   : > { %v1964_v54 = vpop.f32.mrf.mxu0 }
 0x4b5   : > { %v1965_v32 = vadd.f32 %v3645_v37, %v1964_v54 }
 0x4b6   : > { %v1388_v34 = vpop.f32.mrf.mxu2 }
 0x4b7   : > { %v2102_v28 = vmax.f32 %v1965_v32, 0.0  ;;  %v1389_v39 = vadd.f32 %v3523_v1, %v1388_v34 }
 0x4b8   : > { %v1676_v52 = vpop.f32.mrf.mxu3 }
 0x4b9   : > { %v1472_v13 = vmax.f32 %v1389_v39, 0.0  ;;  %v1677_v40 = vadd.f32 %v3586_v33, %v1676_v52  ;;  %v2158_v41 = vpack.c.bf16 %v2102_v28, %v2101_v36 }
 0x4bb   : > { %v1510_v46 = vpack.c.bf16 %v1472_v13, %v1471_v29  ;;  %v1787_v47 = vmax.f32 %v1677_v40, 0.0  ;;  %2294 = vmatmul.bf16.gmra.mxu1 %v2158_v41 }
 0x4bc   : > { %v1967_v42 = vpop.f32.mrf.mxu0 }
 0x4bd   : > { %1718 = vmatmul.bf16.gmra.mxu3 %v1510_v46  ;;  %v1834_v48 = vpack.c.bf16 %v1787_v47, %v1786_v45  ;;  %v1968_v50 = vadd.f32 %v3645_v37, %v1967_v42 }
 0x4be   : > { %v1391_v44 = vpop.f32.mrf.mxu2 }
 0x4bf   : > { %2006 = vmatmul.bf16.gmra.mxu0 %v1834_v48  ;;  %v1392_v7 = vadd.f32 %v3523_v1, %v1391_v44  ;;  %v2103_v24 = vmax.f32 %v1968_v50, 0.0 }
 0x4c0   : > { %v1679_v49 = vpop.f32.mrf.mxu3 }
 0x4c1   : > { %v1680_v61 = vadd.f32 %v3586_v33, %v1679_v49  ;;  %v1473_v62 = vmax.f32 %v1392_v7, 0.0 }
 0x4c3   : > { %v1788_v4 = vmax.f32 %v1680_v61, 0.0 }
 0x4c4   : > { %v1969_v51 = vpop.f32.mrf.mxu0 }
 0x4c5   : > { %v1970_v55 = vadd.f32 %v3645_v37, %v1969_v51 }
 0x4c6   : > { %v1393_v56 = vpop.f32.mrf.mxu2 }
 0x4c7   : > { %v2104_v53 = vmax.f32 %v1970_v55, 0.0  ;;  %v1394_v57 = vadd.f32 %v3523_v1, %v1393_v56 }
 0x4c8   : > { %v1681_v59 = vpop.f32.mrf.mxu3  ;;  %v2260_v60 = vpop.f32.mrf.mxu1 }
 0x4c9   : > { %v1474_v2 = vmax.f32 %v1394_v57, 0.0  ;;  %v1682_v0 = vadd.f32 %v3586_v33, %v1681_v59  ;;  %v2159_v3 = vpack.c.bf16 %v2104_v53, %v2103_v24  ;;  %v2261_v12 = vadd.f32 %v3709_v58, %v2260_v60 }
 0x4cb   : > { %v1511_v35 = vpack.c.bf16 %v1474_v2, %v1473_v62  ;;  %v1789_v6 = vmax.f32 %v1682_v0, 0.0  ;;  %2299 = vmatmul.bf16.gmra.mxu1 %v2159_v3 }
 0x4cc   : > { %v1972_v8 = vpop.f32.mrf.mxu0 }
 0x4cd   : > { %1723 = vmatmul.bf16.gmra.mxu3 %v1511_v35  ;;  %v1835_v1 = vpack.c.bf16 %v1789_v6, %v1788_v4  ;;  %v1973_v23 = vadd.f32 %v3645_v37, %v1972_v8 }
 0x4ce   : > { %v1396_v9 = vpop.f32.mrf.mxu2 }
 0x4cf   : > { %2011 = vmatmul.bf16.gmra.mxu0 %v1835_v1  ;;  %v1397_v18 = vadd.f32 %v3723_v63, %v1396_v9  ;;  %v2105_v20 = vmax.f32 %v1973_v23, 0.0 }
 0x4d0   : > { %v1684_v10 = vpop.f32.mrf.mxu3  ;;  %v2262_v11 = vpop.f32.mrf.mxu1 }
 0x4d1   : > { %v2263_v15 = vadd.f32 %v3709_v58, %v2262_v11  ;;  %v1685_v21 = vadd.f32 %v3586_v33, %v1684_v10  ;;  %v1475_v30 = vmax.f32 %v1397_v18, 0.0 }
 0x4d3   : > { %v2855_v17 = vpack.c.bf16 %v2263_v15, %v2261_v12  ;;  %v1790_v38 = vmax.f32 %v1685_v21, 0.0 }
 0x4d4   : > { %v1974_v16 = vpop.f32.mrf.mxu0 }
 0x4d5   : > { %2856 = vst [vmem:[%s3717_s26] sm:$0xff] %v2855_v17   ;;  %v1975_v19 = vadd.f32 %v3645_v37, %v1974_v16 }
 0x4d6   : > { %v1398_v5 = vpop.f32.mrf.mxu2 }
 0x4d7   : > { %v2106_v14 = vmax.f32 %v1975_v19, 0.0  ;;  %v1399_v22 = vadd.f32 %v3723_v63, %v1398_v5 }
 0x4d8   : > { %v1686_v25 = vpop.f32.mrf.mxu3  ;;  %v2265_v27 = vpop.f32.mrf.mxu1 }
 0x4d9   : > { %v1476_v26 = vmax.f32 %v1399_v22, 0.0  ;;  %v1687_v31 = vadd.f32 %v3586_v33, %v1686_v25  ;;  %v2160_v54 = vpack.c.bf16 %v2106_v14, %v2105_v20  ;;  %v2266_v29 = vadd.f32 %v3709_v58, %v2265_v27 }
 0x4db   : > { %v1512_v32 = vpack.c.bf16 %v1476_v26, %v1475_v30  ;;  %v1791_v34 = vmax.f32 %v1687_v31, 0.0  ;;  %2304 = vmatmul.bf16.gmra.mxu1 %v2160_v54 }
 0x4dc   : > { %v1977_v36 = vpop.f32.mrf.mxu0 }
 0x4dd   : > { %1728 = vmatmul.bf16.gmra.mxu3 %v1512_v32  ;;  %v1836_v43 = vpack.c.bf16 %v1791_v34, %v1790_v38  ;;  %v1978_v40 = vadd.f32 %v3645_v37, %v1977_v36 }
 0x4de   : > { %v1401_v28 = vpop.f32.mrf.mxu2 }
 0x4df   : > { %2016 = vmatmul.bf16.gmra.mxu0 %v1836_v43  ;;  %v1402_v46 = vadd.f32 %v3723_v63, %v1401_v28  ;;  %v2107_v48 = vmax.f32 %v1978_v40, 0.0 }
 0x4e0   : > { %v1689_v39 = vpop.f32.mrf.mxu3  ;;  %v2267_v52 = vpop.f32.mrf.mxu1 }
 0x4e1   : > { %v2268_v13 = vadd.f32 %v3709_v58, %v2267_v52  ;;  %v1690_v44 = vadd.f32 %v3586_v33, %v1689_v39  ;;  %v1477_v55 = vmax.f32 %v1402_v46, 0.0 }
 0x4e3   : > { %v2860_v41 = vpack.c.bf16 %v2268_v13, %v2266_v29  ;;  %v1792_v53 = vmax.f32 %v1690_v44, 0.0 }
 0x4e4   : > { %v1979_v45 = vpop.f32.mrf.mxu0 }
 0x4e5   : > { %3012 = vst [vmem:[%s3717_s26 + $0x8] sm:$0xff] %v2860_v41   ;;  %v1980_v47 = vadd.f32 %v3645_v37, %v1979_v45 }
 0x4e6   : > { %v1403_v42 = vpop.f32.mrf.mxu2 }
 0x4e7   : > { %v2108_v49 = vmax.f32 %v1980_v47, 0.0  ;;  %v1404_v50 = vadd.f32 %v3723_v63, %v1403_v42 }
 0x4e8   : > { %v1691_v51 = vpop.f32.mrf.mxu3  ;;  %v2270_v7 = vpop.f32.mrf.mxu1 }
 0x4e9   : > { %v1478_v56 = vmax.f32 %v1404_v50, 0.0  ;;  %v1692_v24 = vadd.f32 %v3586_v33, %v1691_v51  ;;  %v2161_v61 = vpack.c.bf16 %v2108_v49, %v2107_v48  ;;  %v2271_v4 = vadd.f32 %v3709_v58, %v2270_v7 }
 0x4eb   : > { %v1513_v57 = vpack.c.bf16 %v1478_v56, %v1477_v55  ;;  %v1793_v59 = vmax.f32 %v1692_v24, 0.0  ;;  %2309 = vmatmul.bf16.gmra.mxu1 %v2161_v61 }
 0x4ec   : > { %v1982_v60 = vpop.f32.mrf.mxu0 }
 0x4ed   : > { %1733 = vmatmul.bf16.gmra.mxu3 %v1513_v57  ;;  %v1837_v62 = vpack.c.bf16 %v1793_v59, %v1792_v53  ;;  %v1983_v6 = vadd.f32 %v3645_v37, %v1982_v60 }
 0x4ee   : > { %v1406_v2 = vpop.f32.mrf.mxu2 }
 0x4ef   : > { %2021 = vmatmul.bf16.gmra.mxu0 %v1837_v62  ;;  %v1407_v9 = vadd.f32 %v3723_v63, %v1406_v2  ;;  %v2109_v12 = vmax.f32 %v1983_v6, 0.0 }
 0x4f0   : > { %v1694_v0 = vpop.f32.mrf.mxu3  ;;  %v2272_v3 = vpop.f32.mrf.mxu1 }
 0x4f1   : > { %v2273_v35 = vadd.f32 %v3709_v58, %v2272_v3  ;;  %v1695_v15 = vadd.f32 %v3586_v33, %v1694_v0  ;;  %v1479_v19 = vmax.f32 %v1407_v9, 0.0 }
 0x4f3   : > { %v2865_v8 = vpack.c.bf16 %v2273_v35, %v2271_v4  ;;  %v1794_v14 = vmax.f32 %v1695_v15, 0.0  ;;  %v3767_v4 = vld [vmem:[%s3920_s8] ss:$0 sm:$0xff] }
 0x4f4   : > { %v1984_v1 = vpop.f32.mrf.mxu0 }
 0x4f5   : > { %3013 = vst [vmem:[%s3717_s26 + $0x10] sm:$0xff] %v2865_v8   ;;  %v1985_v10 = vadd.f32 %v3645_v37, %v1984_v1 }
 0x4f6   : > { %v1408_v11 = vpop.f32.mrf.mxu2 }
 0x4f7   : > { %v2110_v23 = vmax.f32 %v1985_v10, 0.0  ;;  %v1409_v17 = vadd.f32 %v3723_v63, %v1408_v11 }
 0x4f8   : > { %v1696_v16 = vpop.f32.mrf.mxu3  ;;  %v2275_v18 = vpop.f32.mrf.mxu1 }
 0x4f9   : > { %v1480_v5 = vmax.f32 %v1409_v17, 0.0  ;;  %v1697_v20 = vadd.f32 %v3586_v33, %v1696_v16  ;;  %v2162_v21 = vpack.c.bf16 %v2110_v23, %v2109_v12  ;;  %v2276_v38 = vadd.f32 %v3709_v58, %v2275_v18 }
 0x4fb   : > { %v1514_v22 = vpack.c.bf16 %v1480_v5, %v1479_v19  ;;  %v1795_v25 = vmax.f32 %v1697_v20, 0.0  ;;  %2314 = vmatmul.bf16.gmra.mxu1 %v2162_v21 }
 0x4fc   : > { %v1987_v27 = vpop.f32.mrf.mxu0 }
 0x4fd   : > { %v1838_v30 = vpack.c.bf16 %v1795_v25, %v1794_v14  ;;  %1738 = vmatmul.bf16.gmra.mxu3 %v1514_v22  ;;  %v1988_v34 = vadd.f32 %v3645_v37, %v1987_v27 }
 0x4fe   : > { %v1411_v26 = vpop.f32.mrf.mxu2 }
 0x4ff   : > { %2026 = vmatmul.bf16.gmra.mxu0 %v1838_v30  ;;  %v1412_v28 = vadd.f32 %v3723_v63, %v1411_v26  ;;  %v2111_v29 = vmax.f32 %v1988_v34, 0.0 }
 0x500   : > { %v1699_v31 = vpop.f32.mrf.mxu3  ;;  %v2277_v54 = vpop.f32.mrf.mxu1 }
 0x501   : > { %v2278_v32 = vadd.f32 %v3709_v58, %v2277_v54  ;;  %v1700_v13 = vadd.f32 %v3586_v33, %v1699_v31  ;;  %v1481_v47 = vmax.f32 %v1412_v28, 0.0 }
 0x503   : > { %v2870_v36 = vpack.c.bf16 %v2278_v32, %v2276_v38  ;;  %v1796_v49 = vmax.f32 %v1700_v13, 0.0 }
 0x504   : > { %v1989_v43 = vpop.f32.mrf.mxu0 }
 0x505   : > { %3014 = vst [vmem:[%s3717_s26 + $0x18] sm:$0xff] %v2870_v36   ;;  %v1990_v39 = vadd.f32 %v3645_v37, %v1989_v43 }
 0x506   : > { %v1413_v52 = vpop.f32.mrf.mxu2 }
 0x507   : > { %v2112_v40 = vmax.f32 %v1990_v39, 0.0  ;;  %v1414_v41 = vadd.f32 %v3723_v63, %v1413_v52 }
 0x508   : > { %v1701_v45 = vpop.f32.mrf.mxu3  ;;  %v2280_v46 = vpop.f32.mrf.mxu1 }
 0x509   : > { %v1482_v42 = vmax.f32 %v1414_v41, 0.0  ;;  %v1702_v48 = vadd.f32 %v3586_v33, %v1701_v45  ;;  %v2163_v44 = vpack.c.bf16 %v2112_v40, %v2111_v29  ;;  %v2281_v53 = vadd.f32 %v3709_v58, %v2280_v46 }
 0x50b   : > { %v1515_v50 = vpack.c.bf16 %v1482_v42, %v1481_v47  ;;  %v1797_v51 = vmax.f32 %v1702_v48, 0.0  ;;  %2319 = vmatmul.bf16.gmra.mxu1 %v2163_v44 }
 0x50c   : > { %v1992_v7 = vpop.f32.mrf.mxu0 }
 0x50d   : > { %v1839_v55 = vpack.c.bf16 %v1797_v51, %v1796_v49  ;;  %1743 = vmatmul.bf16.gmra.mxu3 %v1515_v50  ;;  %v1993_v59 = vadd.f32 %v3645_v37, %v1992_v7 }
 0x50e   : > { %v1416_v56 = vpop.f32.mrf.mxu2 }
 0x50f   : > { %2031 = vmatmul.bf16.gmra.mxu0 %v1839_v55  ;;  %v1417_v62 = vadd.f32 %v3723_v63, %v1416_v56  ;;  %v2113_v3 = vmax.f32 %v1993_v59, 0.0 }
 0x510   : > { %v1704_v24 = vpop.f32.mrf.mxu3  ;;  %v2282_v61 = vpop.f32.mrf.mxu1 }
 0x511   : > { %v2283_v57 = vadd.f32 %v3709_v58, %v2282_v61  ;;  %v1705_v35 = vadd.f32 %v3767_v4, %v1704_v24  ;;  %v1483_v10 = vmax.f32 %v1417_v62, 0.0 }
 0x513   : > { %v2875_v33 = vpack.c.bf16 %v2283_v57, %v2281_v53  ;;  %v1798_v23 = vmax.f32 %v1705_v35, 0.0 }
 0x514   : > { %v1994_v60 = vpop.f32.mrf.mxu0 }
 0x515   : > { %3015 = vst [vmem:[%s3717_s26 + $0x20] sm:$0xff] %v2875_v33   ;;  %v1995_v2 = vadd.f32 %v3645_v37, %v1994_v60 }
 0x516   : > { %v1418_v0 = vpop.f32.mrf.mxu2 }
 0x517   : > { %v2114_v6 = vmax.f32 %v1995_v2, 0.0  ;;  %v1419_v8 = vadd.f32 %v3723_v63, %v1418_v0 }
 0x518   : > { %v1706_v1 = vpop.f32.mrf.mxu3  ;;  %v2285_v9 = vpop.f32.mrf.mxu1 }
 0x519   : > { %v1484_v11 = vmax.f32 %v1419_v8, 0.0  ;;  %v1707_v12 = vadd.f32 %v3767_v4, %v1706_v1  ;;  %v2164_v15 = vpack.c.bf16 %v2114_v6, %v2113_v3  ;;  %v2286_v63 = vadd.f32 %v3709_v58, %v2285_v9 }
 0x51b   : > { %v1516_v17 = vpack.c.bf16 %v1484_v11, %v1483_v10  ;;  %v1799_v16 = vmax.f32 %v1707_v12, 0.0  ;;  %2324 = vmatmul.bf16.gmra.mxu1 %v2164_v15 }
 0x51c   : > { %v1997_v18 = vpop.f32.mrf.mxu0 }
 0x51d   : > { %v1840_v19 = vpack.c.bf16 %v1799_v16, %v1798_v23  ;;  %1748 = vmatmul.bf16.gmra.mxu3 %v1516_v17  ;;  %v1998_v14 = vadd.f32 %v3645_v37, %v1997_v18 }
 0x51f   : > { %2036 = vmatmul.bf16.gmra.mxu0 %v1840_v19  ;;  %v2115_v30 = vmax.f32 %v1998_v14, 0.0 }
 0x520   : > { %v1709_v5 = vpop.f32.mrf.mxu3  ;;  %v2287_v20 = vpop.f32.mrf.mxu1 }
 0x521   : > { %v2288_v21 = vadd.f32 %v3709_v58, %v2287_v20  ;;  %v1710_v26 = vadd.f32 %v3767_v4, %v1709_v5 }
 0x523   : > { %v2880_v22 = vpack.c.bf16 %v2288_v21, %v2286_v63  ;;  %v1800_v36 = vmax.f32 %v1710_v26, 0.0 }
 0x524   : > { %v1999_v25 = vpop.f32.mrf.mxu0 }
 0x525   : > { %3016 = vst [vmem:[%s3717_s26 + $0x28] sm:$0xff] %v2880_v22   ;;  %v2000_v27 = vadd.f32 %v3645_v37, %v1999_v25 }
 0x527   : > { %v2116_v31 = vmax.f32 %v2000_v27, 0.0 }
 0x528   : > { %v1711_v54 = vpop.f32.mrf.mxu3  ;;  %v2290_v38 = vpop.f32.mrf.mxu1 }
 0x529   : > { %v1712_v32 = vadd.f32 %v3767_v4, %v1711_v54  ;;  %v2165_v34 = vpack.c.bf16 %v2116_v31, %v2115_v30  ;;  %v2291_v13 = vadd.f32 %v3709_v58, %v2290_v38 }
 0x52b   : > { %v1801_v43 = vmax.f32 %v1712_v32, 0.0  ;;  %2329 = vmatmul.bf16.gmra.mxu1 %v2165_v34 }
 0x52c   : > { %v2002_v28 = vpop.f32.mrf.mxu0 }
 0x52d   : > { %v1841_v39 = vpack.c.bf16 %v1801_v43, %v1800_v36  ;;  %v2003_v41 = vadd.f32 %v3645_v37, %v2002_v28 }
 0x52f   : > { %2041 = vmatmul.bf16.gmra.mxu0 %v1841_v39  ;;  %v2117_v42 = vmax.f32 %v2003_v41, 0.0 }
 0x530   : > { %v1714_v52 = vpop.f32.mrf.mxu3  ;;  %v2292_v29 = vpop.f32.mrf.mxu1 }
 0x531   : > { %v2293_v40 = vadd.f32 %v3709_v58, %v2292_v29  ;;  %v1715_v48 = vadd.f32 %v3767_v4, %v1714_v52 }
 0x533   : > { %v2885_v45 = vpack.c.bf16 %v2293_v40, %v2291_v13  ;;  %v1802_v55 = vmax.f32 %v1715_v48, 0.0 }
 0x534   : > { %v2004_v46 = vpop.f32.mrf.mxu0 }
 0x535   : > { %3017 = vst [vmem:[%s3717_s26 + $0x30] sm:$0xff] %v2885_v45   ;;  %v2005_v47 = vadd.f32 %v3645_v37, %v2004_v46 }
 0x537   : > { %v2118_v44 = vmax.f32 %v2005_v47, 0.0 }
 0x538   : > { %v1716_v49 = vpop.f32.mrf.mxu3  ;;  %v2295_v50 = vpop.f32.mrf.mxu1 }
 0x539   : > { %v1717_v51 = vadd.f32 %v3767_v4, %v1716_v49  ;;  %v2166_v7 = vpack.c.bf16 %v2118_v44, %v2117_v42  ;;  %v2296_v59 = vadd.f32 %v3709_v58, %v2295_v50 }
 0x53b   : > { %v1803_v56 = vmax.f32 %v1717_v51, 0.0  ;;  %2334 = vmatmul.bf16.gmra.mxu1 %v2166_v7 }
 0x53c   : > { %v2007_v24 = vpop.f32.mrf.mxu0 }
 0x53d   : > { %v1842_v61 = vpack.c.bf16 %v1803_v56, %v1802_v55  ;;  %v2008_v60 = vadd.f32 %v3645_v37, %v2007_v24 }
 0x53f   : > { %2046 = vmatmul.bf16.gmra.mxu0 %v1842_v61  ;;  %v2119_v3 = vmax.f32 %v2008_v60, 0.0 }
 0x540   : > { %v1719_v53 = vpop.f32.mrf.mxu3  ;;  %v2297_v57 = vpop.f32.mrf.mxu1 }
 0x541   : > { %v2298_v33 = vadd.f32 %v3709_v58, %v2297_v57  ;;  %v1720_v35 = vadd.f32 %v3767_v4, %v1719_v53 }
 0x543   : > { %v2890_v62 = vpack.c.bf16 %v2298_v33, %v2296_v59  ;;  %v1804_v11 = vmax.f32 %v1720_v35, 0.0 }
 0x544   : > { %v2009_v2 = vpop.f32.mrf.mxu0 }
 0x545   : > { %3018 = vst [vmem:[%s3717_s26 + $0x38] sm:$0xff] %v2890_v62   ;;  %v2010_v0 = vadd.f32 %v3645_v37, %v2009_v2 }
 0x547   : > { %v2120_v6 = vmax.f32 %v2010_v0, 0.0 }
 0x548   : > { %v1721_v8 = vpop.f32.mrf.mxu3  ;;  %v2300_v1 = vpop.f32.mrf.mxu1 }
 0x549   : > { %v1722_v9 = vadd.f32 %v3767_v4, %v1721_v8  ;;  %v2167_v10 = vpack.c.bf16 %v2120_v6, %v2119_v3  ;;  %v2301_v18 = vadd.f32 %v3709_v58, %v2300_v1 }
 0x54b   : > { %v1805_v12 = vmax.f32 %v1722_v9, 0.0  ;;  %2339 = vmatmul.bf16.gmra.mxu1 %v2167_v10 }
 0x54c   : > { %v2012_v15 = vpop.f32.mrf.mxu0 }
 0x54d   : > { %v1843_v23 = vpack.c.bf16 %v1805_v12, %v1804_v11  ;;  %v2013_v5 = vadd.f32 %v3645_v37, %v2012_v15 }
 0x54f   : > { %2051 = vmatmul.bf16.gmra.mxu0 %v1843_v23  ;;  %v2121_v14 = vmax.f32 %v2013_v5, 0.0  ;;  %v3819_v23 = vld [vmem:[%s3922_s10] ss:$0 sm:$0xff] }
 0x550   : > { %v1724_v17 = vpop.f32.mrf.mxu3  ;;  %v2302_v16 = vpop.f32.mrf.mxu1 }
 0x551   : > { %v2303_v19 = vadd.f32 %v3709_v58, %v2302_v16  ;;  %v1725_v22 = vadd.f32 %v3767_v4, %v1724_v17 }
 0x553   : > { %v2895_v20 = vpack.c.bf16 %v2303_v19, %v2301_v18  ;;  %v1806_v54 = vmax.f32 %v1725_v22, 0.0 }
 0x554   : > { %v2014_v63 = vpop.f32.mrf.mxu0 }
 0x555   : > { %3019 = vst [vmem:[%s3717_s26 + $0x40] sm:$0xff] %v2895_v20   ;;  %v2015_v21 = vadd.f32 %v3645_v37, %v2014_v63 }
 0x557   : > { %v2122_v25 = vmax.f32 %v2015_v21, 0.0 }
 0x558   : > { %v1726_v27 = vpop.f32.mrf.mxu3  ;;  %v2305_v30 = vpop.f32.mrf.mxu1 }
 0x559   : > { %v1727_v26 = vadd.f32 %v3767_v4, %v1726_v27  ;;  %v2168_v31 = vpack.c.bf16 %v2122_v25, %v2121_v14  ;;  %v2306_v28 = vadd.f32 %v3709_v58, %v2305_v30 }
 0x55b   : > { %v1807_v38 = vmax.f32 %v1727_v26, 0.0  ;;  %2344 = vmatmul.bf16.gmra.mxu1 %v2168_v31 }
 0x55c   : > { %v2017_v32 = vpop.f32.mrf.mxu0 }
 0x55d   : > { %v1844_v34 = vpack.c.bf16 %v1807_v38, %v1806_v54  ;;  %v2018_v52 = vadd.f32 %v3645_v37, %v2017_v32 }
 0x55f   : > { %2056 = vmatmul.bf16.gmra.mxu0 %v1844_v34  ;;  %v2123_v41 = vmax.f32 %v2018_v52, 0.0 }
 0x560   : > { %v1729_v36 = vpop.f32.mrf.mxu3  ;;  %v2307_v43 = vpop.f32.mrf.mxu1 }
 0x561   : > { %v2308_v39 = vadd.f32 %v3709_v58, %v2307_v43  ;;  %v1730_v45 = vadd.f32 %v3767_v4, %v1729_v36 }
 0x563   : > { %v2900_v29 = vpack.c.bf16 %v2308_v39, %v2306_v28  ;;  %v1808_v49 = vmax.f32 %v1730_v45, 0.0 }
 0x564   : > { %v2019_v13 = vpop.f32.mrf.mxu0 }
 0x565   : > { %3020 = vst [vmem:[%s3717_s26 + $0x48] sm:$0xff] %v2900_v29   ;;  %v2020_v40 = vadd.f32 %v3645_v37, %v2019_v13 }
 0x567   : > { %v2124_v46 = vmax.f32 %v2020_v40, 0.0 }
 0x568   : > { %v1731_v47 = vpop.f32.mrf.mxu3  ;;  %v2310_v42 = vpop.f32.mrf.mxu1 }
 0x569   : > { %v1732_v48 = vadd.f32 %v3767_v4, %v1731_v47  ;;  %v2169_v44 = vpack.c.bf16 %v2124_v46, %v2123_v41  ;;  %v2311_v24 = vadd.f32 %v3709_v58, %v2310_v42 }
 0x56b   : > { %v1809_v50 = vmax.f32 %v1732_v48, 0.0  ;;  %2349 = vmatmul.bf16.gmra.mxu1 %v2169_v44 }
 0x56c   : > { %v2022_v51 = vpop.f32.mrf.mxu0 }
 0x56d   : > { %v1845_v7 = vpack.c.bf16 %v1809_v50, %v1808_v49  ;;  %v2023_v53 = vadd.f32 %v3645_v37, %v2022_v51 }
 0x56f   : > { %2061 = vmatmul.bf16.gmra.mxu0 %v1845_v7  ;;  %v2125_v60 = vmax.f32 %v2023_v53, 0.0 }
 0x570   : > { %v1734_v55 = vpop.f32.mrf.mxu3  ;;  %v2312_v56 = vpop.f32.mrf.mxu1 }
 0x571   : > { %v2313_v61 = vadd.f32 %v3709_v58, %v2312_v56  ;;  %v1735_v62 = vadd.f32 %v3767_v4, %v1734_v55 }
 0x573   : > { %v2905_v57 = vpack.c.bf16 %v2313_v61, %v2311_v24  ;;  %v1810_v8 = vmax.f32 %v1735_v62, 0.0 }
 0x574   : > { %v2024_v59 = vpop.f32.mrf.mxu0 }
 0x575   : > { %3021 = vst [vmem:[%s3717_s26 + $0x50] sm:$0xff] %v2905_v57   ;;  %v2025_v33 = vadd.f32 %v3645_v37, %v2024_v59 }
 0x577   : > { %v2126_v2 = vmax.f32 %v2025_v33, 0.0 }
 0x578   : > { %v1736_v0 = vpop.f32.mrf.mxu3  ;;  %v2315_v3 = vpop.f32.mrf.mxu1 }
 0x579   : > { %v1737_v35 = vadd.f32 %v3767_v4, %v1736_v0  ;;  %v2170_v6 = vpack.c.bf16 %v2126_v2, %v2125_v60  ;;  %v2316_v37 = vadd.f32 %v3709_v58, %v2315_v3 }
 0x57b   : > { %v1811_v1 = vmax.f32 %v1737_v35, 0.0  ;;  %2354 = vmatmul.bf16.gmra.mxu1 %v2170_v6 }
 0x57c   : > { %v2027_v9 = vpop.f32.mrf.mxu0 }
 0x57d   : > { %v1846_v10 = vpack.c.bf16 %v1811_v1, %v1810_v8  ;;  %v2028_v17 = vadd.f32 %v3819_v23, %v2027_v9 }
 0x57f   : > { %2066 = vmatmul.bf16.gmra.mxu0 %v1846_v10  ;;  %v2127_v5 = vmax.f32 %v2028_v17, 0.0 }
 0x580   : > { %v1739_v11 = vpop.f32.mrf.mxu3  ;;  %v2317_v12 = vpop.f32.mrf.mxu1 }
 0x581   : > { %v2318_v15 = vadd.f32 %v3709_v58, %v2317_v12  ;;  %v1740_v20 = vadd.f32 %v3767_v4, %v1739_v11 }
 0x583   : > { %v2910_v16 = vpack.c.bf16 %v2318_v15, %v2316_v37  ;;  %v1812_v27 = vmax.f32 %v1740_v20, 0.0 }
 0x584   : > { %v2029_v18 = vpop.f32.mrf.mxu0 }
 0x585   : > { %3022 = vst [vmem:[%s3717_s26 + $0x58] sm:$0xff] %v2910_v16   ;;  %v2030_v19 = vadd.f32 %v3819_v23, %v2029_v18 }
 0x587   : > { %v2128_v63 = vmax.f32 %v2030_v19, 0.0 }
 0x588   : > { %v1741_v21 = vpop.f32.mrf.mxu3  ;;  %v2320_v14 = vpop.f32.mrf.mxu1 }
 0x589   : > { %v2171_v22 = vpack.c.bf16 %v2128_v63, %v2127_v5  ;;  %v1742_v25 = vadd.f32 %v3767_v4, %v1741_v21  ;;  %v2321_v32 = vadd.f32 %v3709_v58, %v2320_v14 }
 0x58b   : > { %v1813_v30 = vmax.f32 %v1742_v25, 0.0  ;;  %2359 = vmatmul.bf16.gmra.mxu1 %v2171_v22 }
 0x58c   : > { %v2032_v26 = vpop.f32.mrf.mxu0 }
 0x58d   : > { %v1847_v31 = vpack.c.bf16 %v1813_v30, %v1812_v27  ;;  %v2033_v36 = vadd.f32 %v3819_v23, %v2032_v26 }
 0x58f   : > { %2071 = vmatmul.bf16.gmra.mxu0 %v1847_v31  ;;  %v2129_v52 = vmax.f32 %v2033_v36, 0.0 }
 0x590   : > { %v1744_v54 = vpop.f32.mrf.mxu3  ;;  %v2322_v38 = vpop.f32.mrf.mxu1 }
 0x591   : > { %v2323_v34 = vadd.f32 %v3709_v58, %v2322_v38  ;;  %v1745_v29 = vadd.f32 %v3767_v4, %v1744_v54 }
 0x593   : > { %v2915_v43 = vpack.c.bf16 %v2323_v34, %v2321_v32  ;;  %v1814_v47 = vmax.f32 %v1745_v29, 0.0 }
 0x594   : > { %v2034_v28 = vpop.f32.mrf.mxu0 }
 0x595   : > { %3023 = vst [vmem:[%s3717_s26 + $0x60] sm:$0xff] %v2915_v43   ;;  %v2035_v39 = vadd.f32 %v3819_v23, %v2034_v28 }
 0x597   : > { %v2130_v13 = vmax.f32 %v2035_v39, 0.0 }
 0x598   : > { %v1746_v40 = vpop.f32.mrf.mxu3  ;;  %v2325_v41 = vpop.f32.mrf.mxu1 }
 0x599   : > { %v2172_v45 = vpack.c.bf16 %v2130_v13, %v2129_v52  ;;  %v1747_v46 = vadd.f32 %v3767_v4, %v1746_v40  ;;  %v2326_v51 = vadd.f32 %v3709_v58, %v2325_v41 }
 0x59b   : > { %v1815_v42 = vmax.f32 %v1747_v46, 0.0  ;;  %2364 = vmatmul.bf16.gmra.mxu1 %v2172_v45 }
 0x59c   : > { %v2037_v48 = vpop.f32.mrf.mxu0 }
 0x59d   : > { %v1848_v44 = vpack.c.bf16 %v1815_v42, %v1814_v47  ;;  %v2038_v55 = vadd.f32 %v3819_v23, %v2037_v48 }
 0x59f   : > { %2076 = vmatmul.bf16.gmra.mxu0 %v1848_v44  ;;  %v2131_v53 = vmax.f32 %v2038_v55, 0.0 }
 0x5a0   : > { %v1749_v49 = vpop.f32.mrf.mxu3  ;;  %v2327_v50 = vpop.f32.mrf.mxu1 }
 0x5a1   : > { %v2328_v7 = vadd.f32 %v3709_v58, %v2327_v50  ;;  %v1750_v57 = vadd.f32 %v3767_v4, %v1749_v49 }
 0x5a3   : > { %v2920_v56 = vpack.c.bf16 %v2328_v7, %v2326_v51  ;;  %v1816_v0 = vmax.f32 %v1750_v57, 0.0 }
 0x5a4   : > { %v2039_v24 = vpop.f32.mrf.mxu0 }
 0x5a5   : > { %3024 = vst [vmem:[%s3717_s26 + $0x68] sm:$0xff] %v2920_v56   ;;  %v2040_v61 = vadd.f32 %v3819_v23, %v2039_v24 }
 0x5a7   : > { %v2132_v59 = vmax.f32 %v2040_v61, 0.0 }
 0x5a8   : > { %v1751_v33 = vpop.f32.mrf.mxu3  ;;  %v2330_v60 = vpop.f32.mrf.mxu1 }
 0x5a9   : > { %v2173_v62 = vpack.c.bf16 %v2132_v59, %v2131_v53  ;;  %v1752_v2 = vadd.f32 %v3767_v4, %v1751_v33  ;;  %v2331_v1 = vadd.f32 %v3709_v58, %v2330_v60 }
 0x5ab   : > { %v1817_v3 = vmax.f32 %v1752_v2, 0.0  ;;  %2369 = vmatmul.bf16.gmra.mxu1 %v2173_v62 }
 0x5ac   : > { %v2042_v35 = vpop.f32.mrf.mxu0 }
 0x5ad   : > { %v1849_v6 = vpack.c.bf16 %v1817_v3, %v1816_v0  ;;  %v2043_v10 = vadd.f32 %v3819_v23, %v2042_v35 }
 0x5af   : > { %2081 = vmatmul.bf16.gmra.mxu0 %v1849_v6  ;;  %v2133_v4 = vmax.f32 %v2043_v10, 0.0 }
 0x5b0   : > { %v2332_v8 = vpop.f32.mrf.mxu1 }
 0x5b1   : > { %v2333_v9 = vadd.f32 %v3709_v58, %v2332_v8 }
 0x5b3   : > { %v2925_v11 = vpack.c.bf16 %v2333_v9, %v2331_v1 }
 0x5b4   : > { %v2044_v12 = vpop.f32.mrf.mxu0 }
 0x5b5   : > { %3025 = vst [vmem:[%s3717_s26 + $0x70] sm:$0xff] %v2925_v11   ;;  %v2045_v37 = vadd.f32 %v3819_v23, %v2044_v12 }
 0x5b7   : > { %v2134_v15 = vmax.f32 %v2045_v37, 0.0 }
 0x5b8   : > { %v2335_v17 = vpop.f32.mrf.mxu1 }
 0x5b9   : > { %v2174_v16 = vpack.c.bf16 %v2134_v15, %v2133_v4  ;;  %v2336_v5 = vadd.f32 %v3709_v58, %v2335_v17 }
 0x5bb   : > { %2374 = vmatmul.bf16.gmra.mxu1 %v2174_v16 }
 0x5bc   : > { %v2047_v18 = vpop.f32.mrf.mxu0 }
 0x5bd   : > { %v2048_v63 = vadd.f32 %v3819_v23, %v2047_v18 }
 0x5bf   : > { %v2135_v25 = vmax.f32 %v2048_v63, 0.0 }
 0x5c0   : > { %v2337_v19 = vpop.f32.mrf.mxu1 }
 0x5c1   : > { %v2338_v20 = vadd.f32 %v3709_v58, %v2337_v19 }
 0x5c3   : > { %v2930_v21 = vpack.c.bf16 %v2338_v20, %v2336_v5 }
 0x5c4   : > { %v2049_v14 = vpop.f32.mrf.mxu0 }
 0x5c5   : > { %3026 = vst [vmem:[%s3717_s26 + $0x78] sm:$0xff] %v2930_v21   ;;  %v2050_v22 = vadd.f32 %v3819_v23, %v2049_v14 }
 0x5c7   : > { %v2136_v27 = vmax.f32 %v2050_v22, 0.0 }
 0x5c8   : > { %v2340_v30 = vpop.f32.mrf.mxu1 }
 0x5c9   : > { %v2175_v26 = vpack.c.bf16 %v2136_v27, %v2135_v25  ;;  %v2341_v38 = vadd.f32 %v3709_v58, %v2340_v30 }
 0x5cb   : > { %2379 = vmatmul.bf16.gmra.mxu1 %v2175_v26 }
 0x5cc   : > { %v2052_v31 = vpop.f32.mrf.mxu0 }
 0x5cd   : > { %v2053_v34 = vadd.f32 %v3819_v23, %v2052_v31 }
 0x5cf   : > { %v2137_v39 = vmax.f32 %v2053_v34, 0.0 }
 0x5d0   : > { %v2342_v54 = vpop.f32.mrf.mxu1 }
 0x5d1   : > { %v2343_v32 = vadd.f32 %v3709_v58, %v2342_v54 }
 0x5d3   : > { %v2935_v36 = vpack.c.bf16 %v2343_v32, %v2341_v38 }
 0x5d4   : > { %v2054_v43 = vpop.f32.mrf.mxu0 }
 0x5d5   : > { %3027 = vst [vmem:[%s3717_s26 + $0x80] sm:$0xff] %v2935_v36   ;;  %v2055_v28 = vadd.f32 %v3819_v23, %v2054_v43 }
 0x5d7   : > { %v2138_v52 = vmax.f32 %v2055_v28, 0.0 }
 0x5d8   : > { %v2345_v29 = vpop.f32.mrf.mxu1 }
 0x5d9   : > { %v2176_v13 = vpack.c.bf16 %v2138_v52, %v2137_v39  ;;  %v2346_v45 = vadd.f32 %v3709_v58, %v2345_v29 }
 0x5db   : > { %2384 = vmatmul.bf16.gmra.mxu1 %v2176_v13 }
 0x5dc   : > { %v2057_v40 = vpop.f32.mrf.mxu0 }
 0x5dd   : > { %v2058_v47 = vadd.f32 %v3819_v23, %v2057_v40 }
 0x5df   : > { %v2139_v49 = vmax.f32 %v2058_v47, 0.0 }
 0x5e0   : > { %v2347_v41 = vpop.f32.mrf.mxu1 }
 0x5e1   : > { %v2348_v46 = vadd.f32 %v3709_v58, %v2347_v41 }
 0x5e3   : > { %v2940_v42 = vpack.c.bf16 %v2348_v46, %v2346_v45 }
 0x5e4   : > { %v2059_v48 = vpop.f32.mrf.mxu0 }
 0x5e5   : > { %3028 = vst [vmem:[%s3717_s26 + $0x88] sm:$0xff] %v2940_v42   ;;  %v2060_v44 = vadd.f32 %v3819_v23, %v2059_v48 }
 0x5e7   : > { %v2140_v50 = vmax.f32 %v2060_v44, 0.0 }
 0x5e8   : > { %v2350_v51 = vpop.f32.mrf.mxu1 }
 0x5e9   : > { %v2177_v7 = vpack.c.bf16 %v2140_v50, %v2139_v49  ;;  %v2351_v24 = vadd.f32 %v3709_v58, %v2350_v51 }
 0x5eb   : > { %2389 = vmatmul.bf16.gmra.mxu1 %v2177_v7 }
 0x5ec   : > { %v2062_v55 = vpop.f32.mrf.mxu0 }
 0x5ed   : > { %v2063_v53 = vadd.f32 %v3819_v23, %v2062_v55 }
 0x5ef   : > { %v2141_v60 = vmax.f32 %v2063_v53, 0.0 }
 0x5f0   : > { %v2352_v56 = vpop.f32.mrf.mxu1 }
 0x5f1   : > { %v2353_v61 = vadd.f32 %v3709_v58, %v2352_v56 }
 0x5f3   : > { %v2945_v57 = vpack.c.bf16 %v2353_v61, %v2351_v24 }
 0x5f4   : > { %v2064_v59 = vpop.f32.mrf.mxu0 }
 0x5f5   : > { %3029 = vst [vmem:[%s3717_s26 + $0x90] sm:$0xff] %v2945_v57   ;;  %v2065_v33 = vadd.f32 %v3819_v23, %v2064_v59 }
 0x5f7   : > { %v2142_v62 = vmax.f32 %v2065_v33, 0.0 }
 0x5f8   : > { %v2355_v2 = vpop.f32.mrf.mxu1 }
 0x5f9   : > { %v2178_v0 = vpack.c.bf16 %v2142_v62, %v2141_v60  ;;  %v2356_v6 = vadd.f32 %v3709_v58, %v2355_v2 }
 0x5fb   : > { %2394 = vmatmul.bf16.gmra.mxu1 %v2178_v0 }
 0x5fc   : > { %v2067_v3 = vpop.f32.mrf.mxu0 }
 0x5fd   : > { %v2068_v1 = vadd.f32 %v3819_v23, %v2067_v3 }
 0x5ff   : > { %v2143_v12 = vmax.f32 %v2068_v1, 0.0 }
 0x600   : > { %v2357_v35 = vpop.f32.mrf.mxu1 }
 0x601   : > { %v2358_v8 = vadd.f32 %v3709_v58, %v2357_v35 }
 0x603   : > { %v2950_v9 = vpack.c.bf16 %v2358_v8, %v2356_v6 }
 0x604   : > { %v2069_v10 = vpop.f32.mrf.mxu0 }
 0x605   : > { %3030 = vst [vmem:[%s3717_s26 + $0x98] sm:$0xff] %v2950_v9   ;;  %v2070_v11 = vadd.f32 %v3819_v23, %v2069_v10 }
 0x607   : > { %v2144_v37 = vmax.f32 %v2070_v11, 0.0 }
 0x608   : > { %v2360_v4 = vpop.f32.mrf.mxu1 }
 0x609   : > { %v2179_v15 = vpack.c.bf16 %v2144_v37, %v2143_v12  ;;  %v2361_v18 = vadd.f32 %v3709_v58, %v2360_v4 }
 0x60b   : > { %2399 = vmatmul.bf16.gmra.mxu1 %v2179_v15 }
 0x60c   : > { %v2072_v17 = vpop.f32.mrf.mxu0 }
 0x60d   : > { %v2073_v5 = vadd.f32 %v3819_v23, %v2072_v17 }
 0x60f   : > { %v2145_v14 = vmax.f32 %v2073_v5, 0.0  ;;  %v3070_v5 = vld [vmem:[%s3924_s12] ss:$0 sm:$0xff] }
 0x610   : > { %v2362_v16 = vpop.f32.mrf.mxu1 }
 0x611   : > { %v2363_v19 = vadd.f32 %v3709_v58, %v2362_v16 }
 0x613   : > { %v2955_v20 = vpack.c.bf16 %v2363_v19, %v2361_v18 }
 0x614   : > { %v2074_v63 = vpop.f32.mrf.mxu0 }
 0x615   : > { %3031 = vst [vmem:[%s3717_s26 + $0xa0] sm:$0xff] %v2955_v20   ;;  %v2075_v21 = vadd.f32 %v3819_v23, %v2074_v63 }
 0x617   : > { %v2146_v22 = vmax.f32 %v2075_v21, 0.0 }
 0x618   : > { %v2365_v25 = vpop.f32.mrf.mxu1 }
 0x619   : > { %v2180_v27 = vpack.c.bf16 %v2146_v22, %v2145_v14  ;;  %v2366_v31 = vadd.f32 %v3709_v58, %v2365_v25 }
 0x61b   : > { %2404 = vmatmul.bf16.gmra.mxu1 %v2180_v27 }
 0x61c   : > { %v2077_v30 = vpop.f32.mrf.mxu0 }
 0x61d   : > { %v2078_v38 = vadd.f32 %v3819_v23, %v2077_v30 }
 0x61f   : > { %v2147_v43 = vmax.f32 %v2078_v38, 0.0 }
 0x620   : > { %v2367_v26 = vpop.f32.mrf.mxu1 }
 0x621   : > { %v2368_v54 = vadd.f32 %v3709_v58, %v2367_v26 }
 0x623   : > { %v2960_v32 = vpack.c.bf16 %v2368_v54, %v2366_v31 }
 0x624   : > { %v2079_v34 = vpop.f32.mrf.mxu0 }
 0x625   : > { %3032 = vst [vmem:[%s3717_s26 + $0xa8] sm:$0xff] %v2960_v32   ;;  %v2080_v36 = vadd.f32 %v3819_v23, %v2079_v34 }
 0x627   : > { %v2148_v28 = vmax.f32 %v2080_v36, 0.0 }
 0x628   : > { %v2370_v39 = vpop.f32.mrf.mxu1 }
 0x629   : > { %v2181_v52 = vpack.c.bf16 %v2148_v28, %v2147_v43  ;;  %v2371_v40 = vadd.f32 %v3709_v58, %v2370_v39 }
 0x62b   : > { %2409 = vmatmul.bf16.gmra.mxu1 %v2181_v52 }
 0x62c   : > { %v2082_v29 = vpop.f32.mrf.mxu0 }
 0x62d   : > { %v2083_v45 = vadd.f32 %v3819_v23, %v2082_v29 }
 0x62f   : > { %v2149_v48 = vmax.f32 %v2083_v45, 0.0 }
 0x630   : > { %v2372_v13 = vpop.f32.mrf.mxu1 }
 0x631   : > { %v2373_v41 = vadd.f32 %v3709_v58, %v2372_v13 }
 0x633   : > { %v2965_v46 = vpack.c.bf16 %v2373_v41, %v2371_v40 }
 0x634   : > { %v2084_v47 = vpop.f32.mrf.mxu0 }
 0x635   : > { %3033 = vst [vmem:[%s3717_s26 + $0xb0] sm:$0xff] %v2965_v46   ;;  %v2085_v42 = vadd.f32 %v3819_v23, %v2084_v47 }
 0x637   : > { %v2150_v44 = vmax.f32 %v2085_v42, 0.0 }
 0x638   : > { %v2375_v49 = vpop.f32.mrf.mxu1 }
 0x639   : > { %v2182_v50 = vpack.c.bf16 %v2150_v44, %v2149_v48  ;;  %v2376_v7 = vadd.f32 %v3709_v58, %v2375_v49 }
 0x63b   : > { %2414 = vmatmul.bf16.gmra.mxu1 %v2182_v50 }
 0x640   : > { %v2377_v51 = vpop.f32.mrf.mxu1 }
 0x641   : > { %v2378_v55 = vadd.f32 %v3709_v58, %v2377_v51 }
 0x643   : > { %v2970_v56 = vpack.c.bf16 %v2378_v55, %v2376_v7 }
 0x645   : > { %3034 = vst [vmem:[%s3717_s26 + $0xb8] sm:$0xff] %v2970_v56  }
 0x648   : > { %v2380_v24 = vpop.f32.mrf.mxu1 }
 0x649   : > { %v2381_v53 = vadd.f32 %v3709_v58, %v2380_v24 }
 0x650   : > { %v2382_v61 = vpop.f32.mrf.mxu1 }
 0x651   : > { %v2383_v23 = vadd.f32 %v3709_v58, %v2382_v61 }
 0x653   : > { %v2975_v57 = vpack.c.bf16 %v2383_v23, %v2381_v53 }
 0x655   : > { %3035 = vst [vmem:[%s3717_s26 + $0xc0] sm:$0xff] %v2975_v57  }
 0x658   : > { %v2385_v59 = vpop.f32.mrf.mxu1 }
 0x659   : > { %v2386_v60 = vadd.f32 %v3709_v58, %v2385_v59 }
 0x660   : > { %v2387_v33 = vpop.f32.mrf.mxu1 }
 0x661   : > { %v2388_v62 = vadd.f32 %v3709_v58, %v2387_v33 }
 0x663   : > { %v2980_v2 = vpack.c.bf16 %v2388_v62, %v2386_v60 }
 0x665   : > { %3036 = vst [vmem:[%s3717_s26 + $0xc8] sm:$0xff] %v2980_v2  }
 0x668   : > { %v2390_v0 = vpop.f32.mrf.mxu1 }
 0x669   : > { %v2391_v35 = vadd.f32 %v3709_v58, %v2390_v0 }
 0x670   : > { %v2392_v3 = vpop.f32.mrf.mxu1 }
 0x671   : > { %v2393_v6 = vadd.f32 %v3709_v58, %v2392_v3 }
 0x673   : > { %v2985_v8 = vpack.c.bf16 %v2393_v6, %v2391_v35 }
 0x675   : > { %3037 = vst [vmem:[%s3717_s26 + $0xd0] sm:$0xff] %v2985_v8  }
 0x678   : > { %v2395_v1 = vpop.f32.mrf.mxu1 }
 0x679   : > { %v2396_v10 = vadd.f32 %v3709_v58, %v2395_v1 }
 0x680   : > { %v2397_v9 = vpop.f32.mrf.mxu1 }
 0x681   : > { %v2398_v11 = vadd.f32 %v3709_v58, %v2397_v9 }
 0x683   : > { %v2990_v12 = vpack.c.bf16 %v2398_v11, %v2396_v10 }
 0x685   : > { %3038 = vst [vmem:[%s3717_s26 + $0xd8] sm:$0xff] %v2990_v12  }
 0x688   : > { %v2400_v37 = vpop.f32.mrf.mxu1 }
 0x689   : > { %v2401_v15 = vadd.f32 %v3709_v58, %v2400_v37 }
 0x690   : > { %v2402_v4 = vpop.f32.mrf.mxu1 }
 0x691   : > { %v2403_v17 = vadd.f32 %v3709_v58, %v2402_v4 }
 0x693   : > { %v2995_v16 = vpack.c.bf16 %v2403_v17, %v2401_v15 }
 0x695   : > { %3039 = vst [vmem:[%s3717_s26 + $0xe0] sm:$0xff] %v2995_v16  }
 0x698   : > { %v2405_v18 = vpop.f32.mrf.mxu1 }
 0x699   : > { %v2406_v20 = vadd.f32 %v3070_v5, %v2405_v18 }
 0x6a0   : > { %v2407_v19 = vpop.f32.mrf.mxu1 }
 0x6a1   : > { %v2408_v63 = vadd.f32 %v3070_v5, %v2407_v19 }
 0x6a3   : > { %v3000_v21 = vpack.c.bf16 %v2408_v63, %v2406_v20 }
 0x6a5   : > { %3040 = vst [vmem:[%s3717_s26 + $0xe8] sm:$0xff] %v3000_v21  }
 0x6a8   : > { %v2410_v14 = vpop.f32.mrf.mxu1 }
 0x6a9   : > { %v2411_v25 = vadd.f32 %v3070_v5, %v2410_v14 }
 0x6b0   : > { %v2412_v22 = vpop.f32.mrf.mxu1 }
 0x6b1   : > { %v2413_v27 = vadd.f32 %v3070_v5, %v2412_v22 }
 0x6b3   : > { %v3005_v30 = vpack.c.bf16 %v2413_v27, %v2411_v25 }
 0x6b5   : > { %3041 = vst [vmem:[%s3717_s26 + $0xf0] sm:$0xff] %v3005_v30  }
 0x6b8   : > { %v2415_v58 = vpop.f32.mrf.mxu1 }
 0x6b9   : > { %v2416_v31 = vadd.f32 %v3070_v5, %v2415_v58 }
 0x6c0   : > { %v2417_v26 = vpop.f32.mrf.mxu1 }
 0x6c1   : > { %v2418_v54 = vadd.f32 %v3070_v5, %v2417_v26 }
 0x6c3   : > { %v3010_v38 = vpack.c.bf16 %v2418_v54, %v2416_v31 }
 0x6c5   : > { %3042 = vst [vmem:[%s3717_s26 + $0xf8] sm:$0xff] %v3010_v38  }
 0x6c6 PF: > { %s23_s25 = sadd.s32 1, %s3077_s25  }
 0x6c7   : > { %p20_p4 = scmp.ge.s32.totalorder %s23_s25, 6  }
 0x6c9   :  { %22 = sbr.rel (!%p20_p4) target bundleno = 1 (0x1), region = 102 }

// kernel: fcn_forward.1
= control target key start
LH: loop header
LB: loop body
LE: loop exit
PB: predicated region body
PF: predicated region fallthrough
CT: control target
= control target key end

     0   :  { %s3149_s25 = smov 0   ;;  %s3912_s0 = inlined_call_operand.vmem [shape: f32[2048,16], index: 0, kind: input, shape index: {}]   ;;  %s3913_s1 = inlined_call_operand.vmem [shape: bf16[16,128], index: 1, kind: input, shape index: {}]   ;;  %s3914_s2 = inlined_call_operand.vmem [shape: f32[1,128], index: 2, kind: input, shape index: {}]   ;;  %s3915_s3 = inlined_call_operand.vmem [shape: bf16[128,128], index: 3, kind: input, shape index: {}]   ;;  %s3916_s4 = inlined_call_operand.vmem [shape: f32[1,128], index: 4, kind: input, shape index: {}]   ;;  %s3917_s5 = inlined_call_operand.vmem [shape: bf16[128,128], index: 5, kind: input, shape index: {}]   ;;  %s3918_s6 = inlined_call_operand.vmem [shape: f32[1,128], index: 6, kind: input, shape index: {}]   ;;  %s3919_s7 = inlined_call_operand.vmem [shape: bf16[128,128], index: 7, kind: input, shape index: {}]   ;;  %s3920_s8 = inlined_call_operand.vmem [shape: f32[1,128], index: 8, kind: input, shape index: {}]   ;;  %s3921_s9 = inlined_call_operand.vmem [shape: bf16[128,128], index: 9, kind: input, shape index: {}]   ;;  %s3922_s10 = inlined_call_operand.vmem [shape: f32[1,128], index: 10, kind: input, shape index: {}]   ;;  %s3923_s11 = inlined_call_operand.vmem [shape: bf16[128,128], index: 11, kind: input, shape index: {}]   ;;  %s3924_s12 = inlined_call_operand.vmem [shape: f32[1,128], index: 12, kind: input, shape index: {}]   ;;  %s3925_s13 = inlined_call_operand.vmem [shape: bf16[2048,128], index: 13, kind: output, shape index: {}]  }
   0x1 LB: > { %s2604_s26 = sadd.s32 4294967295, %s3077_s25   ;;  %p2608_p0 = scmp.ge.s32.totalorder %s3077_s25, 1  ;;  %s3077_s25 = sphi %s3149_s25, %s23_s25  }
   0x2   : > { %p388_p1 = scmp.lt.s32.totalorder %s3077_s25, 5 }
   0x4   : > { %p389_p2 = pnand %p2608_p0, %p388_p1 }
   0x5   : > { %s2609_s29 = sshll.u32 (!%p389_p2), %s2604_s26, 6 }
   0x6   : > { %392 = sbr.rel (%p389_p2) target bundleno = 1734 (0x6c6), region = 72  ;;  %p433_p3 = scmp.lt.s32.totalorder (!%p389_p2), %s2609_s29, 255 }
   0xb   : > { %v2811_v0 = vld [vmem:[%s3913_s1] sm:$0xff]  ;;  %s3927_s29 = smov (!%p433_p3, %s2609_s29), 255  ;;  %vm553_vm0 = vcmask 130048   ;;  %v2819_v16 = vld [vmem:[%s3915_s3 + $0x38] sm:$0xff]  ;;  %v2818_v17 = vld [vmem:[%s3915_s3 + $0x30] sm:$0xff] }
   0xc   : > { %657 = vmatpush.bf16.msra.mxu0 %v2811_v0  ;;  %3043 = vmatpush.bf16.msra.mxu3 %v2811_v0  ;;  %s2610_s30 = sshll.u32 %s3927_s29, 3  ;;  %v2817_v21 = vld [vmem:[%s3915_s3 + $0x28] sm:$0xff]  ;;  %v2816_v22 = vld [vmem:[%s3915_s3 + $0x20] sm:$0xff]  ;;  %v2815_v23 = vld [vmem:[%s3915_s3 + $0x18] sm:$0xff]  ;;  %s2612_s22 = sshll.u32 %s3927_s29, 2 }
   0xd   : > { %s3166_s16 = scalar_lea.vmem %s3912_s0, %s2610_s30  ;;  %919 = vmatpush.bf16.msra.mxu1 %v2819_v16  ;;  %3044 = vmatpush.bf16.msra.mxu2 %v2819_v16  ;;  %v2814_v27 = vld [vmem:[%s3915_s3 + $0x10] sm:$0xff]  ;;  %v2813_v28 = vld [vmem:[%s3915_s3 + $0x8] sm:$0xff]  ;;  %v2812_v29 = vld [vmem:[%s3915_s3] sm:$0xff]  ;;  %s3717_s26 = scalar_lea.vmem %s3925_s13, %s2612_s22 }
   0xe   : > { %v445_v1 = vld [vmem:[%s3166_s16] sm:$0xff]  ;;  %v446_v2 = vld [vmem:[%s3166_s16 + $0x8] sm:$0xff]  ;;  %v447_v4 = vld [vmem:[%s3166_s16 + $0x10] sm:$0xff] }
   0xf   : > { %v509_v3 = vpack.c.bf16 %v446_v2, %v445_v1  ;;  %v448_v5 = vld [vmem:[%s3166_s16 + $0x18] sm:$0xff]  ;;  %v449_v7 = vld [vmem:[%s3166_s16 + $0x20] sm:$0xff]  ;;  %v450_v8 = vld [vmem:[%s3166_s16 + $0x28] sm:$0xff] }
  0x10   : > { %v510_v6 = vpack.c.bf16 %v448_v5, %v447_v4  ;;  %v511_v9 = vpack.c.bf16 %v450_v8, %v449_v7  ;;  %v451_v10 = vld [vmem:[%s3166_s16 + $0x30] sm:$0xff]  ;;  %v452_v11 = vld [vmem:[%s3166_s16 + $0x38] sm:$0xff]  ;;  %v453_v13 = vld [vmem:[%s3166_s16 + $0x40] sm:$0xff] }
  0x11   : > { %2617 = vmatmul.msk.bf16.vlgmr.msra.gmra.mxu0 %vm553_vm0, %v509_v3  ;;  %v512_v12 = vpack.c.bf16 %v452_v11, %v451_v10  ;;  %v454_v14 = vld [vmem:[%s3166_s16 + $0x48] sm:$0xff]  ;;  %920 = vmatpush.bf16.msra.mxu1 %v2818_v17  ;;  %v455_v18 = vld [vmem:[%s3166_s16 + $0x50] sm:$0xff]  ;;  %v456_v19 = vld [vmem:[%s3166_s16 + $0x58] sm:$0xff] }
  0x12   : > { %v513_v15 = vpack.c.bf16 %v454_v14, %v453_v13  ;;  %3045 = vmatpush.bf16.msra.mxu2 %v2818_v17  ;;  %v514_v20 = vpack.c.bf16 %v456_v19, %v455_v18  ;;  %v457_v24 = vld [vmem:[%s3166_s16 + $0x60] sm:$0xff]  ;;  %v458_v25 = vld [vmem:[%s3166_s16 + $0x68] sm:$0xff]  ;;  %v459_v30 = vld [vmem:[%s3166_s16 + $0x70] sm:$0xff] }
  0x13   : > { %v515_v26 = vpack.c.bf16 %v458_v25, %v457_v24  ;;  %v460_v31 = vld [vmem:[%s3166_s16 + $0x78] sm:$0xff]  ;;  %v461_v33 = vld [vmem:[%s3166_s16 + $0x80] sm:$0xff]  ;;  %v462_v34 = vld [vmem:[%s3166_s16 + $0x88] sm:$0xff] }
  0x14   : > { %v516_v32 = vpack.c.bf16 %v460_v31, %v459_v30  ;;  %v517_v35 = vpack.c.bf16 %v462_v34, %v461_v33  ;;  %v3222_v37 = vld [vmem:[%s3914_s2] ss:$0 sm:$0xff]  ;;  %v463_v42 = vld [vmem:[%s3166_s16 + $0x90] sm:$0xff]  ;;  %v464_v43 = vld [vmem:[%s3166_s16 + $0x98] sm:$0xff] }
  0x15   : > { %921 = vmatpush.bf16.msra.mxu1 %v2817_v21  ;;  %v518_v44 = vpack.c.bf16 %v464_v43, %v463_v42  ;;  %v465_v50 = vld [vmem:[%s3166_s16 + $0xa0] sm:$0xff]  ;;  %v466_v51 = vld [vmem:[%s3166_s16 + $0xa8] sm:$0xff]  ;;  %v467_v58 = vld [vmem:[%s3166_s16 + $0xb0] sm:$0xff] }
  0x16   : > { %3046 = vmatpush.bf16.msra.mxu2 %v2817_v21  ;;  %v519_v52 = vpack.c.bf16 %v466_v51, %v465_v50  ;;  %v468_v59 = vld [vmem:[%s3166_s16 + $0xb8] sm:$0xff]  ;;  %v469_v2 = vld [vmem:[%s3166_s16 + $0xc0] sm:$0xff]  ;;  %v470_v3 = vld [vmem:[%s3166_s16 + $0xc8] sm:$0xff] }
  0x17   : > { %v520_v60 = vpack.c.bf16 %v468_v59, %v467_v58  ;;  %v521_v4 = vpack.c.bf16 %v470_v3, %v469_v2  ;;  %v471_v10 = vld [vmem:[%s3166_s16 + $0xd0] sm:$0xff]  ;;  %v472_v11 = vld [vmem:[%s3166_s16 + $0xd8] sm:$0xff]  ;;  %v473_v18 = vld [vmem:[%s3166_s16 + $0xe0] sm:$0xff] }
  0x18   : > { %v474_v19 = vld [vmem:[%s3166_s16 + $0xe8] sm:$0xff]  ;;  %v476_v30 = vld [vmem:[%s3166_s16 + $0xf8] sm:$0xff]  ;;  %v481_v33 = vld [vmem:[%s3166_s16 + $0x120] sm:$0xff] }
  0x19   : > { %922 = vmatpush.bf16.msra.mxu1 %v2816_v22  ;;  %v482_v34 = vld [vmem:[%s3166_s16 + $0x128] sm:$0xff] }
  0x1a   : > { %3047 = vmatpush.bf16.msra.mxu2 %v2816_v22  ;;  %v479_v22 = vld [vmem:[%s3166_s16 + $0x110] sm:$0xff]  ;;  %v478_v42 = vld [vmem:[%s3166_s16 + $0x108] sm:$0xff] }
  0x1b   : > { %v486_v58 = vld [vmem:[%s3166_s16 + $0x148] sm:$0xff] }
  0x1d   : > { %923 = vmatpush.bf16.msra.mxu1 %v2815_v23 }
  0x1e   : > { %3048 = vmatpush.bf16.msra.mxu2 %v2815_v23  ;;  %v480_v23 = vld [vmem:[%s3166_s16 + $0x118] sm:$0xff] }
  0x1f   : > { %v526_v24 = vpack.c.bf16 %v480_v23, %v479_v22  ;;  %v489_v23 = vld [vmem:[%s3166_s16 + $0x160] sm:$0xff] }
  0x21   : > { %2618 = vmatmul.msk.bf16.gmra.mxu0 %vm553_vm0, %v510_v6  ;;  %924 = vmatpush.bf16.msra.mxu1 %v2814_v27 }
  0x22   : > { %3049 = vmatpush.bf16.msra.mxu2 %v2814_v27  ;;  %2634 = vmatmul.msk.bf16.vlgmr.msra.gmra.mxu3 %vm553_vm0, %v526_v24  ;;  %v490_v24 = vld [vmem:[%s3166_s16 + $0x168] sm:$0xff] }
  0x25   : > { %925 = vmatpush.bf16.msra.mxu1 %v2813_v28 }
  0x26   : > { %3050 = vmatpush.bf16.msra.mxu2 %v2813_v28 }
  0x29   : > { %926 = vmatpush.bf16.msra.mxu1 %v2812_v29 }
  0x2a   : > { %3051 = vmatpush.bf16.msra.mxu2 %v2812_v29  ;;  %v475_v29 = vld [vmem:[%s3166_s16 + $0xf0] sm:$0xff] }
  0x2b   : > { %v524_v31 = vpack.c.bf16 %v476_v30, %v475_v29 }
  0x31   : > { %2619 = vmatmul.msk.bf16.gmra.mxu0 %vm553_vm0, %v511_v9 }
  0x41   : > { %2620 = vmatmul.msk.bf16.gmra.mxu0 %vm553_vm0, %v512_v12  ;;  %v522_v12 = vpack.c.bf16 %v472_v11, %v471_v10 }
  0x51   : > { %2621 = vmatmul.msk.bf16.gmra.mxu0 %vm553_vm0, %v513_v15 }
  0x61   : > { %2622 = vmatmul.msk.bf16.gmra.mxu0 %vm553_vm0, %v514_v20  ;;  %v523_v20 = vpack.c.bf16 %v474_v19, %v473_v18 }
  0x71   : > { %2623 = vmatmul.msk.bf16.gmra.mxu0 %vm553_vm0, %v515_v26 }
  0x81   : > { %2624 = vmatmul.msk.bf16.gmra.mxu0 %vm553_vm0, %v516_v32 }
  0x8e   : > { %v659_v36 = vpop.f32.mrf.mxu0 }
  0x8f   : > { %v660_v39 = vadd.f32 %v3222_v37, %v659_v36 }
  0x91   : > { %2625 = vmatmul.msk.bf16.gmra.mxu0 %vm553_vm0, %v517_v35  ;;  %v527_v35 = vpack.c.bf16 %v482_v34, %v481_v33 }
  0x93   : > { %2635 = vmatmul.msk.bf16.gmra.mxu3 %vm553_vm0, %v527_v35 }
  0x96   : > { %v661_v38 = vpop.f32.mrf.mxu0 }
  0x97   : > { %v662_v40 = vadd.f32 %v3222_v37, %v661_v38 }
  0x99   : > { %v819_v41 = vpack.c.bf16 %v662_v40, %v660_v39 }
  0x9b   : > { %927 = vmatmul.bf16.vlgmr.msra.gmra.mxu1 %v819_v41  ;;  %v477_v41 = vld [vmem:[%s3166_s16 + $0x100] sm:$0xff] }
  0x9c   : > { %v525_v43 = vpack.c.bf16 %v478_v42, %v477_v41 }
  0x9e   : > { %v664_v45 = vpop.f32.mrf.mxu0 }
  0x9f   : > { %v665_v47 = vadd.f32 %v3222_v37, %v664_v45  ;;  %v483_v45 = vld [vmem:[%s3166_s16 + $0x130] sm:$0xff] }
  0xa1   : > { %2626 = vmatmul.msk.bf16.gmra.mxu0 %vm553_vm0, %v518_v44 }
  0xa6   : > { %v666_v46 = vpop.f32.mrf.mxu0 }
  0xa7   : > { %v667_v48 = vadd.f32 %v3222_v37, %v666_v46  ;;  %v484_v46 = vld [vmem:[%s3166_s16 + $0x138] sm:$0xff] }
  0xa9   : > { %v820_v49 = vpack.c.bf16 %v667_v48, %v665_v47  ;;  %v528_v47 = vpack.c.bf16 %v484_v46, %v483_v45 }
  0xab   : > { %932 = vmatmul.bf16.gmra.mxu1 %v820_v49  ;;  %2636 = vmatmul.msk.bf16.gmra.mxu3 %vm553_vm0, %v528_v47 }
  0xae   : > { %v669_v53 = vpop.f32.mrf.mxu0 }
  0xaf   : > { %v670_v55 = vadd.f32 %v3222_v37, %v669_v53  ;;  %v3278_v53 = vld [vmem:[%s3916_s4] ss:$0 sm:$0xff] }
  0xb1   : > { %2627 = vmatmul.msk.bf16.gmra.mxu0 %vm553_vm0, %v519_v52 }
  0xb6   : > { %v671_v54 = vpop.f32.mrf.mxu0 }
  0xb7   : > { %v672_v56 = vadd.f32 %v3222_v37, %v671_v54 }
  0xb9   : > { %v821_v57 = vpack.c.bf16 %v672_v56, %v670_v55 }
  0xbb   : > { %937 = vmatmul.bf16.gmra.mxu1 %v821_v57  ;;  %v485_v57 = vld [vmem:[%s3166_s16 + $0x140] sm:$0xff] }
  0xbe   : > { %v674_v61 = vpop.f32.mrf.mxu0 }
  0xbf   : > { %v675_v63 = vadd.f32 %v3222_v37, %v674_v61 }
  0xc1   : > { %2628 = vmatmul.msk.bf16.gmra.mxu0 %vm553_vm0, %v520_v60  ;;  %v529_v60 = vpack.c.bf16 %v486_v58, %v485_v57 }
  0xc3   : > { %2637 = vmatmul.msk.bf16.gmra.mxu3 %vm553_vm0, %v529_v60  ;;  %v495_v60 = vld [vmem:[%s3166_s16 + $0x190] sm:$0xff] }
  0xc6   : > { %v676_v62 = vpop.f32.mrf.mxu0 }
  0xc7   : > { %v677_v0 = vadd.f32 %v3222_v37, %v676_v62 }
  0xc9   : > { %v822_v1 = vpack.c.bf16 %v677_v0, %v675_v63 }
  0xcb   : > { %942 = vmatmul.bf16.gmra.mxu1 %v822_v1 }
  0xce   : > { %v679_v5 = vpop.f32.mrf.mxu0 }
  0xcf   : > { %v680_v7 = vadd.f32 %v3222_v37, %v679_v5 }
  0xd1   : > { %2629 = vmatmul.msk.bf16.gmra.mxu0 %vm553_vm0, %v521_v4 }
  0xd6   : > { %v681_v6 = vpop.f32.mrf.mxu0 }
  0xd7   : > { %v682_v8 = vadd.f32 %v3222_v37, %v681_v6 }
  0xd9   : > { %v823_v9 = vpack.c.bf16 %v682_v8, %v680_v7  ;;  %v487_v8 = vld [vmem:[%s3166_s16 + $0x150] sm:$0xff] }
  0xdb   : > { %947 = vmatmul.bf16.gmra.mxu1 %v823_v9  ;;  %v488_v9 = vld [vmem:[%s3166_s16 + $0x158] sm:$0xff] }
  0xdc   : > { %v530_v11 = vpack.c.bf16 %v488_v9, %v487_v8  ;;  %v497_v8 = vld [vmem:[%s3166_s16 + $0x1a0] sm:$0xff]  ;;  %v498_v9 = vld [vmem:[%s3166_s16 + $0x1a8] sm:$0xff] }
  0xde   : > { %v684_v13 = vpop.f32.mrf.mxu0  ;;  %2638 = vmatmul.msk.bf16.gmra.mxu3 %vm553_vm0, %v530_v11 }
  0xdf   : > { %v685_v15 = vadd.f32 %v3222_v37, %v684_v13 }
  0xe1   : > { %2630 = vmatmul.msk.bf16.gmra.mxu0 %vm553_vm0, %v522_v12 }
  0xe6   : > { %v686_v14 = vpop.f32.mrf.mxu0 }
  0xe7   : > { %v687_v16 = vadd.f32 %v3222_v37, %v686_v14 }
  0xe9   : > { %v824_v17 = vpack.c.bf16 %v687_v16, %v685_v15 }
  0xeb   : > { %952 = vmatmul.bf16.gmra.mxu1 %v824_v17 }
  0xee   : > { %v689_v21 = vpop.f32.mrf.mxu0 }
  0xef   : > { %v690_v26 = vadd.f32 %v3222_v37, %v689_v21 }
  0xf1   : > { %2631 = vmatmul.msk.bf16.gmra.mxu0 %vm553_vm0, %v523_v20 }
  0xf6   : > { %v691_v25 = vpop.f32.mrf.mxu0 }
  0xf7   : > { %v692_v27 = vadd.f32 %v3222_v37, %v691_v25 }
  0xf9   : > { %v825_v28 = vpack.c.bf16 %v692_v27, %v690_v26  ;;  %v531_v26 = vpack.c.bf16 %v490_v24, %v489_v23 }
  0xfb   : > { %957 = vmatmul.bf16.gmra.mxu1 %v825_v28  ;;  %2639 = vmatmul.msk.bf16.gmra.mxu3 %vm553_vm0, %v531_v26 }
  0xfe   : > { %v694_v32 = vpop.f32.mrf.mxu0 }
  0xff   : > { %v695_v38 = vadd.f32 %v3222_v37, %v694_v32 }
 0x101   : > { %2632 = vmatmul.msk.bf16.gmra.mxu0 %vm553_vm0, %v524_v31 }
 0x106   : > { %v696_v36 = vpop.f32.mrf.mxu0 }
 0x107   : > { %v697_v39 = vadd.f32 %v3222_v37, %v696_v36 }
 0x109   : > { %v826_v40 = vpack.c.bf16 %v697_v39, %v695_v38  ;;  %v491_v39 = vld [vmem:[%s3166_s16 + $0x170] sm:$0xff] }
 0x10b   : > { %962 = vmatmul.bf16.gmra.mxu1 %v826_v40  ;;  %v492_v40 = vld [vmem:[%s3166_s16 + $0x178] sm:$0xff] }
 0x10c   : > { %v532_v42 = vpack.c.bf16 %v492_v40, %v491_v39  ;;  %v503_v39 = vld [vmem:[%s3166_s16 + $0x1d0] sm:$0xff]  ;;  %v504_v40 = vld [vmem:[%s3166_s16 + $0x1d8] sm:$0xff] }
 0x10e   : > { %v699_v44 = vpop.f32.mrf.mxu0  ;;  %2640 = vmatmul.msk.bf16.gmra.mxu3 %vm553_vm0, %v532_v42 }
 0x10f   : > { %v700_v49 = vadd.f32 %v3222_v37, %v699_v44 }
 0x111   : > { %2633 = vmatmul.msk.bf16.gmra.mxu0 %vm553_vm0, %v525_v43 }
 0x116   : > { %v701_v48 = vpop.f32.mrf.mxu0 }
 0x117   : > { %v702_v50 = vadd.f32 %v3222_v37, %v701_v48 }
 0x118   : > { %v928_v51 = vpop.f32.mrf.mxu1 }
 0x119   : > { %v827_v52 = vpack.c.bf16 %v702_v50, %v700_v49  ;;  %v929_v55 = vadd.f32 %v3278_v53, %v928_v51  ;;  %v493_v51 = vld [vmem:[%s3166_s16 + $0x180] sm:$0xff] }
 0x11b   : > { %967 = vmatmul.bf16.gmra.mxu1 %v827_v52  ;;  %v1088_v61 = vmax.f32 %v929_v55, 0.0  ;;  %v494_v52 = vld [vmem:[%s3166_s16 + $0x188] sm:$0xff] }
 0x11e   : > { %v704_v54 = vpop.f32.mrf.mxu0 }
 0x11f   : > { %v705_v1 = vadd.f32 %v3222_v37, %v704_v54  ;;  %v533_v54 = vpack.c.bf16 %v494_v52, %v493_v51 }
 0x120   : > { %v930_v56 = vpop.f32.mrf.mxu1 }
 0x121   : > { %v931_v59 = vadd.f32 %v3278_v53, %v930_v56  ;;  %2641 = vmatmul.msk.bf16.gmra.mxu3 %vm553_vm0, %v533_v54 }
 0x123   : > { %v1089_v62 = vmax.f32 %v931_v59, 0.0 }
 0x125   : > { %v3285_v63 = vpack.c.bf16 %v1089_v62, %v1088_v61  ;;  %v496_v61 = vld [vmem:[%s3166_s16 + $0x198] sm:$0xff] }
 0x126   : > { %v706_v0 = vpop.f32.mrf.mxu0  ;;  %v534_v62 = vpack.c.bf16 %v496_v61, %v495_v60 }
 0x127   : > { %v707_v2 = vadd.f32 %v3222_v37, %v706_v0 }
 0x128   : > { %v933_v3 = vpop.f32.mrf.mxu1 }
 0x129   : > { %v828_v4 = vpack.c.bf16 %v707_v2, %v705_v1  ;;  %v934_v6 = vadd.f32 %v3278_v53, %v933_v3  ;;  %v744_v1 = vpop.f32.mrf.mxu3 }
 0x12b   : > { %972 = vmatmul.bf16.gmra.mxu1 %v828_v4  ;;  %v1090_v12 = vmax.f32 %v934_v6, 0.0 }
 0x12e   : > { %v709_v5 = vpop.f32.mrf.mxu0 }
 0x12f   : > { %v710_v16 = vadd.f32 %v3222_v37, %v709_v5  ;;  %v2827_v5 = vld [vmem:[%s3917_s5 + $0x38] sm:$0xff] }
 0x130   : > { %v935_v7 = vpop.f32.mrf.mxu1  ;;  %1252 = vmatpush.bf16.msrb.mxu2 %v2827_v5 }
 0x131   : > { %v936_v10 = vadd.f32 %v3278_v53, %v935_v7  ;;  %2642 = vmatmul.msk.bf16.gmra.mxu3 %vm553_vm0, %v534_v62  ;;  %v746_v7 = vpop.f32.mrf.mxu3 }
 0x133   : > { %v1091_v13 = vmax.f32 %v936_v10, 0.0  ;;  %v535_v10 = vpack.c.bf16 %v498_v9, %v497_v8 }
 0x135   : > { %v3294_v14 = vpack.c.bf16 %v1091_v13, %v1090_v12 }
 0x136   : > { %v711_v15 = vpop.f32.mrf.mxu0 }
 0x137   : > { %v712_v17 = vadd.f32 %v3222_v37, %v711_v15 }
 0x138   : > { %v938_v18 = vpop.f32.mrf.mxu1 }
 0x139   : > { %v829_v19 = vpack.c.bf16 %v712_v17, %v710_v16  ;;  %v939_v21 = vadd.f32 %v3278_v53, %v938_v18  ;;  %v749_v12 = vpop.f32.mrf.mxu3 }
 0x13a   : > { %v750_v42 = vadd.f32 %v3222_v37, %v749_v12  ;;  %v2823_v12 = vld [vmem:[%s3917_s5 + $0x18] sm:$0xff] }
 0x13b   : > { %977 = vmatmul.bf16.gmra.mxu1 %v829_v19  ;;  %v1092_v27 = vmax.f32 %v939_v21, 0.0  ;;  %v499_v19 = vld [vmem:[%s3166_s16 + $0x1b0] sm:$0xff] }
 0x13e   : > { %v714_v20 = vpop.f32.mrf.mxu0 }
 0x13f   : > { %v715_v31 = vadd.f32 %v3222_v37, %v714_v20  ;;  %v500_v20 = vld [vmem:[%s3166_s16 + $0x1b8] sm:$0xff] }
 0x140   : > { %v940_v22 = vpop.f32.mrf.mxu1  ;;  %v536_v21 = vpack.c.bf16 %v500_v20, %v499_v19 }
 0x141   : > { %v941_v25 = vadd.f32 %v3278_v53, %v940_v22  ;;  %2643 = vmatmul.msk.bf16.gmra.mxu3 %vm553_vm0, %v535_v10  ;;  %v751_v18 = vpop.f32.mrf.mxu3 }
 0x143   : > { %v1093_v28 = vmax.f32 %v941_v25, 0.0 }
 0x145   : > { %v3303_v29 = vpack.c.bf16 %v1093_v28, %v1092_v27  ;;  %v2826_v27 = vld [vmem:[%s3917_s5 + $0x30] sm:$0xff] }
 0x146   : > { %v716_v30 = vpop.f32.mrf.mxu0  ;;  %1253 = vmatpush.bf16.msrb.mxu2 %v2826_v27 }
 0x147   : > { %v717_v32 = vadd.f32 %v3222_v37, %v716_v30  ;;  %v501_v30 = vld [vmem:[%s3166_s16 + $0x1c0] sm:$0xff] }
 0x148   : > { %v943_v33 = vpop.f32.mrf.mxu1 }
 0x149   : > { %v830_v34 = vpack.c.bf16 %v717_v32, %v715_v31  ;;  %v944_v36 = vadd.f32 %v3278_v53, %v943_v33  ;;  %v754_v23 = vpop.f32.mrf.mxu3  ;;  %v502_v31 = vld [vmem:[%s3166_s16 + $0x1c8] sm:$0xff]  ;;  %v745_v33 = vadd.f32 %v3222_v37, %v744_v1 }
 0x14a   : > { %v537_v32 = vpack.c.bf16 %v502_v31, %v501_v30  ;;  %v755_v52 = vadd.f32 %v3222_v37, %v754_v23  ;;  %v2822_v23 = vld [vmem:[%s3917_s5 + $0x10] sm:$0xff] }
 0x14b   : > { %982 = vmatmul.bf16.gmra.mxu1 %v830_v34  ;;  %v1094_v43 = vmax.f32 %v944_v36, 0.0  ;;  %v747_v34 = vadd.f32 %v3222_v37, %v746_v7 }
 0x14d   : > { %v836_v36 = vpack.c.bf16 %v747_v34, %v745_v33 }
 0x14e   : > { %v719_v35 = vpop.f32.mrf.mxu0 }
 0x14f   : > { %v720_v47 = vadd.f32 %v3222_v37, %v719_v35 }
 0x150   : > { %v945_v38 = vpop.f32.mrf.mxu1 }
 0x151   : > { %v946_v41 = vadd.f32 %v3278_v53, %v945_v38  ;;  %2644 = vmatmul.msk.bf16.gmra.mxu3 %vm553_vm0, %v536_v21  ;;  %v756_v28 = vpop.f32.mrf.mxu3 }
 0x152   : > { %v757_v54 = vadd.f32 %v3222_v37, %v756_v28 }
 0x153   : > { %v1095_v44 = vmax.f32 %v946_v41, 0.0  ;;  %v538_v41 = vpack.c.bf16 %v504_v40, %v503_v39 }
 0x155   : > { %v3312_v45 = vpack.c.bf16 %v1095_v44, %v1094_v43  ;;  %v752_v43 = vadd.f32 %v3222_v37, %v751_v18 }
 0x156   : > { %v721_v46 = vpop.f32.mrf.mxu0 }
 0x157   : > { %v722_v48 = vadd.f32 %v3222_v37, %v721_v46  ;;  %v837_v46 = vpack.c.bf16 %v752_v43, %v750_v42 }
 0x159   : > { %v831_v49 = vpack.c.bf16 %v722_v48, %v720_v47  ;;  %v759_v35 = vpop.f32.mrf.mxu3  ;;  %v2825_v47 = vld [vmem:[%s3917_s5 + $0x28] sm:$0xff] }
 0x15a   : > { %1254 = vmatpush.bf16.msrb.mxu2 %v2825_v47  ;;  %v760_v61 = vadd.f32 %v3222_v37, %v759_v35 }
 0x15b   : > { %987 = vmatmul.bf16.gmra.mxu1 %v831_v49  ;;  %v505_v49 = vld [vmem:[%s3166_s16 + $0x1e0] sm:$0xff] }
 0x15e   : > { %v724_v50 = vpop.f32.mrf.mxu0 }
 0x15f   : > { %v725_v56 = vadd.f32 %v3222_v37, %v724_v50  ;;  %v506_v50 = vld [vmem:[%s3166_s16 + $0x1e8] sm:$0xff] }
 0x160   : > { %v539_v51 = vpack.c.bf16 %v506_v50, %v505_v49  ;;  %v2821_v50 = vld [vmem:[%s3917_s5 + $0x8] sm:$0xff] }
 0x161   : > { %2645 = vmatmul.msk.bf16.gmra.mxu3 %vm553_vm0, %v537_v32  ;;  %v761_v38 = vpop.f32.mrf.mxu3 }
 0x162   : > { %v762_v62 = vadd.f32 %v3222_v37, %v761_v38 }
 0x164   : > { %v839_v1 = vpack.c.bf16 %v762_v62, %v760_v61 }
 0x166   : > { %v726_v55 = vpop.f32.mrf.mxu0 }
 0x167   : > { %v727_v57 = vadd.f32 %v3222_v37, %v726_v55 }
 0x169   : > { %v832_v58 = vpack.c.bf16 %v727_v57, %v725_v56  ;;  %v764_v44 = vpop.f32.mrf.mxu3  ;;  %v838_v56 = vpack.c.bf16 %v757_v54, %v755_v52 }
 0x16b   : > { %992 = vmatmul.bf16.gmra.mxu1 %v832_v58  ;;  %v507_v58 = vld [vmem:[%s3166_s16 + $0x1f0] sm:$0xff] }
 0x16e   : > { %v729_v59 = vpop.f32.mrf.mxu0 }
 0x16f   : > { %v730_v2 = vadd.f32 %v3222_v37, %v729_v59  ;;  %v508_v59 = vld [vmem:[%s3166_s16 + $0x1f8] sm:$0xff] }
 0x170   : > { %v540_v60 = vpack.c.bf16 %v508_v59, %v507_v58 }
 0x171   : > { %2646 = vmatmul.msk.bf16.gmra.mxu3 %vm553_vm0, %v538_v41  ;;  %v766_v48 = vpop.f32.mrf.mxu3 }
 0x172   : > { %v767_v5 = vadd.f32 %v3222_v37, %v766_v48 }
 0x176   : > { %v731_v0 = vpop.f32.mrf.mxu0 }
 0x177   : > { %v732_v3 = vadd.f32 %v3222_v37, %v731_v0 }
 0x179   : > { %v833_v4 = vpack.c.bf16 %v732_v3, %v730_v2  ;;  %v2824_v2 = vld [vmem:[%s3917_s5 + $0x20] sm:$0xff] }
 0x17a   : > { %1255 = vmatpush.bf16.msrb.mxu2 %v2824_v2 }
 0x17b   : > { %997 = vmatmul.bf16.gmra.mxu1 %v833_v4  ;;  %v765_v4 = vadd.f32 %v3222_v37, %v764_v44 }
 0x17e   : > { %v734_v6 = vpop.f32.mrf.mxu0  ;;  %v769_v55 = vpop.f32.mrf.mxu3  ;;  %1256 = vmatpush.bf16.msrb.mxu2 %v2823_v12 }
 0x17f   : > { %v735_v13 = vadd.f32 %v3222_v37, %v734_v6  ;;  %v840_v6 = vpack.c.bf16 %v767_v5, %v765_v4  ;;  %v770_v8 = vadd.f32 %v3222_v37, %v769_v55 }
 0x181   : > { %2647 = vmatmul.msk.bf16.gmra.mxu3 %vm553_vm0, %v539_v51  ;;  %v2834_v51 = vld [vmem:[%s3919_s7 + $0x30] sm:$0xff] }
 0x182   : > { %1257 = vmatpush.bf16.msrb.mxu2 %v2822_v23 }
 0x186   : > { %v736_v11 = vpop.f32.mrf.mxu0  ;;  %v771_v57 = vpop.f32.mrf.mxu3  ;;  %1258 = vmatpush.bf16.msrb.mxu2 %v2821_v50 }
 0x187   : > { %v737_v15 = vadd.f32 %v3222_v37, %v736_v11  ;;  %v772_v9 = vadd.f32 %v3222_v37, %v771_v57 }
 0x189   : > { %v834_v16 = vpack.c.bf16 %v737_v15, %v735_v13  ;;  %v841_v11 = vpack.c.bf16 %v772_v9, %v770_v8 }
 0x18b   : > { %1002 = vmatmul.bf16.gmra.mxu1 %v834_v16 }
 0x18e   : > { %v739_v17 = vpop.f32.mrf.mxu0 }
 0x18f   : > { %v740_v24 = vadd.f32 %v3222_v37, %v739_v17 }
 0x191   : > { %2648 = vmatmul.msk.bf16.gmra.mxu3 %vm553_vm0, %v540_v60  ;;  %v774_v0 = vpop.f32.mrf.mxu3 }
 0x192   : > { %v775_v15 = vadd.f32 %v3222_v37, %v774_v0 }
 0x196   : > { %v741_v22 = vpop.f32.mrf.mxu0 }
 0x197   : > { %v742_v25 = vadd.f32 %v3222_v37, %v741_v22 }
 0x199   : > { %v835_v26 = vpack.c.bf16 %v742_v25, %v740_v24  ;;  %v776_v3 = vpop.f32.mrf.mxu3  ;;  %v2835_v24 = vld [vmem:[%s3919_s7 + $0x38] sm:$0xff] }
 0x19a   : > { %v777_v16 = vadd.f32 %v3222_v37, %v776_v3  ;;  %1585 = vmatpush.bf16.msrb.mxu3 %v2835_v24 }
 0x19b   : > { %1007 = vmatmul.bf16.vlgmr.msra.gmra.mxu2 %v835_v26 }
 0x19c   : > { %v842_v17 = vpack.c.bf16 %v777_v16, %v775_v15  ;;  %v2820_v16 = vld [vmem:[%s3917_s5] sm:$0xff] }
 0x19d   : > { %1259 = vmatpush.bf16.msrb.mxu2 %v2820_v16 }
 0x19e   : > { %1586 = vmatpush.bf16.msrb.mxu3 %v2834_v51 }
 0x1a4   : > { %v779_v7 = vpop.f32.mrf.mxu3 }
 0x1a5   : > { %v780_v20 = vadd.f32 %v3222_v37, %v779_v7 }
 0x1ab   : > { %1012 = vmatmul.bf16.gmra.mxu2 %v836_v36 }
 0x1ac   : > { %v781_v10 = vpop.f32.mrf.mxu3 }
 0x1ad   : > { %v782_v21 = vadd.f32 %v3222_v37, %v781_v10 }
 0x1af   : > { %v843_v22 = vpack.c.bf16 %v782_v21, %v780_v20 }
 0x1b4   : > { %v784_v13 = vpop.f32.mrf.mxu3 }
 0x1b5   : > { %v785_v27 = vadd.f32 %v3222_v37, %v784_v13  ;;  %v2833_v13 = vld [vmem:[%s3919_s7 + $0x28] sm:$0xff] }
 0x1b6   : > { %1587 = vmatpush.bf16.msrb.mxu3 %v2833_v13 }
 0x1bb   : > { %1017 = vmatmul.bf16.gmra.mxu2 %v837_v46 }
 0x1bc   : > { %v786_v18 = vpop.f32.mrf.mxu3 }
 0x1bd   : > { %v787_v28 = vadd.f32 %v3222_v37, %v786_v18 }
 0x1bf   : > { %v844_v36 = vpack.c.bf16 %v787_v28, %v785_v27 }
 0x1c4   : > { %v789_v19 = vpop.f32.mrf.mxu3 }
 0x1c5   : > { %v790_v41 = vadd.f32 %v3222_v37, %v789_v19 }
 0x1cb   : > { %1022 = vmatmul.bf16.gmra.mxu2 %v838_v56 }
 0x1cc   : > { %v791_v26 = vpop.f32.mrf.mxu3 }
 0x1cd   : > { %v792_v42 = vadd.f32 %v3222_v37, %v791_v26 }
 0x1cf   : > { %v845_v49 = vpack.c.bf16 %v792_v42, %v790_v41 }
 0x1d4   : > { %v794_v33 = vpop.f32.mrf.mxu3 }
 0x1d5   : > { %v795_v56 = vadd.f32 %v3222_v37, %v794_v33 }
 0x1db   : > { %1027 = vmatmul.bf16.gmra.mxu2 %v839_v1 }
 0x1dc   : > { %v796_v40 = vpop.f32.mrf.mxu3 }
 0x1dd   : > { %v797_v57 = vadd.f32 %v3222_v37, %v796_v40 }
 0x1df   : > { %v846_v1 = vpack.c.bf16 %v797_v57, %v795_v56 }
 0x1e4   : > { %v799_v54 = vpop.f32.mrf.mxu3 }
 0x1e5   : > { %v800_v5 = vadd.f32 %v3222_v37, %v799_v54 }
 0x1eb   : > { %1032 = vmatmul.bf16.gmra.mxu2 %v840_v6 }
 0x1ec   : > { %v801_v60 = vpop.f32.mrf.mxu3 }
 0x1ed   : > { %v802_v6 = vadd.f32 %v3222_v37, %v801_v60  ;;  %v2843_v60 = vld [vmem:[%s3921_s9 + $0x38] sm:$0xff] }
 0x1ee   : > { %1918 = vmatpush.bf16.msrb.mxu0 %v2843_v60 }
 0x1ef   : > { %v847_v10 = vpack.c.bf16 %v802_v6, %v800_v5 }
 0x1f4   : > { %v804_v4 = vpop.f32.mrf.mxu3 }
 0x1f5   : > { %v805_v20 = vadd.f32 %v3222_v37, %v804_v4 }
 0x1fb   : > { %1037 = vmatmul.bf16.gmra.mxu2 %v841_v11 }
 0x1fc   : > { %v806_v15 = vpop.f32.mrf.mxu3 }
 0x1fd   : > { %v807_v21 = vadd.f32 %v3222_v37, %v806_v15 }
 0x204   : > { %v809_v19 = vpop.f32.mrf.mxu3 }
 0x20b   : > { %1042 = vmatmul.bf16.gmra.mxu2 %v842_v17 }
 0x21b   : > { %1047 = vmatmul.bf16.gmra.mxu2 %v843_v22 }
 0x21e   : > { %v1008_v25 = vpop.f32.mrf.mxu2 }
 0x21f   : > { %v1009_v30 = vadd.f32 %v3278_v53, %v1008_v25  ;;  %v848_v25 = vpack.c.bf16 %v807_v21, %v805_v20 }
 0x221   : > { %v1120_v34 = vmax.f32 %v1009_v30, 0.0  ;;  %v811_v30 = vpop.f32.mrf.mxu3 }
 0x222   : > { %v812_v33 = vadd.f32 %v3222_v37, %v811_v30 }
 0x226   : > { %v1010_v31 = vpop.f32.mrf.mxu2 }
 0x227   : > { %v1011_v32 = vadd.f32 %v3278_v53, %v1010_v31 }
 0x229   : > { %v1121_v35 = vmax.f32 %v1011_v32, 0.0  ;;  %v810_v32 = vadd.f32 %v3222_v37, %v809_v19 }
 0x22b   : > { %1052 = vmatmul.bf16.gmra.mxu2 %v844_v36  ;;  %v3389_v38 = vpack.c.bf16 %v1121_v35, %v1120_v34  ;;  %v849_v40 = vpack.c.bf16 %v812_v33, %v810_v32 }
 0x22e   : > { %v1013_v39 = vpop.f32.mrf.mxu2 }
 0x22f   : > { %v1014_v43 = vadd.f32 %v3278_v53, %v1013_v39  ;;  %v814_v39 = vpop.f32.mrf.mxu3 }
 0x231   : > { %v1122_v47 = vmax.f32 %v1014_v43, 0.0  ;;  %v2832_v43 = vld [vmem:[%s3919_s7 + $0x20] sm:$0xff] }
 0x232   : > { %1588 = vmatpush.bf16.msrb.mxu3 %v2832_v43 }
 0x236   : > { %v1015_v44 = vpop.f32.mrf.mxu2 }
 0x237   : > { %v1016_v46 = vadd.f32 %v3278_v53, %v1015_v44 }
 0x239   : > { %v1123_v48 = vmax.f32 %v1016_v46, 0.0 }
 0x23b   : > { %1057 = vmatmul.bf16.gmra.mxu2 %v845_v49  ;;  %v3401_v52 = vpack.c.bf16 %v1123_v48, %v1122_v47  ;;  %v816_v47 = vpop.f32.mrf.mxu3  ;;  %v815_v48 = vadd.f32 %v3222_v37, %v814_v39 }
 0x23c   : > { %v817_v49 = vadd.f32 %v3222_v37, %v816_v47  ;;  %v2831_v37 = vld [vmem:[%s3919_s7 + $0x18] sm:$0xff] }
 0x23d   : > { %1589 = vmatpush.bf16.msrb.mxu3 %v2831_v37 }
 0x23e   : > { %v1018_v55 = vpop.f32.mrf.mxu2 }
 0x23f   : > { %v1019_v58 = vadd.f32 %v3278_v53, %v1018_v55  ;;  %v850_v55 = vpack.c.bf16 %v817_v49, %v815_v48 }
 0x241   : > { %v1124_v62 = vmax.f32 %v1019_v58, 0.0 }
 0x246   : > { %v1020_v59 = vpop.f32.mrf.mxu2 }
 0x247   : > { %v1021_v61 = vadd.f32 %v3278_v53, %v1020_v59 }
 0x249   : > { %v1125_v0 = vmax.f32 %v1021_v61, 0.0 }
 0x24b   : > { %1062 = vmatmul.bf16.gmra.mxu2 %v846_v1  ;;  %v3407_v2 = vpack.c.bf16 %v1125_v0, %v1124_v62  ;;  %v948_v1 = vpop.f32.mrf.mxu1 }
 0x24e   : > { %v1023_v3 = vpop.f32.mrf.mxu2 }
 0x24f   : > { %v1024_v7 = vadd.f32 %v3278_v53, %v1023_v3 }
 0x251   : > { %v1126_v11 = vmax.f32 %v1024_v7, 0.0 }
 0x253   : > { %v950_v7 = vpop.f32.mrf.mxu1 }
 0x254   : > { %v951_v39 = vadd.f32 %v3278_v53, %v950_v7 }
 0x256   : > { %v1025_v8 = vpop.f32.mrf.mxu2  ;;  %v1097_v43 = vmax.f32 %v951_v39, 0.0 }
 0x257   : > { %v1026_v9 = vadd.f32 %v3278_v53, %v1025_v8 }
 0x259   : > { %v1127_v12 = vmax.f32 %v1026_v9, 0.0 }
 0x25b   : > { %1067 = vmatmul.bf16.gmra.mxu2 %v847_v10  ;;  %v3419_v17 = vpack.c.bf16 %v1127_v12, %v1126_v11  ;;  %v953_v15 = vpop.f32.mrf.mxu1 }
 0x25e   : > { %v1028_v18 = vpop.f32.mrf.mxu2 }
 0x25f   : > { %v1029_v22 = vadd.f32 %v3278_v53, %v1028_v18  ;;  %v2830_v18 = vld [vmem:[%s3919_s7 + $0x10] sm:$0xff] }
 0x260   : > { %1590 = vmatpush.bf16.msrb.mxu3 %v2830_v18 }
 0x261   : > { %v1128_v26 = vmax.f32 %v1029_v22, 0.0 }
 0x263   : > { %v955_v20 = vpop.f32.mrf.mxu1 }
 0x266   : > { %v1030_v23 = vpop.f32.mrf.mxu2 }
 0x267   : > { %v1031_v24 = vadd.f32 %v3278_v53, %v1030_v23 }
 0x269   : > { %v1129_v27 = vmax.f32 %v1031_v24, 0.0 }
 0x26b   : > { %1072 = vmatmul.bf16.gmra.mxu2 %v848_v25  ;;  %v3425_v28 = vpack.c.bf16 %v1129_v27, %v1128_v26  ;;  %v958_v26 = vpop.f32.mrf.mxu1 }
 0x26e   : > { %v1033_v31 = vpop.f32.mrf.mxu2 }
 0x26f   : > { %v1034_v34 = vadd.f32 %v3278_v53, %v1033_v31 }
 0x271   : > { %v1130_v41 = vmax.f32 %v1034_v34, 0.0 }
 0x273   : > { %v960_v34 = vpop.f32.mrf.mxu1 }
 0x276   : > { %v1035_v35 = vpop.f32.mrf.mxu2 }
 0x277   : > { %v1036_v36 = vadd.f32 %v3278_v53, %v1035_v35 }
 0x279   : > { %v1131_v42 = vmax.f32 %v1036_v36, 0.0 }
 0x27b   : > { %1077 = vmatmul.bf16.gmra.mxu2 %v849_v40  ;;  %v3434_v44 = vpack.c.bf16 %v1131_v42, %v1130_v41  ;;  %v2841_v40 = vld [vmem:[%s3921_s9 + $0x28] sm:$0xff]  ;;  %v949_v41 = vadd.f32 %v3278_v53, %v948_v1  ;;  %v963_v42 = vpop.f32.mrf.mxu1 }
 0x27d   : > { %v1096_v47 = vmax.f32 %v949_v41, 0.0 }
 0x27e   : > { %v1038_v46 = vpop.f32.mrf.mxu2 }
 0x27f   : > { %v1039_v50 = vadd.f32 %v3278_v53, %v1038_v46 }
 0x281   : > { %v1132_v56 = vmax.f32 %v1039_v50, 0.0 }
 0x286   : > { %v1040_v51 = vpop.f32.mrf.mxu2 }
 0x287   : > { %v1041_v54 = vadd.f32 %v3278_v53, %v1040_v51  ;;  %v1156_v51 = vpack.c.bf16 %v1097_v43, %v1096_v47 }
 0x289   : > { %v1133_v57 = vmax.f32 %v1041_v54, 0.0 }
 0x28b   : > { %1082 = vmatmul.bf16.gmra.mxu2 %v850_v55  ;;  %v3440_v58 = vpack.c.bf16 %v1133_v57, %v1132_v56  ;;  %v965_v55 = vpop.f32.mrf.mxu1  ;;  %v956_v57 = vadd.f32 %v3278_v53, %v955_v20 }
 0x28d   : > { %v1099_v60 = vmax.f32 %v956_v57, 0.0 }
 0x28e   : > { %v1043_v59 = vpop.f32.mrf.mxu2 }
 0x28f   : > { %v1044_v61 = vadd.f32 %v3278_v53, %v1043_v59  ;;  %v954_v59 = vadd.f32 %v3278_v53, %v953_v15  ;;  %v959_v15 = vadd.f32 %v3278_v53, %v958_v26  ;;  %v964_v26 = vadd.f32 %v3278_v53, %v963_v42 }
 0x291   : > { %v1134_v3 = vmax.f32 %v1044_v61, 0.0 }
 0x293   : > { %v968_v1 = vpop.f32.mrf.mxu1 }
 0x294   : > { %v969_v42 = vadd.f32 %v3278_v53, %v968_v1  ;;  %v3523_v1 = vld [vmem:[%s3918_s6] ss:$0 sm:$0xff] }
 0x296   : > { %v1045_v62 = vpop.f32.mrf.mxu2 }
 0x297   : > { %v1046_v0 = vadd.f32 %v3278_v53, %v1045_v62  ;;  %v1098_v62 = vmax.f32 %v954_v59, 0.0 }
 0x299   : > { %v1135_v4 = vmax.f32 %v1046_v0, 0.0 }
 0x29b   : > { %1260 = vmatmul.bf16.vlgmr.msrb.gmra.mxu2 %v3285_v63  ;;  %v3451_v5 = vpack.c.bf16 %v1135_v4, %v1134_v3  ;;  %v2842_v63 = vld [vmem:[%s3921_s9 + $0x30] sm:$0xff] }
 0x29c   : > { %1919 = vmatpush.bf16.msrb.mxu0 %v2842_v63 }
 0x29e   : > { %v1048_v6 = vpop.f32.mrf.mxu2 }
 0x29f   : > { %v1049_v8 = vadd.f32 %v3278_v53, %v1048_v6  ;;  %v1157_v6 = vpack.c.bf16 %v1099_v60, %v1098_v62  ;;  %v2839_v60 = vld [vmem:[%s3921_s9 + $0x18] sm:$0xff] }
 0x2a0   : > { %1920 = vmatpush.bf16.msrb.mxu0 %v2841_v40 }
 0x2a1   : > { %v1136_v11 = vmax.f32 %v1049_v8, 0.0 }
 0x2a6   : > { %v1050_v9 = vpop.f32.mrf.mxu2 }
 0x2a7   : > { %v1051_v10 = vadd.f32 %v3278_v53, %v1050_v9  ;;  %v961_v9 = vadd.f32 %v3278_v53, %v960_v34 }
 0x2a9   : > { %v1137_v12 = vmax.f32 %v1051_v10, 0.0  ;;  %v2828_v10 = vld [vmem:[%s3919_s7] sm:$0xff] }
 0x2ab   : > { %1265 = vmatmul.bf16.gmra.mxu2 %v3294_v14  ;;  %v3456_v13 = vpack.c.bf16 %v1137_v12, %v1136_v11  ;;  %v2840_v11 = vld [vmem:[%s3921_s9 + $0x20] sm:$0xff]  ;;  %v970_v12 = vpop.f32.mrf.mxu1 }
 0x2ac   : > { %1921 = vmatpush.bf16.msrb.mxu0 %v2840_v11  ;;  %v971_v47 = vadd.f32 %v3278_v53, %v970_v12 }
 0x2ae   : > { %v1053_v16 = vpop.f32.mrf.mxu2 }
 0x2af   : > { %v1054_v19 = vadd.f32 %v3278_v53, %v1053_v16  ;;  %v1101_v16 = vmax.f32 %v961_v9, 0.0 }
 0x2b0   : > { %1922 = vmatpush.bf16.msrb.mxu0 %v2839_v60 }
 0x2b1   : > { %v1138_v22 = vmax.f32 %v1054_v19, 0.0  ;;  %v1100_v19 = vmax.f32 %v959_v15, 0.0 }
 0x2b6   : > { %v1055_v21 = vpop.f32.mrf.mxu2 }
 0x2b7   : > { %v1056_v14 = vadd.f32 %v3278_v53, %v1055_v21 }
 0x2b9   : > { %v1139_v23 = vmax.f32 %v1056_v14, 0.0 }
 0x2bb   : > { %1270 = vmatmul.bf16.gmra.mxu2 %v3303_v29  ;;  %v3467_v24 = vpack.c.bf16 %v1139_v23, %v1138_v22  ;;  %v2829_v29 = vld [vmem:[%s3919_s7 + $0x8] sm:$0xff]  ;;  %v1158_v22 = vpack.c.bf16 %v1101_v16, %v1100_v19 }
 0x2bc   : > { %1591 = vmatpush.bf16.msrb.mxu3 %v2829_v29 }
 0x2be   : > { %v1058_v25 = vpop.f32.mrf.mxu2 }
 0x2bf   : > { %v1059_v27 = vadd.f32 %v3278_v53, %v1058_v25  ;;  %v973_v25 = vpop.f32.mrf.mxu1 }
 0x2c0   : > { %1592 = vmatpush.bf16.msrb.mxu3 %v2828_v10 }
 0x2c1   : > { %v1140_v32 = vmax.f32 %v1059_v27, 0.0 }
 0x2c6   : > { %v1060_v30 = vpop.f32.mrf.mxu2 }
 0x2c7   : > { %v1061_v31 = vadd.f32 %v3278_v53, %v1060_v30  ;;  %v966_v30 = vadd.f32 %v3278_v53, %v965_v55 }
 0x2c9   : > { %v1141_v33 = vmax.f32 %v1061_v31, 0.0  ;;  %v1103_v31 = vmax.f32 %v966_v30, 0.0 }
 0x2cb   : > { %1275 = vmatmul.bf16.gmra.mxu2 %v3312_v45  ;;  %v3472_v35 = vpack.c.bf16 %v1141_v33, %v1140_v32  ;;  %v975_v33 = vpop.f32.mrf.mxu1 }
 0x2ce   : > { %v1063_v36 = vpop.f32.mrf.mxu2 }
 0x2cf   : > { %v1064_v45 = vadd.f32 %v3278_v53, %v1063_v36  ;;  %v1102_v36 = vmax.f32 %v964_v26, 0.0 }
 0x2d1   : > { %v1142_v49 = vmax.f32 %v1064_v45, 0.0  ;;  %v1159_v41 = vpack.c.bf16 %v1103_v31, %v1102_v36  ;;  %v2838_v36 = vld [vmem:[%s3921_s9 + $0x10] sm:$0xff] }
 0x2d2   : > { %1923 = vmatpush.bf16.msrb.mxu0 %v2838_v36 }
 0x2d6   : > { %v1065_v46 = vpop.f32.mrf.mxu2 }
 0x2d7   : > { %v1066_v48 = vadd.f32 %v3278_v53, %v1065_v46  ;;  %v978_v46 = vpop.f32.mrf.mxu1 }
 0x2d9   : > { %v1143_v50 = vmax.f32 %v1066_v48, 0.0  ;;  %v1105_v48 = vmax.f32 %v971_v47, 0.0 }
 0x2db   : > { %1280 = vmatmul.bf16.gmra.mxu2 %v1156_v51  ;;  %v3484_v54 = vpack.c.bf16 %v1143_v50, %v1142_v49  ;;  %v1104_v51 = vmax.f32 %v969_v42, 0.0 }
 0x2dd   : > { %v1160_v59 = vpack.c.bf16 %v1105_v48, %v1104_v51 }
 0x2de   : > { %v1068_v56 = vpop.f32.mrf.mxu2 }
 0x2df   : > { %v1069_v37 = vadd.f32 %v3278_v53, %v1068_v56 }
 0x2e1   : > { %v1144_v3 = vmax.f32 %v1069_v37, 0.0  ;;  %v980_v37 = vpop.f32.mrf.mxu1 }
 0x2e6   : > { %v1070_v61 = vpop.f32.mrf.mxu2 }
 0x2e7   : > { %v1071_v0 = vadd.f32 %v3278_v53, %v1070_v61 }
 0x2e9   : > { %v1145_v4 = vmax.f32 %v1071_v0, 0.0  ;;  %v976_v0 = vadd.f32 %v3278_v53, %v975_v33 }
 0x2eb   : > { %1285 = vmatmul.bf16.gmra.mxu2 %v1157_v6  ;;  %v3490_v7 = vpack.c.bf16 %v1145_v4, %v1144_v3  ;;  %v974_v3 = vadd.f32 %v3278_v53, %v973_v25  ;;  %v983_v4 = vpop.f32.mrf.mxu1  ;;  %v1107_v6 = vmax.f32 %v976_v0, 0.0 }
 0x2ed   : > { %v1106_v10 = vmax.f32 %v974_v3, 0.0 }
 0x2ee   : > { %v1073_v8 = vpop.f32.mrf.mxu2 }
 0x2ef   : > { %v1074_v63 = vadd.f32 %v3278_v53, %v1073_v8  ;;  %v1161_v16 = vpack.c.bf16 %v1107_v6, %v1106_v10 }
 0x2f1   : > { %v1146_v21 = vmax.f32 %v1074_v63, 0.0 }
 0x2f3   : > { %v985_v19 = vpop.f32.mrf.mxu1 }
 0x2f6   : > { %v1075_v18 = vpop.f32.mrf.mxu2 }
 0x2f7   : > { %v1076_v20 = vadd.f32 %v3278_v53, %v1075_v18  ;;  %v2851_v18 = vld [vmem:[%s3923_s11 + $0x38] sm:$0xff] }
 0x2f8   : > { %2251 = vmatpush.bf16.msrb.mxu1 %v2851_v18 }
 0x2f9   : > { %v1147_v14 = vmax.f32 %v1076_v20, 0.0 }
 0x2fb   : > { %1290 = vmatmul.bf16.gmra.mxu2 %v1158_v22  ;;  %v3502_v23 = vpack.c.bf16 %v1147_v14, %v1146_v21  ;;  %v981_v21 = vadd.f32 %v3278_v53, %v980_v37  ;;  %v979_v14 = vadd.f32 %v3278_v53, %v978_v46  ;;  %v988_v31 = vpop.f32.mrf.mxu1 }
 0x2fd   : > { %v1109_v22 = vmax.f32 %v981_v21, 0.0  ;;  %v1108_v30 = vmax.f32 %v979_v14, 0.0 }
 0x2fe   : > { %v1078_v27 = vpop.f32.mrf.mxu2 }
 0x2ff   : > { %v1079_v32 = vadd.f32 %v3278_v53, %v1078_v27 }
 0x301   : > { %v1148_v29 = vmax.f32 %v1079_v32, 0.0 }
 0x306   : > { %v1080_v34 = vpop.f32.mrf.mxu2 }
 0x307   : > { %v1081_v39 = vadd.f32 %v3278_v53, %v1080_v34  ;;  %v1162_v34 = vpack.c.bf16 %v1109_v22, %v1108_v30 }
 0x309   : > { %v1149_v40 = vmax.f32 %v1081_v39, 0.0 }
 0x30b   : > { %1295 = vmatmul.bf16.gmra.mxu2 %v1159_v41  ;;  %v3508_v43 = vpack.c.bf16 %v1149_v40, %v1148_v29  ;;  %v986_v40 = vadd.f32 %v3278_v53, %v985_v19  ;;  %v990_v41 = vpop.f32.mrf.mxu1 }
 0x30c   : > { %v991_v37 = vadd.f32 %v3278_v53, %v990_v41 }
 0x30d   : > { %v1111_v46 = vmax.f32 %v986_v40, 0.0 }
 0x30e   : > { %v1083_v45 = vpop.f32.mrf.mxu2  ;;  %v1113_v0 = vmax.f32 %v991_v37, 0.0 }
 0x30f   : > { %v1084_v49 = vadd.f32 %v3278_v53, %v1083_v45  ;;  %v984_v45 = vadd.f32 %v3278_v53, %v983_v4 }
 0x311   : > { %v1150_v56 = vmax.f32 %v1084_v49, 0.0  ;;  %v1110_v48 = vmax.f32 %v984_v45, 0.0 }
 0x316   : > { %v1085_v50 = vpop.f32.mrf.mxu2 }
 0x317   : > { %v1086_v55 = vadd.f32 %v3278_v53, %v1085_v50 }
 0x319   : > { %v1151_v57 = vmax.f32 %v1086_v55, 0.0  ;;  %v1163_v55 = vpack.c.bf16 %v1111_v46, %v1110_v48 }
 0x31b   : > { %1300 = vmatmul.bf16.gmra.mxu2 %v1160_v59  ;;  %v3517_v61 = vpack.c.bf16 %v1151_v57, %v1150_v56  ;;  %v2850_v57 = vld [vmem:[%s3923_s11 + $0x30] sm:$0xff]  ;;  %v993_v59 = vpop.f32.mrf.mxu1 }
 0x31c   : > { %2252 = vmatpush.bf16.msrb.mxu1 %v2850_v57  ;;  %v3066_v57 = vld [vmem:[%s3916_s4] ss:$0 sm:$0xff] }
 0x31e   : > { %v1261_v62 = vpop.f32.mrf.mxu2 }
 0x31f   : > { %v1262_v8 = vadd.f32 %v3523_v1, %v1261_v62  ;;  %v989_v62 = vadd.f32 %v3278_v53, %v988_v31 }
 0x321   : > { %v1421_v12 = vmax.f32 %v1262_v8, 0.0  ;;  %v1112_v8 = vmax.f32 %v989_v62, 0.0 }
 0x323   : > { %v995_v4 = vpop.f32.mrf.mxu1 }
 0x324   : > { %v996_v19 = vadd.f32 %v3278_v53, %v995_v4 }
 0x326   : > { %v1263_v9 = vpop.f32.mrf.mxu2  ;;  %v1115_v21 = vmax.f32 %v996_v19, 0.0 }
 0x327   : > { %v1264_v11 = vadd.f32 %v3523_v1, %v1263_v9 }
 0x329   : > { %v1422_v15 = vmax.f32 %v1264_v11, 0.0 }
 0x32b   : > { %v1485_v63 = vpack.c.bf16 %v1422_v15, %v1421_v12  ;;  %1305 = vmatmul.bf16.gmra.mxu2 %v1161_v16  ;;  %v1164_v12 = vpack.c.bf16 %v1113_v0, %v1112_v8  ;;  %v2837_v16 = vld [vmem:[%s3921_s9 + $0x8] sm:$0xff]  ;;  %v998_v18 = vpop.f32.mrf.mxu1 }
 0x32c   : > { %1924 = vmatpush.bf16.msrb.mxu0 %v2837_v16 }
 0x32d   : > { %1593 = vmatmul.bf16.vlgmr.msrb.gmra.mxu3 %v1485_v63 }
 0x32e   : > { %v1266_v20 = vpop.f32.mrf.mxu2 }
 0x32f   : > { %v1267_v25 = vadd.f32 %v3523_v1, %v1266_v20  ;;  %v994_v20 = vadd.f32 %v3278_v53, %v993_v59 }
 0x331   : > { %v1423_v32 = vmax.f32 %v1267_v25, 0.0  ;;  %v1114_v25 = vmax.f32 %v994_v20, 0.0 }
 0x333   : > { %v1165_v31 = vpack.c.bf16 %v1115_v21, %v1114_v25 }
 0x336   : > { %v1268_v27 = vpop.f32.mrf.mxu2 }
 0x337   : > { %v1269_v26 = vadd.f32 %v3523_v1, %v1268_v27 }
 0x339   : > { %v1424_v33 = vmax.f32 %v1269_v26, 0.0 }
 0x33b   : > { %1310 = vmatmul.bf16.gmra.mxu2 %v1162_v34  ;;  %v1486_v39 = vpack.c.bf16 %v1424_v33, %v1423_v32  ;;  %v1000_v32 = vpop.f32.mrf.mxu1  ;;  %v2849_v34 = vld [vmem:[%s3923_s11 + $0x28] sm:$0xff] }
 0x33c   : > { %2253 = vmatpush.bf16.msrb.mxu1 %v2849_v34 }
 0x33d   : > { %1598 = vmatmul.bf16.gmra.mxu3 %v1486_v39  ;;  %v1001_v39 = vadd.f32 %v3278_v53, %v1000_v32 }
 0x33e   : > { %v1271_v29 = vpop.f32.mrf.mxu2 }
 0x33f   : > { %v1272_v47 = vadd.f32 %v3523_v1, %v1271_v29  ;;  %v999_v29 = vadd.f32 %v3278_v53, %v998_v18  ;;  %v1117_v41 = vmax.f32 %v1001_v39, 0.0 }
 0x341   : > { %v1425_v50 = vmax.f32 %v1272_v47, 0.0  ;;  %v1116_v47 = vmax.f32 %v999_v29, 0.0 }
 0x343   : > { %v1003_v40 = vpop.f32.mrf.mxu1 }
 0x346   : > { %v1273_v42 = vpop.f32.mrf.mxu2 }
 0x347   : > { %v1274_v49 = vadd.f32 %v3523_v1, %v1273_v42 }
 0x349   : > { %v1426_v51 = vmax.f32 %v1274_v49, 0.0 }
 0x34b   : > { %1315 = vmatmul.bf16.gmra.mxu2 %v1163_v55  ;;  %v1487_v56 = vpack.c.bf16 %v1426_v51, %v1425_v50  ;;  %v1166_v50 = vpack.c.bf16 %v1117_v41, %v1116_v47  ;;  %v2836_v55 = vld [vmem:[%s3921_s9] sm:$0xff] }
 0x34c   : > { %1925 = vmatpush.bf16.msrb.mxu0 %v2836_v55 }
 0x34d   : > { %1603 = vmatmul.bf16.gmra.mxu3 %v1487_v56  ;;  %v1005_v56 = vpop.f32.mrf.mxu1 }
 0x34e   : > { %v1276_v60 = vpop.f32.mrf.mxu2  ;;  %v1006_v59 = vadd.f32 %v3066_v57, %v1005_v56 }
 0x34f   : > { %v1277_v3 = vadd.f32 %v3523_v1, %v1276_v60  ;;  %v1004_v60 = vadd.f32 %v3066_v57, %v1003_v40 }
 0x350   : > { %v1119_v37 = vmax.f32 %v1006_v59, 0.0 }
 0x351   : > { %v1427_v10 = vmax.f32 %v1277_v3, 0.0  ;;  %v1118_v3 = vmax.f32 %v1004_v60, 0.0 }
 0x356   : > { %v1278_v6 = vpop.f32.mrf.mxu2 }
 0x357   : > { %v1279_v9 = vadd.f32 %v3523_v1, %v1278_v6 }
 0x359   : > { %v1428_v11 = vmax.f32 %v1279_v9, 0.0  ;;  %v1167_v9 = vpack.c.bf16 %v1119_v37, %v1118_v3  ;;  %v2846_v3 = vld [vmem:[%s3923_s11 + $0x10] sm:$0xff] }
 0x35b   : > { %1320 = vmatmul.bf16.gmra.mxu2 %v1164_v12  ;;  %v1488_v15 = vpack.c.bf16 %v1428_v11, %v1427_v10  ;;  %v2848_v11 = vld [vmem:[%s3923_s11 + $0x20] sm:$0xff] }
 0x35c   : > { %2254 = vmatpush.bf16.msrb.mxu1 %v2848_v11 }
 0x35d   : > { %1608 = vmatmul.bf16.gmra.mxu3 %v1488_v15 }
 0x35e   : > { %v1281_v63 = vpop.f32.mrf.mxu2 }
 0x35f   : > { %v1282_v14 = vadd.f32 %v3523_v1, %v1281_v63 }
 0x361   : > { %v1429_v30 = vmax.f32 %v1282_v14, 0.0 }
 0x366   : > { %v1283_v22 = vpop.f32.mrf.mxu2 }
 0x367   : > { %v1284_v27 = vadd.f32 %v3523_v1, %v1283_v22 }
 0x369   : > { %v1430_v26 = vmax.f32 %v1284_v27, 0.0 }
 0x36b   : > { %1325 = vmatmul.bf16.gmra.mxu2 %v1165_v31  ;;  %v1489_v33 = vpack.c.bf16 %v1430_v26, %v1429_v30  ;;  %v2847_v31 = vld [vmem:[%s3923_s11 + $0x18] sm:$0xff] }
 0x36c   : > { %2255 = vmatpush.bf16.msrb.mxu1 %v2847_v31 }
 0x36d   : > { %1613 = vmatmul.bf16.gmra.mxu3 %v1489_v33  ;;  %v3586_v33 = vld [vmem:[%s3920_s8] ss:$0 sm:$0xff] }
 0x36e   : > { %v1286_v36 = vpop.f32.mrf.mxu2 }
 0x36f   : > { %v1287_v45 = vadd.f32 %v3523_v1, %v1286_v36 }
 0x370   : > { %2256 = vmatpush.bf16.msrb.mxu1 %v2846_v3 }
 0x371   : > { %v1431_v48 = vmax.f32 %v1287_v45, 0.0 }
 0x376   : > { %v1288_v46 = vpop.f32.mrf.mxu2 }
 0x377   : > { %v1289_v42 = vadd.f32 %v3523_v1, %v1288_v46 }
 0x379   : > { %v1432_v49 = vmax.f32 %v1289_v42, 0.0 }
 0x37b   : > { %1330 = vmatmul.bf16.gmra.mxu2 %v1166_v50  ;;  %v1490_v51 = vpack.c.bf16 %v1432_v49, %v1431_v48 }
 0x37d   : > { %1618 = vmatmul.bf16.gmra.mxu3 %v1490_v51 }
 0x37e   : > { %v1291_v53 = vpop.f32.mrf.mxu2 }
 0x37f   : > { %v1292_v62 = vadd.f32 %v3523_v1, %v1291_v53 }
 0x381   : > { %v1433_v6 = vmax.f32 %v1292_v62, 0.0 }
 0x386   : > { %v1293_v0 = vpop.f32.mrf.mxu2 }
 0x387   : > { %v1294_v4 = vadd.f32 %v3523_v1, %v1293_v0 }
 0x389   : > { %v1434_v8 = vmax.f32 %v1294_v4, 0.0 }
 0x38b   : > { %1335 = vmatmul.bf16.gmra.mxu2 %v1167_v9  ;;  %v1491_v10 = vpack.c.bf16 %v1434_v8, %v1433_v6 }
 0x38d   : > { %1623 = vmatmul.bf16.gmra.mxu3 %v1491_v10 }
 0x38e   : > { %v1296_v12 = vpop.f32.mrf.mxu2 }
 0x38f   : > { %v1297_v15 = vadd.f32 %v3523_v1, %v1296_v12 }
 0x391   : > { %v1435_v18 = vmax.f32 %v1297_v15, 0.0 }
 0x396   : > { %v1298_v16 = vpop.f32.mrf.mxu2 }
 0x397   : > { %v1299_v63 = vadd.f32 %v3523_v1, %v1298_v16 }
 0x399   : > { %v1436_v19 = vmax.f32 %v1299_v63, 0.0 }
 0x39b   : > { %1340 = vmatmul.bf16.gmra.mxu2 %v3389_v38  ;;  %v1492_v20 = vpack.c.bf16 %v1436_v19, %v1435_v18 }
 0x39d   : > { %1628 = vmatmul.bf16.gmra.mxu3 %v1492_v20 }
 0x39e   : > { %v1301_v21 = vpop.f32.mrf.mxu2 }
 0x39f   : > { %v1302_v14 = vadd.f32 %v3523_v1, %v1301_v21 }
 0x3a1   : > { %v1437_v27 = vmax.f32 %v1302_v14, 0.0 }
 0x3a6   : > { %v1303_v22 = vpop.f32.mrf.mxu2 }
 0x3a7   : > { %v1304_v25 = vadd.f32 %v3523_v1, %v1303_v22 }
 0x3a9   : > { %v1438_v30 = vmax.f32 %v1304_v25, 0.0 }
 0x3ab   : > { %1345 = vmatmul.bf16.gmra.mxu2 %v3401_v52  ;;  %v1493_v26 = vpack.c.bf16 %v1438_v30, %v1437_v27 }
 0x3ad   : > { %1633 = vmatmul.bf16.gmra.mxu3 %v1493_v26 }
 0x3ae   : > { %v1306_v38 = vpop.f32.mrf.mxu2 }
 0x3af   : > { %v1307_v34 = vadd.f32 %v3523_v1, %v1306_v38 }
 0x3b0   : > { %v1594_v32 = vpop.f32.mrf.mxu3 }
 0x3b1   : > { %v1595_v39 = vadd.f32 %v3586_v33, %v1594_v32  ;;  %v1439_v40 = vmax.f32 %v1307_v34, 0.0 }
 0x3b3   : > { %v1754_v46 = vmax.f32 %v1595_v39, 0.0 }
 0x3b6   : > { %v1308_v36 = vpop.f32.mrf.mxu2 }
 0x3b7   : > { %v1309_v52 = vadd.f32 %v3523_v1, %v1308_v36 }
 0x3b8   : > { %v1596_v29 = vpop.f32.mrf.mxu3 }
 0x3b9   : > { %v1440_v41 = vmax.f32 %v1309_v52, 0.0  ;;  %v1597_v45 = vadd.f32 %v3586_v33, %v1596_v29  ;;  %v2845_v52 = vld [vmem:[%s3923_s11 + $0x8] sm:$0xff] }
 0x3ba   : > { %2257 = vmatpush.bf16.msrb.mxu1 %v2845_v52 }
 0x3bb   : > { %v1755_v47 = vmax.f32 %v1597_v45, 0.0  ;;  %1350 = vmatmul.bf16.gmra.mxu2 %v3407_v2  ;;  %v1494_v42 = vpack.c.bf16 %v1440_v41, %v1439_v40 }
 0x3bd   : > { %v1818_v48 = vpack.c.bf16 %v1755_v47, %v1754_v46  ;;  %1638 = vmatmul.bf16.gmra.mxu3 %v1494_v42 }
 0x3be   : > { %v1311_v49 = vpop.f32.mrf.mxu2 }
 0x3bf   : > { %1926 = vmatmul.bf16.vlgmr.msrb.gmra.mxu0 %v1818_v48  ;;  %v1312_v51 = vadd.f32 %v3523_v1, %v1311_v49 }
 0x3c0   : > { %v1599_v50 = vpop.f32.mrf.mxu3 }
 0x3c1   : > { %v1600_v56 = vadd.f32 %v3586_v33, %v1599_v50  ;;  %v1441_v59 = vmax.f32 %v1312_v51, 0.0 }
 0x3c3   : > { %v1756_v62 = vmax.f32 %v1600_v56, 0.0 }
 0x3c6   : > { %v1313_v55 = vpop.f32.mrf.mxu2 }
 0x3c7   : > { %v1314_v53 = vadd.f32 %v3523_v1, %v1313_v55 }
 0x3c8   : > { %v1601_v57 = vpop.f32.mrf.mxu3 }
 0x3c9   : > { %v1442_v60 = vmax.f32 %v1314_v53, 0.0  ;;  %v1602_v37 = vadd.f32 %v3586_v33, %v1601_v57 }
 0x3cb   : > { %v1757_v2 = vmax.f32 %v1602_v37, 0.0  ;;  %1355 = vmatmul.bf16.gmra.mxu2 %v3419_v17  ;;  %v1495_v0 = vpack.c.bf16 %v1442_v60, %v1441_v59 }
 0x3cd   : > { %1643 = vmatmul.bf16.gmra.mxu3 %v1495_v0  ;;  %v1819_v4 = vpack.c.bf16 %v1757_v2, %v1756_v62 }
 0x3ce   : > { %v1316_v6 = vpop.f32.mrf.mxu2 }
 0x3cf   : > { %1931 = vmatmul.bf16.gmra.mxu0 %v1819_v4  ;;  %v1317_v9 = vadd.f32 %v3523_v1, %v1316_v6 }
 0x3d0   : > { %v1604_v8 = vpop.f32.mrf.mxu3 }
 0x3d1   : > { %v1605_v11 = vadd.f32 %v3586_v33, %v1604_v8  ;;  %v1443_v17 = vmax.f32 %v1317_v9, 0.0 }
 0x3d3   : > { %v1758_v18 = vmax.f32 %v1605_v11, 0.0 }
 0x3d6   : > { %v1318_v10 = vpop.f32.mrf.mxu2 }
 0x3d7   : > { %v1319_v12 = vadd.f32 %v3523_v1, %v1318_v10  ;;  %v2844_v10 = vld [vmem:[%s3923_s11] sm:$0xff] }
 0x3d8   : > { %v1606_v15 = vpop.f32.mrf.mxu3  ;;  %2258 = vmatpush.bf16.msrb.mxu1 %v2844_v10 }
 0x3d9   : > { %v1444_v16 = vmax.f32 %v1319_v12, 0.0  ;;  %v1607_v63 = vadd.f32 %v3586_v33, %v1606_v15 }
 0x3db   : > { %v1759_v19 = vmax.f32 %v1607_v63, 0.0  ;;  %1360 = vmatmul.bf16.gmra.mxu2 %v3425_v28  ;;  %v1496_v20 = vpack.c.bf16 %v1444_v16, %v1443_v17 }
 0x3dd   : > { %1648 = vmatmul.bf16.gmra.mxu3 %v1496_v20  ;;  %v1820_v21 = vpack.c.bf16 %v1759_v19, %v1758_v18 }
 0x3de   : > { %v1321_v14 = vpop.f32.mrf.mxu2 }
 0x3df   : > { %1936 = vmatmul.bf16.gmra.mxu0 %v1820_v21  ;;  %v1322_v25 = vadd.f32 %v3523_v1, %v1321_v14 }
 0x3e0   : > { %v1609_v22 = vpop.f32.mrf.mxu3 }
 0x3e1   : > { %v1610_v30 = vadd.f32 %v3586_v33, %v1609_v22  ;;  %v1445_v38 = vmax.f32 %v1322_v25, 0.0 }
 0x3e3   : > { %v1760_v36 = vmax.f32 %v1610_v30, 0.0 }
 0x3e6   : > { %v1323_v27 = vpop.f32.mrf.mxu2 }
 0x3e7   : > { %v1324_v26 = vadd.f32 %v3523_v1, %v1323_v27 }
 0x3e8   : > { %v1611_v31 = vpop.f32.mrf.mxu3 }
 0x3e9   : > { %v1446_v32 = vmax.f32 %v1324_v26, 0.0  ;;  %v1612_v34 = vadd.f32 %v3586_v33, %v1611_v31 }
 0x3eb   : > { %v1761_v28 = vmax.f32 %v1612_v34, 0.0  ;;  %1365 = vmatmul.bf16.gmra.mxu2 %v3434_v44  ;;  %v1497_v39 = vpack.c.bf16 %v1446_v32, %v1445_v38 }
 0x3ed   : > { %1653 = vmatmul.bf16.gmra.mxu3 %v1497_v39  ;;  %v1821_v29 = vpack.c.bf16 %v1761_v28, %v1760_v36 }
 0x3ee   : > { %v1326_v40 = vpop.f32.mrf.mxu2 }
 0x3ef   : > { %1941 = vmatmul.bf16.gmra.mxu0 %v1821_v29  ;;  %v1327_v45 = vadd.f32 %v3523_v1, %v1326_v40 }
 0x3f0   : > { %v1614_v41 = vpop.f32.mrf.mxu3 }
 0x3f1   : > { %v1615_v47 = vadd.f32 %v3586_v33, %v1614_v41  ;;  %v1447_v44 = vmax.f32 %v1327_v45, 0.0 }
 0x3f3   : > { %v1762_v51 = vmax.f32 %v1615_v47, 0.0 }
 0x3f6   : > { %v1328_v46 = vpop.f32.mrf.mxu2 }
 0x3f7   : > { %v1329_v42 = vadd.f32 %v3523_v1, %v1328_v46 }
 0x3f8   : > { %v1616_v48 = vpop.f32.mrf.mxu3 }
 0x3f9   : > { %v1448_v49 = vmax.f32 %v1329_v42, 0.0  ;;  %v1617_v50 = vadd.f32 %v3586_v33, %v1616_v48 }
 0x3fb   : > { %v1763_v55 = vmax.f32 %v1617_v50, 0.0  ;;  %1370 = vmatmul.bf16.gmra.mxu2 %v3440_v58  ;;  %v1498_v56 = vpack.c.bf16 %v1448_v49, %v1447_v44 }
 0x3fd   : > { %1658 = vmatmul.bf16.gmra.mxu3 %v1498_v56  ;;  %v1822_v53 = vpack.c.bf16 %v1763_v55, %v1762_v51 }
 0x3fe   : > { %v1331_v57 = vpop.f32.mrf.mxu2 }
 0x3ff   : > { %1946 = vmatmul.bf16.gmra.mxu0 %v1822_v53  ;;  %v1332_v60 = vadd.f32 %v3523_v1, %v1331_v57 }
 0x400   : > { %v1619_v59 = vpop.f32.mrf.mxu3 }
 0x401   : > { %v1620_v62 = vadd.f32 %v3586_v33, %v1619_v59  ;;  %v1449_v3 = vmax.f32 %v1332_v60, 0.0 }
 0x403   : > { %v1764_v8 = vmax.f32 %v1620_v62, 0.0 }
 0x406   : > { %v1333_v37 = vpop.f32.mrf.mxu2 }
 0x407   : > { %v1334_v2 = vadd.f32 %v3523_v1, %v1333_v37  ;;  %v3645_v37 = vld [vmem:[%s3922_s10] ss:$0 sm:$0xff] }
 0x408   : > { %v1621_v0 = vpop.f32.mrf.mxu3 }
 0x409   : > { %v1450_v4 = vmax.f32 %v1334_v2, 0.0  ;;  %v1622_v6 = vadd.f32 %v3586_v33, %v1621_v0 }
 0x40b   : > { %v1765_v58 = vmax.f32 %v1622_v6, 0.0  ;;  %1375 = vmatmul.bf16.gmra.mxu2 %v3451_v5  ;;  %v1499_v9 = vpack.c.bf16 %v1450_v4, %v1449_v3 }
 0x40d   : > { %1663 = vmatmul.bf16.gmra.mxu3 %v1499_v9  ;;  %v1823_v11 = vpack.c.bf16 %v1765_v58, %v1764_v8 }
 0x40e   : > { %v1336_v12 = vpop.f32.mrf.mxu2 }
 0x40f   : > { %1951 = vmatmul.bf16.gmra.mxu0 %v1823_v11  ;;  %v1337_v17 = vadd.f32 %v3523_v1, %v1336_v12 }
 0x410   : > { %v1624_v15 = vpop.f32.mrf.mxu3 }
 0x411   : > { %v1625_v63 = vadd.f32 %v3586_v33, %v1624_v15  ;;  %v1451_v5 = vmax.f32 %v1337_v17, 0.0 }
 0x413   : > { %v1766_v14 = vmax.f32 %v1625_v63, 0.0 }
 0x416   : > { %v1338_v16 = vpop.f32.mrf.mxu2 }
 0x417   : > { %v1339_v18 = vadd.f32 %v3523_v1, %v1338_v16 }
 0x418   : > { %v1626_v19 = vpop.f32.mrf.mxu3 }
 0x419   : > { %v1452_v20 = vmax.f32 %v1339_v18, 0.0  ;;  %v1627_v21 = vadd.f32 %v3586_v33, %v1626_v19 }
 0x41b   : > { %v1767_v22 = vmax.f32 %v1627_v21, 0.0  ;;  %1380 = vmatmul.bf16.gmra.mxu2 %v3456_v13  ;;  %v1500_v25 = vpack.c.bf16 %v1452_v20, %v1451_v5 }
 0x41d   : > { %1668 = vmatmul.bf16.gmra.mxu3 %v1500_v25  ;;  %v1824_v27 = vpack.c.bf16 %v1767_v22, %v1766_v14 }
 0x41e   : > { %v1341_v30 = vpop.f32.mrf.mxu2 }
 0x41f   : > { %1956 = vmatmul.bf16.gmra.mxu0 %v1824_v27  ;;  %v1342_v31 = vadd.f32 %v3523_v1, %v1341_v30 }
 0x420   : > { %v1629_v26 = vpop.f32.mrf.mxu3 }
 0x421   : > { %v1630_v32 = vadd.f32 %v3586_v33, %v1629_v26  ;;  %v1453_v28 = vmax.f32 %v1342_v31, 0.0 }
 0x423   : > { %v1768_v29 = vmax.f32 %v1630_v32, 0.0 }
 0x426   : > { %v1343_v38 = vpop.f32.mrf.mxu2 }
 0x427   : > { %v1344_v34 = vadd.f32 %v3523_v1, %v1343_v38 }
 0x428   : > { %v1631_v36 = vpop.f32.mrf.mxu3 }
 0x429   : > { %v1454_v39 = vmax.f32 %v1344_v34, 0.0  ;;  %v1632_v52 = vadd.f32 %v3586_v33, %v1631_v36 }
 0x42b   : > { %v1769_v13 = vmax.f32 %v1632_v52, 0.0  ;;  %1385 = vmatmul.bf16.gmra.mxu2 %v3467_v24  ;;  %v1501_v40 = vpack.c.bf16 %v1454_v39, %v1453_v28 }
 0x42d   : > { %1673 = vmatmul.bf16.gmra.mxu3 %v1501_v40  ;;  %v1825_v41 = vpack.c.bf16 %v1769_v13, %v1768_v29 }
 0x42e   : > { %v1346_v45 = vpop.f32.mrf.mxu2 }
 0x42f   : > { %1961 = vmatmul.bf16.gmra.mxu0 %v1825_v41  ;;  %v1347_v47 = vadd.f32 %v3523_v1, %v1346_v45 }
 0x430   : > { %v1634_v46 = vpop.f32.mrf.mxu3 }
 0x431   : > { %v1635_v48 = vadd.f32 %v3586_v33, %v1634_v46  ;;  %v1455_v50 = vmax.f32 %v1347_v47, 0.0 }
 0x433   : > { %v1770_v56 = vmax.f32 %v1635_v48, 0.0 }
 0x436   : > { %v1348_v42 = vpop.f32.mrf.mxu2 }
 0x437   : > { %v1349_v44 = vadd.f32 %v3523_v1, %v1348_v42 }
 0x438   : > { %v1636_v49 = vpop.f32.mrf.mxu3 }
 0x439   : > { %v1456_v51 = vmax.f32 %v1349_v44, 0.0  ;;  %v1637_v55 = vadd.f32 %v3586_v33, %v1636_v49 }
 0x43b   : > { %v1771_v24 = vmax.f32 %v1637_v55, 0.0  ;;  %1390 = vmatmul.bf16.gmra.mxu2 %v3472_v35  ;;  %v1502_v53 = vpack.c.bf16 %v1456_v51, %v1455_v50 }
 0x43c   : > { %v1927_v57 = vpop.f32.mrf.mxu0 }
 0x43d   : > { %1678 = vmatmul.bf16.gmra.mxu3 %v1502_v53  ;;  %v1826_v59 = vpack.c.bf16 %v1771_v24, %v1770_v56  ;;  %v1928_v2 = vadd.f32 %v3645_v37, %v1927_v57 }
 0x43e   : > { %v1351_v60 = vpop.f32.mrf.mxu2 }
 0x43f   : > { %1966 = vmatmul.bf16.gmra.mxu0 %v1826_v59  ;;  %v1352_v3 = vadd.f32 %v3523_v1, %v1351_v60  ;;  %v2087_v6 = vmax.f32 %v1928_v2, 0.0 }
 0x440   : > { %v1639_v62 = vpop.f32.mrf.mxu3 }
 0x441   : > { %v1640_v8 = vadd.f32 %v3586_v33, %v1639_v62  ;;  %v1457_v11 = vmax.f32 %v1352_v3, 0.0 }
 0x443   : > { %v1772_v16 = vmax.f32 %v1640_v8, 0.0 }
 0x444   : > { %v1929_v0 = vpop.f32.mrf.mxu0 }
 0x445   : > { %v1930_v4 = vadd.f32 %v3645_v37, %v1929_v0 }
 0x446   : > { %v1353_v35 = vpop.f32.mrf.mxu2 }
 0x447   : > { %v2088_v58 = vmax.f32 %v1930_v4, 0.0  ;;  %v1354_v9 = vadd.f32 %v3523_v1, %v1353_v35 }
 0x448   : > { %v1641_v10 = vpop.f32.mrf.mxu3 }
 0x449   : > { %v2151_v12 = vpack.c.bf16 %v2088_v58, %v2087_v6  ;;  %v1458_v15 = vmax.f32 %v1354_v9, 0.0  ;;  %v1642_v17 = vadd.f32 %v3586_v33, %v1641_v10 }
 0x44b   : > { %v1773_v63 = vmax.f32 %v1642_v17, 0.0  ;;  %1395 = vmatmul.bf16.gmra.mxu2 %v3484_v54  ;;  %2259 = vmatmul.bf16.vlgmr.msrb.gmra.mxu1 %v2151_v12  ;;  %v1503_v18 = vpack.c.bf16 %v1458_v15, %v1457_v11 }
 0x44c   : > { %v1932_v19 = vpop.f32.mrf.mxu0 }
 0x44d   : > { %1683 = vmatmul.bf16.gmra.mxu3 %v1503_v18  ;;  %v1827_v5 = vpack.c.bf16 %v1773_v63, %v1772_v16  ;;  %v1933_v14 = vadd.f32 %v3645_v37, %v1932_v19 }
 0x44e   : > { %v1356_v20 = vpop.f32.mrf.mxu2 }
 0x44f   : > { %1971 = vmatmul.bf16.gmra.mxu0 %v1827_v5  ;;  %v1357_v25 = vadd.f32 %v3523_v1, %v1356_v20  ;;  %v2089_v26 = vmax.f32 %v1933_v14, 0.0 }
 0x450   : > { %v1644_v21 = vpop.f32.mrf.mxu3 }
 0x451   : > { %v1645_v31 = vadd.f32 %v3586_v33, %v1644_v21  ;;  %v1459_v34 = vmax.f32 %v1357_v25, 0.0 }
 0x453   : > { %v1774_v52 = vmax.f32 %v1645_v31, 0.0 }
 0x454   : > { %v1934_v22 = vpop.f32.mrf.mxu0 }
 0x455   : > { %v1935_v27 = vadd.f32 %v3645_v37, %v1934_v22 }
 0x456   : > { %v1358_v30 = vpop.f32.mrf.mxu2 }
 0x457   : > { %v2090_v54 = vmax.f32 %v1935_v27, 0.0  ;;  %v1359_v38 = vadd.f32 %v3523_v1, %v1358_v30 }
 0x458   : > { %v1646_v32 = vpop.f32.mrf.mxu3 }
 0x459   : > { %v1460_v36 = vmax.f32 %v1359_v38, 0.0  ;;  %v1647_v28 = vadd.f32 %v3586_v33, %v1646_v32  ;;  %v2152_v39 = vpack.c.bf16 %v2090_v54, %v2089_v26 }
 0x45b   : > { %v1775_v29 = vmax.f32 %v1647_v28, 0.0  ;;  %1400 = vmatmul.bf16.gmra.mxu2 %v3490_v7  ;;  %2264 = vmatmul.bf16.gmra.mxu1 %v2152_v39  ;;  %v1504_v13 = vpack.c.bf16 %v1460_v36, %v1459_v34 }
 0x45c   : > { %v1937_v40 = vpop.f32.mrf.mxu0 }
 0x45d   : > { %1688 = vmatmul.bf16.gmra.mxu3 %v1504_v13  ;;  %v1828_v41 = vpack.c.bf16 %v1775_v29, %v1774_v52  ;;  %v1938_v47 = vadd.f32 %v3645_v37, %v1937_v40 }
 0x45e   : > { %v1361_v45 = vpop.f32.mrf.mxu2 }
 0x45f   : > { %1976 = vmatmul.bf16.gmra.mxu0 %v1828_v41  ;;  %v1362_v48 = vadd.f32 %v3523_v1, %v1361_v45  ;;  %v2091_v50 = vmax.f32 %v1938_v47, 0.0 }
 0x460   : > { %v1649_v46 = vpop.f32.mrf.mxu3 }
 0x461   : > { %v1650_v51 = vadd.f32 %v3586_v33, %v1649_v46  ;;  %v1461_v24 = vmax.f32 %v1362_v48, 0.0 }
 0x463   : > { %v1776_v60 = vmax.f32 %v1650_v51, 0.0 }
 0x464   : > { %v1939_v42 = vpop.f32.mrf.mxu0 }
 0x465   : > { %v1940_v44 = vadd.f32 %v3645_v37, %v1939_v42 }
 0x466   : > { %v1363_v49 = vpop.f32.mrf.mxu2 }
 0x467   : > { %v2092_v7 = vmax.f32 %v1940_v44, 0.0  ;;  %v1364_v55 = vadd.f32 %v3523_v1, %v1363_v49 }
 0x468   : > { %v1651_v56 = vpop.f32.mrf.mxu3 }
 0x469   : > { %v1462_v53 = vmax.f32 %v1364_v55, 0.0  ;;  %v1652_v57 = vadd.f32 %v3586_v33, %v1651_v56  ;;  %v2153_v59 = vpack.c.bf16 %v2092_v7, %v2091_v50 }
 0x46b   : > { %v1505_v62 = vpack.c.bf16 %v1462_v53, %v1461_v24  ;;  %v1777_v2 = vmax.f32 %v1652_v57, 0.0  ;;  %1405 = vmatmul.bf16.gmra.mxu2 %v3502_v23  ;;  %2269 = vmatmul.bf16.gmra.mxu1 %v2153_v59 }
 0x46c   : > { %v1942_v0 = vpop.f32.mrf.mxu0 }
 0x46d   : > { %1693 = vmatmul.bf16.gmra.mxu3 %v1505_v62  ;;  %v1829_v3 = vpack.c.bf16 %v1777_v2, %v1776_v60  ;;  %v1943_v6 = vadd.f32 %v3645_v37, %v1942_v0 }
 0x46e   : > { %v1366_v4 = vpop.f32.mrf.mxu2 }
 0x46f   : > { %1981 = vmatmul.bf16.gmra.mxu0 %v1829_v3  ;;  %v1367_v58 = vadd.f32 %v3523_v1, %v1366_v4  ;;  %v2093_v11 = vmax.f32 %v1943_v6, 0.0 }
 0x470   : > { %v1654_v35 = vpop.f32.mrf.mxu3 }
 0x471   : > { %v1655_v12 = vadd.f32 %v3586_v33, %v1654_v35  ;;  %v1463_v16 = vmax.f32 %v1367_v58, 0.0 }
 0x473   : > { %v1778_v5 = vmax.f32 %v1655_v12, 0.0 }
 0x474   : > { %v1944_v8 = vpop.f32.mrf.mxu0 }
 0x475   : > { %v1945_v9 = vadd.f32 %v3645_v37, %v1944_v8 }
 0x476   : > { %v1368_v10 = vpop.f32.mrf.mxu2 }
 0x477   : > { %v2094_v15 = vmax.f32 %v1945_v9, 0.0  ;;  %v1369_v23 = vadd.f32 %v3523_v1, %v1368_v10 }
 0x478   : > { %v1656_v17 = vpop.f32.mrf.mxu3 }
 0x479   : > { %v1464_v63 = vmax.f32 %v1369_v23, 0.0  ;;  %v1657_v18 = vadd.f32 %v3586_v33, %v1656_v17  ;;  %v2154_v19 = vpack.c.bf16 %v2094_v15, %v2093_v11 }
 0x47b   : > { %v1506_v20 = vpack.c.bf16 %v1464_v63, %v1463_v16  ;;  %v1779_v21 = vmax.f32 %v1657_v18, 0.0  ;;  %1410 = vmatmul.bf16.gmra.mxu2 %v3508_v43  ;;  %2274 = vmatmul.bf16.gmra.mxu1 %v2154_v19 }
 0x47c   : > { %v1947_v14 = vpop.f32.mrf.mxu0 }
 0x47d   : > { %1698 = vmatmul.bf16.gmra.mxu3 %v1506_v20  ;;  %v1830_v22 = vpack.c.bf16 %v1779_v21, %v1778_v5  ;;  %v1948_v30 = vadd.f32 %v3645_v37, %v1947_v14 }
 0x47e   : > { %v1371_v25 = vpop.f32.mrf.mxu2 }
 0x47f   : > { %1986 = vmatmul.bf16.gmra.mxu0 %v1830_v22  ;;  %v1372_v31 = vadd.f32 %v3523_v1, %v1371_v25  ;;  %v2095_v32 = vmax.f32 %v1948_v30, 0.0 }
 0x480   : > { %v1659_v27 = vpop.f32.mrf.mxu3 }
 0x481   : > { %v1660_v34 = vadd.f32 %v3586_v33, %v1659_v27  ;;  %v1465_v39 = vmax.f32 %v1372_v31, 0.0 }
 0x483   : > { %v1780_v40 = vmax.f32 %v1660_v34, 0.0 }
 0x484   : > { %v1949_v26 = vpop.f32.mrf.mxu0 }
 0x485   : > { %v1950_v54 = vadd.f32 %v3645_v37, %v1949_v26 }
 0x486   : > { %v1373_v38 = vpop.f32.mrf.mxu2 }
 0x487   : > { %v2096_v36 = vmax.f32 %v1950_v54, 0.0  ;;  %v1374_v43 = vadd.f32 %v3523_v1, %v1373_v38 }
 0x488   : > { %v1661_v28 = vpop.f32.mrf.mxu3 }
 0x489   : > { %v1466_v52 = vmax.f32 %v1374_v43, 0.0  ;;  %v1662_v29 = vadd.f32 %v3586_v33, %v1661_v28  ;;  %v2155_v13 = vpack.c.bf16 %v2096_v36, %v2095_v32 }
 0x48b   : > { %v1507_v41 = vpack.c.bf16 %v1466_v52, %v1465_v39  ;;  %v1781_v45 = vmax.f32 %v1662_v29, 0.0  ;;  %1415 = vmatmul.bf16.gmra.mxu2 %v3517_v61  ;;  %2279 = vmatmul.bf16.gmra.mxu1 %v2155_v13 }
 0x48c   : > { %v1952_v46 = vpop.f32.mrf.mxu0 }
 0x48d   : > { %1703 = vmatmul.bf16.gmra.mxu3 %v1507_v41  ;;  %v1831_v47 = vpack.c.bf16 %v1781_v45, %v1780_v40  ;;  %v1953_v44 = vadd.f32 %v3645_v37, %v1952_v46 }
 0x48e   : > { %v1376_v42 = vpop.f32.mrf.mxu2 }
 0x48f   : > { %1991 = vmatmul.bf16.gmra.mxu0 %v1831_v47  ;;  %v1377_v50 = vadd.f32 %v3523_v1, %v1376_v42  ;;  %v2097_v55 = vmax.f32 %v1953_v44, 0.0 }
 0x490   : > { %v1664_v48 = vpop.f32.mrf.mxu3 }
 0x491   : > { %v1665_v56 = vadd.f32 %v3586_v33, %v1664_v48  ;;  %v1467_v57 = vmax.f32 %v1377_v50, 0.0 }
 0x493   : > { %v1782_v2 = vmax.f32 %v1665_v56, 0.0 }
 0x494   : > { %v1954_v49 = vpop.f32.mrf.mxu0 }
 0x495   : > { %v1955_v51 = vadd.f32 %v3645_v37, %v1954_v49 }
 0x496   : > { %v1378_v7 = vpop.f32.mrf.mxu2 }
 0x497   : > { %v2098_v24 = vmax.f32 %v1955_v51, 0.0  ;;  %v1379_v61 = vadd.f32 %v3523_v1, %v1378_v7 }
 0x498   : > { %v1666_v53 = vpop.f32.mrf.mxu3 }
 0x499   : > { %v1468_v59 = vmax.f32 %v1379_v61, 0.0  ;;  %v1667_v60 = vadd.f32 %v3586_v33, %v1666_v53  ;;  %v2156_v62 = vpack.c.bf16 %v2098_v24, %v2097_v55 }
 0x49b   : > { %v1508_v0 = vpack.c.bf16 %v1468_v59, %v1467_v57  ;;  %v1783_v3 = vmax.f32 %v1667_v60, 0.0  ;;  %2284 = vmatmul.bf16.gmra.mxu1 %v2156_v62 }
 0x49c   : > { %v1957_v4 = vpop.f32.mrf.mxu0 }
 0x49d   : > { %1708 = vmatmul.bf16.gmra.mxu3 %v1508_v0  ;;  %v1832_v35 = vpack.c.bf16 %v1783_v3, %v1782_v2  ;;  %v1958_v58 = vadd.f32 %v3645_v37, %v1957_v4 }
 0x49e   : > { %v1381_v6 = vpop.f32.mrf.mxu2 }
 0x49f   : > { %1996 = vmatmul.bf16.gmra.mxu0 %v1832_v35  ;;  %v1382_v10 = vadd.f32 %v3523_v1, %v1381_v6  ;;  %v2099_v15 = vmax.f32 %v1958_v58, 0.0  ;;  %v3709_v58 = vld [vmem:[%s3924_s12] ss:$0 sm:$0xff] }
 0x4a0   : > { %v1669_v8 = vpop.f32.mrf.mxu3 }
 0x4a1   : > { %v1670_v23 = vadd.f32 %v3586_v33, %v1669_v8  ;;  %v1469_v18 = vmax.f32 %v1382_v10, 0.0 }
 0x4a3   : > { %v1784_v21 = vmax.f32 %v1670_v23, 0.0 }
 0x4a4   : > { %v1959_v9 = vpop.f32.mrf.mxu0 }
 0x4a5   : > { %v1960_v11 = vadd.f32 %v3645_v37, %v1959_v9 }
 0x4a6   : > { %v1383_v12 = vpop.f32.mrf.mxu2 }
 0x4a7   : > { %v2100_v17 = vmax.f32 %v1960_v11, 0.0  ;;  %v1384_v16 = vadd.f32 %v3523_v1, %v1383_v12 }
 0x4a8   : > { %v1671_v63 = vpop.f32.mrf.mxu3 }
 0x4a9   : > { %v1470_v19 = vmax.f32 %v1384_v16, 0.0  ;;  %v1672_v5 = vadd.f32 %v3586_v33, %v1671_v63  ;;  %v2157_v20 = vpack.c.bf16 %v2100_v17, %v2099_v15  ;;  %v3723_v63 = vld [vmem:[%s3918_s6] ss:$0 sm:$0xff] }
 0x4ab   : > { %v1509_v14 = vpack.c.bf16 %v1470_v19, %v1469_v18  ;;  %v1785_v22 = vmax.f32 %v1672_v5, 0.0  ;;  %2289 = vmatmul.bf16.gmra.mxu1 %v2157_v20 }
 0x4ac   : > { %v1962_v25 = vpop.f32.mrf.mxu0 }
 0x4ad   : > { %1713 = vmatmul.bf16.gmra.mxu3 %v1509_v14  ;;  %v1833_v27 = vpack.c.bf16 %v1785_v22, %v1784_v21  ;;  %v1963_v31 = vadd.f32 %v3645_v37, %v1962_v25 }
 0x4ae   : > { %v1386_v30 = vpop.f32.mrf.mxu2 }
 0x4af   : > { %2001 = vmatmul.bf16.gmra.mxu0 %v1833_v27  ;;  %v1387_v38 = vadd.f32 %v3523_v1, %v1386_v30  ;;  %v2101_v36 = vmax.f32 %v1963_v31, 0.0 }
 0x4b0   : > { %v1674_v26 = vpop.f32.mrf.mxu3 }
 0x4b1   : > { %v1675_v43 = vadd.f32 %v3586_v33, %v1674_v26  ;;  %v1471_v29 = vmax.f32 %v1387_v38, 0.0 }
 0x4b3   : > { %v1786_v45 = vmax.f32 %v1675_v43, 0.0 }
 0x4b4   : > { %v1964_v54 = vpop.f32.mrf.mxu0 }
 0x4b5   : > { %v1965_v32 = vadd.f32 %v3645_v37, %v1964_v54 }
 0x4b6   : > { %v1388_v34 = vpop.f32.mrf.mxu2 }
 0x4b7   : > { %v2102_v28 = vmax.f32 %v1965_v32, 0.0  ;;  %v1389_v39 = vadd.f32 %v3523_v1, %v1388_v34 }
 0x4b8   : > { %v1676_v52 = vpop.f32.mrf.mxu3 }
 0x4b9   : > { %v1472_v13 = vmax.f32 %v1389_v39, 0.0  ;;  %v1677_v40 = vadd.f32 %v3586_v33, %v1676_v52  ;;  %v2158_v41 = vpack.c.bf16 %v2102_v28, %v2101_v36 }
 0x4bb   : > { %v1510_v46 = vpack.c.bf16 %v1472_v13, %v1471_v29  ;;  %v1787_v47 = vmax.f32 %v1677_v40, 0.0  ;;  %2294 = vmatmul.bf16.gmra.mxu1 %v2158_v41 }
 0x4bc   : > { %v1967_v42 = vpop.f32.mrf.mxu0 }
 0x4bd   : > { %1718 = vmatmul.bf16.gmra.mxu3 %v1510_v46  ;;  %v1834_v48 = vpack.c.bf16 %v1787_v47, %v1786_v45  ;;  %v1968_v50 = vadd.f32 %v3645_v37, %v1967_v42 }
 0x4be   : > { %v1391_v44 = vpop.f32.mrf.mxu2 }
 0x4bf   : > { %2006 = vmatmul.bf16.gmra.mxu0 %v1834_v48  ;;  %v1392_v7 = vadd.f32 %v3523_v1, %v1391_v44  ;;  %v2103_v24 = vmax.f32 %v1968_v50, 0.0 }
 0x4c0   : > { %v1679_v49 = vpop.f32.mrf.mxu3 }
 0x4c1   : > { %v1680_v61 = vadd.f32 %v3586_v33, %v1679_v49  ;;  %v1473_v62 = vmax.f32 %v1392_v7, 0.0 }
 0x4c3   : > { %v1788_v4 = vmax.f32 %v1680_v61, 0.0 }
 0x4c4   : > { %v1969_v51 = vpop.f32.mrf.mxu0 }
 0x4c5   : > { %v1970_v55 = vadd.f32 %v3645_v37, %v1969_v51 }
 0x4c6   : > { %v1393_v56 = vpop.f32.mrf.mxu2 }
 0x4c7   : > { %v2104_v53 = vmax.f32 %v1970_v55, 0.0  ;;  %v1394_v57 = vadd.f32 %v3523_v1, %v1393_v56 }
 0x4c8   : > { %v1681_v59 = vpop.f32.mrf.mxu3  ;;  %v2260_v60 = vpop.f32.mrf.mxu1 }
 0x4c9   : > { %v1474_v2 = vmax.f32 %v1394_v57, 0.0  ;;  %v1682_v0 = vadd.f32 %v3586_v33, %v1681_v59  ;;  %v2159_v3 = vpack.c.bf16 %v2104_v53, %v2103_v24  ;;  %v2261_v12 = vadd.f32 %v3709_v58, %v2260_v60 }
 0x4cb   : > { %v1511_v35 = vpack.c.bf16 %v1474_v2, %v1473_v62  ;;  %v1789_v6 = vmax.f32 %v1682_v0, 0.0  ;;  %2299 = vmatmul.bf16.gmra.mxu1 %v2159_v3 }
 0x4cc   : > { %v1972_v8 = vpop.f32.mrf.mxu0 }
 0x4cd   : > { %1723 = vmatmul.bf16.gmra.mxu3 %v1511_v35  ;;  %v1835_v1 = vpack.c.bf16 %v1789_v6, %v1788_v4  ;;  %v1973_v23 = vadd.f32 %v3645_v37, %v1972_v8 }
 0x4ce   : > { %v1396_v9 = vpop.f32.mrf.mxu2 }
 0x4cf   : > { %2011 = vmatmul.bf16.gmra.mxu0 %v1835_v1  ;;  %v1397_v18 = vadd.f32 %v3723_v63, %v1396_v9  ;;  %v2105_v20 = vmax.f32 %v1973_v23, 0.0 }
 0x4d0   : > { %v1684_v10 = vpop.f32.mrf.mxu3  ;;  %v2262_v11 = vpop.f32.mrf.mxu1 }
 0x4d1   : > { %v2263_v15 = vadd.f32 %v3709_v58, %v2262_v11  ;;  %v1685_v21 = vadd.f32 %v3586_v33, %v1684_v10  ;;  %v1475_v30 = vmax.f32 %v1397_v18, 0.0 }
 0x4d3   : > { %v2855_v17 = vpack.c.bf16 %v2263_v15, %v2261_v12  ;;  %v1790_v38 = vmax.f32 %v1685_v21, 0.0 }
 0x4d4   : > { %v1974_v16 = vpop.f32.mrf.mxu0 }
 0x4d5   : > { %2856 = vst [vmem:[%s3717_s26] sm:$0xff] %v2855_v17   ;;  %v1975_v19 = vadd.f32 %v3645_v37, %v1974_v16 }
 0x4d6   : > { %v1398_v5 = vpop.f32.mrf.mxu2 }
 0x4d7   : > { %v2106_v14 = vmax.f32 %v1975_v19, 0.0  ;;  %v1399_v22 = vadd.f32 %v3723_v63, %v1398_v5 }
 0x4d8   : > { %v1686_v25 = vpop.f32.mrf.mxu3  ;;  %v2265_v27 = vpop.f32.mrf.mxu1 }
 0x4d9   : > { %v1476_v26 = vmax.f32 %v1399_v22, 0.0  ;;  %v1687_v31 = vadd.f32 %v3586_v33, %v1686_v25  ;;  %v2160_v54 = vpack.c.bf16 %v2106_v14, %v2105_v20  ;;  %v2266_v29 = vadd.f32 %v3709_v58, %v2265_v27 }
 0x4db   : > { %v1512_v32 = vpack.c.bf16 %v1476_v26, %v1475_v30  ;;  %v1791_v34 = vmax.f32 %v1687_v31, 0.0  ;;  %2304 = vmatmul.bf16.gmra.mxu1 %v2160_v54 }
 0x4dc   : > { %v1977_v36 = vpop.f32.mrf.mxu0 }
 0x4dd   : > { %1728 = vmatmul.bf16.gmra.mxu3 %v1512_v32  ;;  %v1836_v43 = vpack.c.bf16 %v1791_v34, %v1790_v38  ;;  %v1978_v40 = vadd.f32 %v3645_v37, %v1977_v36 }
 0x4de   : > { %v1401_v28 = vpop.f32.mrf.mxu2 }
 0x4df   : > { %2016 = vmatmul.bf16.gmra.mxu0 %v1836_v43  ;;  %v1402_v46 = vadd.f32 %v3723_v63, %v1401_v28  ;;  %v2107_v48 = vmax.f32 %v1978_v40, 0.0 }
 0x4e0   : > { %v1689_v39 = vpop.f32.mrf.mxu3  ;;  %v2267_v52 = vpop.f32.mrf.mxu1 }
 0x4e1   : > { %v2268_v13 = vadd.f32 %v3709_v58, %v2267_v52  ;;  %v1690_v44 = vadd.f32 %v3586_v33, %v1689_v39  ;;  %v1477_v55 = vmax.f32 %v1402_v46, 0.0 }
 0x4e3   : > { %v2860_v41 = vpack.c.bf16 %v2268_v13, %v2266_v29  ;;  %v1792_v53 = vmax.f32 %v1690_v44, 0.0 }
 0x4e4   : > { %v1979_v45 = vpop.f32.mrf.mxu0 }
 0x4e5   : > { %3012 = vst [vmem:[%s3717_s26 + $0x8] sm:$0xff] %v2860_v41   ;;  %v1980_v47 = vadd.f32 %v3645_v37, %v1979_v45 }
 0x4e6   : > { %v1403_v42 = vpop.f32.mrf.mxu2 }
 0x4e7   : > { %v2108_v49 = vmax.f32 %v1980_v47, 0.0  ;;  %v1404_v50 = vadd.f32 %v3723_v63, %v1403_v42 }
 0x4e8   : > { %v1691_v51 = vpop.f32.mrf.mxu3  ;;  %v2270_v7 = vpop.f32.mrf.mxu1 }
 0x4e9   : > { %v1478_v56 = vmax.f32 %v1404_v50, 0.0  ;;  %v1692_v24 = vadd.f32 %v3586_v33, %v1691_v51  ;;  %v2161_v61 = vpack.c.bf16 %v2108_v49, %v2107_v48  ;;  %v2271_v4 = vadd.f32 %v3709_v58, %v2270_v7 }
 0x4eb   : > { %v1513_v57 = vpack.c.bf16 %v1478_v56, %v1477_v55  ;;  %v1793_v59 = vmax.f32 %v1692_v24, 0.0  ;;  %2309 = vmatmul.bf16.gmra.mxu1 %v2161_v61 }
 0x4ec   : > { %v1982_v60 = vpop.f32.mrf.mxu0 }
 0x4ed   : > { %1733 = vmatmul.bf16.gmra.mxu3 %v1513_v57  ;;  %v1837_v62 = vpack.c.bf16 %v1793_v59, %v1792_v53  ;;  %v1983_v6 = vadd.f32 %v3645_v37, %v1982_v60 }
 0x4ee   : > { %v1406_v2 = vpop.f32.mrf.mxu2 }
 0x4ef   : > { %2021 = vmatmul.bf16.gmra.mxu0 %v1837_v62  ;;  %v1407_v9 = vadd.f32 %v3723_v63, %v1406_v2  ;;  %v2109_v12 = vmax.f32 %v1983_v6, 0.0 }
 0x4f0   : > { %v1694_v0 = vpop.f32.mrf.mxu3  ;;  %v2272_v3 = vpop.f32.mrf.mxu1 }
 0x4f1   : > { %v2273_v35 = vadd.f32 %v3709_v58, %v2272_v3  ;;  %v1695_v15 = vadd.f32 %v3586_v33, %v1694_v0  ;;  %v1479_v19 = vmax.f32 %v1407_v9, 0.0 }
 0x4f3   : > { %v2865_v8 = vpack.c.bf16 %v2273_v35, %v2271_v4  ;;  %v1794_v14 = vmax.f32 %v1695_v15, 0.0  ;;  %v3767_v4 = vld [vmem:[%s3920_s8] ss:$0 sm:$0xff] }
 0x4f4   : > { %v1984_v1 = vpop.f32.mrf.mxu0 }
 0x4f5   : > { %3013 = vst [vmem:[%s3717_s26 + $0x10] sm:$0xff] %v2865_v8   ;;  %v1985_v10 = vadd.f32 %v3645_v37, %v1984_v1 }
 0x4f6   : > { %v1408_v11 = vpop.f32.mrf.mxu2 }
 0x4f7   : > { %v2110_v23 = vmax.f32 %v1985_v10, 0.0  ;;  %v1409_v17 = vadd.f32 %v3723_v63, %v1408_v11 }
 0x4f8   : > { %v1696_v16 = vpop.f32.mrf.mxu3  ;;  %v2275_v18 = vpop.f32.mrf.mxu1 }
 0x4f9   : > { %v1480_v5 = vmax.f32 %v1409_v17, 0.0  ;;  %v1697_v20 = vadd.f32 %v3586_v33, %v1696_v16  ;;  %v2162_v21 = vpack.c.bf16 %v2110_v23, %v2109_v12  ;;  %v2276_v38 = vadd.f32 %v3709_v58, %v2275_v18 }
 0x4fb   : > { %v1514_v22 = vpack.c.bf16 %v1480_v5, %v1479_v19  ;;  %v1795_v25 = vmax.f32 %v1697_v20, 0.0  ;;  %2314 = vmatmul.bf16.gmra.mxu1 %v2162_v21 }
 0x4fc   : > { %v1987_v27 = vpop.f32.mrf.mxu0 }
 0x4fd   : > { %v1838_v30 = vpack.c.bf16 %v1795_v25, %v1794_v14  ;;  %1738 = vmatmul.bf16.gmra.mxu3 %v1514_v22  ;;  %v1988_v34 = vadd.f32 %v3645_v37, %v1987_v27 }
 0x4fe   : > { %v1411_v26 = vpop.f32.mrf.mxu2 }
 0x4ff   : > { %2026 = vmatmul.bf16.gmra.mxu0 %v1838_v30  ;;  %v1412_v28 = vadd.f32 %v3723_v63, %v1411_v26  ;;  %v2111_v29 = vmax.f32 %v1988_v34, 0.0 }
 0x500   : > { %v1699_v31 = vpop.f32.mrf.mxu3  ;;  %v2277_v54 = vpop.f32.mrf.mxu1 }
 0x501   : > { %v2278_v32 = vadd.f32 %v3709_v58, %v2277_v54  ;;  %v1700_v13 = vadd.f32 %v3586_v33, %v1699_v31  ;;  %v1481_v47 = vmax.f32 %v1412_v28, 0.0 }
 0x503   : > { %v2870_v36 = vpack.c.bf16 %v2278_v32, %v2276_v38  ;;  %v1796_v49 = vmax.f32 %v1700_v13, 0.0 }
 0x504   : > { %v1989_v43 = vpop.f32.mrf.mxu0 }
 0x505   : > { %3014 = vst [vmem:[%s3717_s26 + $0x18] sm:$0xff] %v2870_v36   ;;  %v1990_v39 = vadd.f32 %v3645_v37, %v1989_v43 }
 0x506   : > { %v1413_v52 = vpop.f32.mrf.mxu2 }
 0x507   : > { %v2112_v40 = vmax.f32 %v1990_v39, 0.0  ;;  %v1414_v41 = vadd.f32 %v3723_v63, %v1413_v52 }
 0x508   : > { %v1701_v45 = vpop.f32.mrf.mxu3  ;;  %v2280_v46 = vpop.f32.mrf.mxu1 }
 0x509   : > { %v1482_v42 = vmax.f32 %v1414_v41, 0.0  ;;  %v1702_v48 = vadd.f32 %v3586_v33, %v1701_v45  ;;  %v2163_v44 = vpack.c.bf16 %v2112_v40, %v2111_v29  ;;  %v2281_v53 = vadd.f32 %v3709_v58, %v2280_v46 }
 0x50b   : > { %v1515_v50 = vpack.c.bf16 %v1482_v42, %v1481_v47  ;;  %v1797_v51 = vmax.f32 %v1702_v48, 0.0  ;;  %2319 = vmatmul.bf16.gmra.mxu1 %v2163_v44 }
 0x50c   : > { %v1992_v7 = vpop.f32.mrf.mxu0 }
 0x50d   : > { %v1839_v55 = vpack.c.bf16 %v1797_v51, %v1796_v49  ;;  %1743 = vmatmul.bf16.gmra.mxu3 %v1515_v50  ;;  %v1993_v59 = vadd.f32 %v3645_v37, %v1992_v7 }
 0x50e   : > { %v1416_v56 = vpop.f32.mrf.mxu2 }
 0x50f   : > { %2031 = vmatmul.bf16.gmra.mxu0 %v1839_v55  ;;  %v1417_v62 = vadd.f32 %v3723_v63, %v1416_v56  ;;  %v2113_v3 = vmax.f32 %v1993_v59, 0.0 }
 0x510   : > { %v1704_v24 = vpop.f32.mrf.mxu3  ;;  %v2282_v61 = vpop.f32.mrf.mxu1 }
 0x511   : > { %v2283_v57 = vadd.f32 %v3709_v58, %v2282_v61  ;;  %v1705_v35 = vadd.f32 %v3767_v4, %v1704_v24  ;;  %v1483_v10 = vmax.f32 %v1417_v62, 0.0 }
 0x513   : > { %v2875_v33 = vpack.c.bf16 %v2283_v57, %v2281_v53  ;;  %v1798_v23 = vmax.f32 %v1705_v35, 0.0 }
 0x514   : > { %v1994_v60 = vpop.f32.mrf.mxu0 }
 0x515   : > { %3015 = vst [vmem:[%s3717_s26 + $0x20] sm:$0xff] %v2875_v33   ;;  %v1995_v2 = vadd.f32 %v3645_v37, %v1994_v60 }
 0x516   : > { %v1418_v0 = vpop.f32.mrf.mxu2 }
 0x517   : > { %v2114_v6 = vmax.f32 %v1995_v2, 0.0  ;;  %v1419_v8 = vadd.f32 %v3723_v63, %v1418_v0 }
 0x518   : > { %v1706_v1 = vpop.f32.mrf.mxu3  ;;  %v2285_v9 = vpop.f32.mrf.mxu1 }
 0x519   : > { %v1484_v11 = vmax.f32 %v1419_v8, 0.0  ;;  %v1707_v12 = vadd.f32 %v3767_v4, %v1706_v1  ;;  %v2164_v15 = vpack.c.bf16 %v2114_v6, %v2113_v3  ;;  %v2286_v63 = vadd.f32 %v3709_v58, %v2285_v9 }
 0x51b   : > { %v1516_v17 = vpack.c.bf16 %v1484_v11, %v1483_v10  ;;  %v1799_v16 = vmax.f32 %v1707_v12, 0.0  ;;  %2324 = vmatmul.bf16.gmra.mxu1 %v2164_v15 }
 0x51c   : > { %v1997_v18 = vpop.f32.mrf.mxu0 }
 0x51d   : > { %v1840_v19 = vpack.c.bf16 %v1799_v16, %v1798_v23  ;;  %1748 = vmatmul.bf16.gmra.mxu3 %v1516_v17  ;;  %v1998_v14 = vadd.f32 %v3645_v37, %v1997_v18 }
 0x51f   : > { %2036 = vmatmul.bf16.gmra.mxu0 %v1840_v19  ;;  %v2115_v30 = vmax.f32 %v1998_v14, 0.0 }
 0x520   : > { %v1709_v5 = vpop.f32.mrf.mxu3  ;;  %v2287_v20 = vpop.f32.mrf.mxu1 }
 0x521   : > { %v2288_v21 = vadd.f32 %v3709_v58, %v2287_v20  ;;  %v1710_v26 = vadd.f32 %v3767_v4, %v1709_v5 }
 0x523   : > { %v2880_v22 = vpack.c.bf16 %v2288_v21, %v2286_v63  ;;  %v1800_v36 = vmax.f32 %v1710_v26, 0.0 }
 0x524   : > { %v1999_v25 = vpop.f32.mrf.mxu0 }
 0x525   : > { %3016 = vst [vmem:[%s3717_s26 + $0x28] sm:$0xff] %v2880_v22   ;;  %v2000_v27 = vadd.f32 %v3645_v37, %v1999_v25 }
 0x527   : > { %v2116_v31 = vmax.f32 %v2000_v27, 0.0 }
 0x528   : > { %v1711_v54 = vpop.f32.mrf.mxu3  ;;  %v2290_v38 = vpop.f32.mrf.mxu1 }
 0x529   : > { %v1712_v32 = vadd.f32 %v3767_v4, %v1711_v54  ;;  %v2165_v34 = vpack.c.bf16 %v2116_v31, %v2115_v30  ;;  %v2291_v13 = vadd.f32 %v3709_v58, %v2290_v38 }
 0x52b   : > { %v1801_v43 = vmax.f32 %v1712_v32, 0.0  ;;  %2329 = vmatmul.bf16.gmra.mxu1 %v2165_v34 }
 0x52c   : > { %v2002_v28 = vpop.f32.mrf.mxu0 }
 0x52d   : > { %v1841_v39 = vpack.c.bf16 %v1801_v43, %v1800_v36  ;;  %v2003_v41 = vadd.f32 %v3645_v37, %v2002_v28 }
 0x52f   : > { %2041 = vmatmul.bf16.gmra.mxu0 %v1841_v39  ;;  %v2117_v42 = vmax.f32 %v2003_v41, 0.0 }
 0x530   : > { %v1714_v52 = vpop.f32.mrf.mxu3  ;;  %v2292_v29 = vpop.f32.mrf.mxu1 }
 0x531   : > { %v2293_v40 = vadd.f32 %v3709_v58, %v2292_v29  ;;  %v1715_v48 = vadd.f32 %v3767_v4, %v1714_v52 }
 0x533   : > { %v2885_v45 = vpack.c.bf16 %v2293_v40, %v2291_v13  ;;  %v1802_v55 = vmax.f32 %v1715_v48, 0.0 }
 0x534   : > { %v2004_v46 = vpop.f32.mrf.mxu0 }
 0x535   : > { %3017 = vst [vmem:[%s3717_s26 + $0x30] sm:$0xff] %v2885_v45   ;;  %v2005_v47 = vadd.f32 %v3645_v37, %v2004_v46 }
 0x537   : > { %v2118_v44 = vmax.f32 %v2005_v47, 0.0 }
 0x538   : > { %v1716_v49 = vpop.f32.mrf.mxu3  ;;  %v2295_v50 = vpop.f32.mrf.mxu1 }
 0x539   : > { %v1717_v51 = vadd.f32 %v3767_v4, %v1716_v49  ;;  %v2166_v7 = vpack.c.bf16 %v2118_v44, %v2117_v42  ;;  %v2296_v59 = vadd.f32 %v3709_v58, %v2295_v50 }
 0x53b   : > { %v1803_v56 = vmax.f32 %v1717_v51, 0.0  ;;  %2334 = vmatmul.bf16.gmra.mxu1 %v2166_v7 }
 0x53c   : > { %v2007_v24 = vpop.f32.mrf.mxu0 }
 0x53d   : > { %v1842_v61 = vpack.c.bf16 %v1803_v56, %v1802_v55  ;;  %v2008_v60 = vadd.f32 %v3645_v37, %v2007_v24 }
 0x53f   : > { %2046 = vmatmul.bf16.gmra.mxu0 %v1842_v61  ;;  %v2119_v3 = vmax.f32 %v2008_v60, 0.0 }
 0x540   : > { %v1719_v53 = vpop.f32.mrf.mxu3  ;;  %v2297_v57 = vpop.f32.mrf.mxu1 }
 0x541   : > { %v2298_v33 = vadd.f32 %v3709_v58, %v2297_v57  ;;  %v1720_v35 = vadd.f32 %v3767_v4, %v1719_v53 }
 0x543   : > { %v2890_v62 = vpack.c.bf16 %v2298_v33, %v2296_v59  ;;  %v1804_v11 = vmax.f32 %v1720_v35, 0.0 }
 0x544   : > { %v2009_v2 = vpop.f32.mrf.mxu0 }
 0x545   : > { %3018 = vst [vmem:[%s3717_s26 + $0x38] sm:$0xff] %v2890_v62   ;;  %v2010_v0 = vadd.f32 %v3645_v37, %v2009_v2 }
 0x547   : > { %v2120_v6 = vmax.f32 %v2010_v0, 0.0 }
 0x548   : > { %v1721_v8 = vpop.f32.mrf.mxu3  ;;  %v2300_v1 = vpop.f32.mrf.mxu1 }
 0x549   : > { %v1722_v9 = vadd.f32 %v3767_v4, %v1721_v8  ;;  %v2167_v10 = vpack.c.bf16 %v2120_v6, %v2119_v3  ;;  %v2301_v18 = vadd.f32 %v3709_v58, %v2300_v1 }
 0x54b   : > { %v1805_v12 = vmax.f32 %v1722_v9, 0.0  ;;  %2339 = vmatmul.bf16.gmra.mxu1 %v2167_v10 }
 0x54c   : > { %v2012_v15 = vpop.f32.mrf.mxu0 }
 0x54d   : > { %v1843_v23 = vpack.c.bf16 %v1805_v12, %v1804_v11  ;;  %v2013_v5 = vadd.f32 %v3645_v37, %v2012_v15 }
 0x54f   : > { %2051 = vmatmul.bf16.gmra.mxu0 %v1843_v23  ;;  %v2121_v14 = vmax.f32 %v2013_v5, 0.0  ;;  %v3819_v23 = vld [vmem:[%s3922_s10] ss:$0 sm:$0xff] }
 0x550   : > { %v1724_v17 = vpop.f32.mrf.mxu3  ;;  %v2302_v16 = vpop.f32.mrf.mxu1 }
 0x551   : > { %v2303_v19 = vadd.f32 %v3709_v58, %v2302_v16  ;;  %v1725_v22 = vadd.f32 %v3767_v4, %v1724_v17 }
 0x553   : > { %v2895_v20 = vpack.c.bf16 %v2303_v19, %v2301_v18  ;;  %v1806_v54 = vmax.f32 %v1725_v22, 0.0 }
 0x554   : > { %v2014_v63 = vpop.f32.mrf.mxu0 }
 0x555   : > { %3019 = vst [vmem:[%s3717_s26 + $0x40] sm:$0xff] %v2895_v20   ;;  %v2015_v21 = vadd.f32 %v3645_v37, %v2014_v63 }
 0x557   : > { %v2122_v25 = vmax.f32 %v2015_v21, 0.0 }
 0x558   : > { %v1726_v27 = vpop.f32.mrf.mxu3  ;;  %v2305_v30 = vpop.f32.mrf.mxu1 }
 0x559   : > { %v1727_v26 = vadd.f32 %v3767_v4, %v1726_v27  ;;  %v2168_v31 = vpack.c.bf16 %v2122_v25, %v2121_v14  ;;  %v2306_v28 = vadd.f32 %v3709_v58, %v2305_v30 }
 0x55b   : > { %v1807_v38 = vmax.f32 %v1727_v26, 0.0  ;;  %2344 = vmatmul.bf16.gmra.mxu1 %v2168_v31 }
 0x55c   : > { %v2017_v32 = vpop.f32.mrf.mxu0 }
 0x55d   : > { %v1844_v34 = vpack.c.bf16 %v1807_v38, %v1806_v54  ;;  %v2018_v52 = vadd.f32 %v3645_v37, %v2017_v32 }
 0x55f   : > { %2056 = vmatmul.bf16.gmra.mxu0 %v1844_v34  ;;  %v2123_v41 = vmax.f32 %v2018_v52, 0.0 }
 0x560   : > { %v1729_v36 = vpop.f32.mrf.mxu3  ;;  %v2307_v43 = vpop.f32.mrf.mxu1 }
 0x561   : > { %v2308_v39 = vadd.f32 %v3709_v58, %v2307_v43  ;;  %v1730_v45 = vadd.f32 %v3767_v4, %v1729_v36 }
 0x563   : > { %v2900_v29 = vpack.c.bf16 %v2308_v39, %v2306_v28  ;;  %v1808_v49 = vmax.f32 %v1730_v45, 0.0 }
 0x564   : > { %v2019_v13 = vpop.f32.mrf.mxu0 }
 0x565   : > { %3020 = vst [vmem:[%s3717_s26 + $0x48] sm:$0xff] %v2900_v29   ;;  %v2020_v40 = vadd.f32 %v3645_v37, %v2019_v13 }
 0x567   : > { %v2124_v46 = vmax.f32 %v2020_v40, 0.0 }
 0x568   : > { %v1731_v47 = vpop.f32.mrf.mxu3  ;;  %v2310_v42 = vpop.f32.mrf.mxu1 }
 0x569   : > { %v1732_v48 = vadd.f32 %v3767_v4, %v1731_v47  ;;  %v2169_v44 = vpack.c.bf16 %v2124_v46, %v2123_v41  ;;  %v2311_v24 = vadd.f32 %v3709_v58, %v2310_v42 }
 0x56b   : > { %v1809_v50 = vmax.f32 %v1732_v48, 0.0  ;;  %2349 = vmatmul.bf16.gmra.mxu1 %v2169_v44 }
 0x56c   : > { %v2022_v51 = vpop.f32.mrf.mxu0 }
 0x56d   : > { %v1845_v7 = vpack.c.bf16 %v1809_v50, %v1808_v49  ;;  %v2023_v53 = vadd.f32 %v3645_v37, %v2022_v51 }
 0x56f   : > { %2061 = vmatmul.bf16.gmra.mxu0 %v1845_v7  ;;  %v2125_v60 = vmax.f32 %v2023_v53, 0.0 }
 0x570   : > { %v1734_v55 = vpop.f32.mrf.mxu3  ;;  %v2312_v56 = vpop.f32.mrf.mxu1 }
 0x571   : > { %v2313_v61 = vadd.f32 %v3709_v58, %v2312_v56  ;;  %v1735_v62 = vadd.f32 %v3767_v4, %v1734_v55 }
 0x573   : > { %v2905_v57 = vpack.c.bf16 %v2313_v61, %v2311_v24  ;;  %v1810_v8 = vmax.f32 %v1735_v62, 0.0 }
 0x574   : > { %v2024_v59 = vpop.f32.mrf.mxu0 }
 0x575   : > { %3021 = vst [vmem:[%s3717_s26 + $0x50] sm:$0xff] %v2905_v57   ;;  %v2025_v33 = vadd.f32 %v3645_v37, %v2024_v59 }
 0x577   : > { %v2126_v2 = vmax.f32 %v2025_v33, 0.0 }
 0x578   : > { %v1736_v0 = vpop.f32.mrf.mxu3  ;;  %v2315_v3 = vpop.f32.mrf.mxu1 }
 0x579   : > { %v1737_v35 = vadd.f32 %v3767_v4, %v1736_v0  ;;  %v2170_v6 = vpack.c.bf16 %v2126_v2, %v2125_v60  ;;  %v2316_v37 = vadd.f32 %v3709_v58, %v2315_v3 }
 0x57b   : > { %v1811_v1 = vmax.f32 %v1737_v35, 0.0  ;;  %2354 = vmatmul.bf16.gmra.mxu1 %v2170_v6 }
 0x57c   : > { %v2027_v9 = vpop.f32.mrf.mxu0 }
 0x57d   : > { %v1846_v10 = vpack.c.bf16 %v1811_v1, %v1810_v8  ;;  %v2028_v17 = vadd.f32 %v3819_v23, %v2027_v9 }
 0x57f   : > { %2066 = vmatmul.bf16.gmra.mxu0 %v1846_v10  ;;  %v2127_v5 = vmax.f32 %v2028_v17, 0.0 }
 0x580   : > { %v1739_v11 = vpop.f32.mrf.mxu3  ;;  %v2317_v12 = vpop.f32.mrf.mxu1 }
 0x581   : > { %v2318_v15 = vadd.f32 %v3709_v58, %v2317_v12  ;;  %v1740_v20 = vadd.f32 %v3767_v4, %v1739_v11 }
 0x583   : > { %v2910_v16 = vpack.c.bf16 %v2318_v15, %v2316_v37  ;;  %v1812_v27 = vmax.f32 %v1740_v20, 0.0 }
 0x584   : > { %v2029_v18 = vpop.f32.mrf.mxu0 }
 0x585   : > { %3022 = vst [vmem:[%s3717_s26 + $0x58] sm:$0xff] %v2910_v16   ;;  %v2030_v19 = vadd.f32 %v3819_v23, %v2029_v18 }
 0x587   : > { %v2128_v63 = vmax.f32 %v2030_v19, 0.0 }
 0x588   : > { %v1741_v21 = vpop.f32.mrf.mxu3  ;;  %v2320_v14 = vpop.f32.mrf.mxu1 }
 0x589   : > { %v2171_v22 = vpack.c.bf16 %v2128_v63, %v2127_v5  ;;  %v1742_v25 = vadd.f32 %v3767_v4, %v1741_v21  ;;  %v2321_v32 = vadd.f32 %v3709_v58, %v2320_v14 }
 0x58b   : > { %v1813_v30 = vmax.f32 %v1742_v25, 0.0  ;;  %2359 = vmatmul.bf16.gmra.mxu1 %v2171_v22 }
 0x58c   : > { %v2032_v26 = vpop.f32.mrf.mxu0 }
 0x58d   : > { %v1847_v31 = vpack.c.bf16 %v1813_v30, %v1812_v27  ;;  %v2033_v36 = vadd.f32 %v3819_v23, %v2032_v26 }
 0x58f   : > { %2071 = vmatmul.bf16.gmra.mxu0 %v1847_v31  ;;  %v2129_v52 = vmax.f32 %v2033_v36, 0.0 }
 0x590   : > { %v1744_v54 = vpop.f32.mrf.mxu3  ;;  %v2322_v38 = vpop.f32.mrf.mxu1 }
 0x591   : > { %v2323_v34 = vadd.f32 %v3709_v58, %v2322_v38  ;;  %v1745_v29 = vadd.f32 %v3767_v4, %v1744_v54 }
 0x593   : > { %v2915_v43 = vpack.c.bf16 %v2323_v34, %v2321_v32  ;;  %v1814_v47 = vmax.f32 %v1745_v29, 0.0 }
 0x594   : > { %v2034_v28 = vpop.f32.mrf.mxu0 }
 0x595   : > { %3023 = vst [vmem:[%s3717_s26 + $0x60] sm:$0xff] %v2915_v43   ;;  %v2035_v39 = vadd.f32 %v3819_v23, %v2034_v28 }
 0x597   : > { %v2130_v13 = vmax.f32 %v2035_v39, 0.0 }
 0x598   : > { %v1746_v40 = vpop.f32.mrf.mxu3  ;;  %v2325_v41 = vpop.f32.mrf.mxu1 }
 0x599   : > { %v2172_v45 = vpack.c.bf16 %v2130_v13, %v2129_v52  ;;  %v1747_v46 = vadd.f32 %v3767_v4, %v1746_v40  ;;  %v2326_v51 = vadd.f32 %v3709_v58, %v2325_v41 }
 0x59b   : > { %v1815_v42 = vmax.f32 %v1747_v46, 0.0  ;;  %2364 = vmatmul.bf16.gmra.mxu1 %v2172_v45 }
 0x59c   : > { %v2037_v48 = vpop.f32.mrf.mxu0 }
 0x59d   : > { %v1848_v44 = vpack.c.bf16 %v1815_v42, %v1814_v47  ;;  %v2038_v55 = vadd.f32 %v3819_v23, %v2037_v48 }
 0x59f   : > { %2076 = vmatmul.bf16.gmra.mxu0 %v1848_v44  ;;  %v2131_v53 = vmax.f32 %v2038_v55, 0.0 }
 0x5a0   : > { %v1749_v49 = vpop.f32.mrf.mxu3  ;;  %v2327_v50 = vpop.f32.mrf.mxu1 }
 0x5a1   : > { %v2328_v7 = vadd.f32 %v3709_v58, %v2327_v50  ;;  %v1750_v57 = vadd.f32 %v3767_v4, %v1749_v49 }
 0x5a3   : > { %v2920_v56 = vpack.c.bf16 %v2328_v7, %v2326_v51  ;;  %v1816_v0 = vmax.f32 %v1750_v57, 0.0 }
 0x5a4   : > { %v2039_v24 = vpop.f32.mrf.mxu0 }
 0x5a5   : > { %3024 = vst [vmem:[%s3717_s26 + $0x68] sm:$0xff] %v2920_v56   ;;  %v2040_v61 = vadd.f32 %v3819_v23, %v2039_v24 }
 0x5a7   : > { %v2132_v59 = vmax.f32 %v2040_v61, 0.0 }
 0x5a8   : > { %v1751_v33 = vpop.f32.mrf.mxu3  ;;  %v2330_v60 = vpop.f32.mrf.mxu1 }
 0x5a9   : > { %v2173_v62 = vpack.c.bf16 %v2132_v59, %v2131_v53  ;;  %v1752_v2 = vadd.f32 %v3767_v4, %v1751_v33  ;;  %v2331_v1 = vadd.f32 %v3709_v58, %v2330_v60 }
 0x5ab   : > { %v1817_v3 = vmax.f32 %v1752_v2, 0.0  ;;  %2369 = vmatmul.bf16.gmra.mxu1 %v2173_v62 }
 0x5ac   : > { %v2042_v35 = vpop.f32.mrf.mxu0 }
 0x5ad   : > { %v1849_v6 = vpack.c.bf16 %v1817_v3, %v1816_v0  ;;  %v2043_v10 = vadd.f32 %v3819_v23, %v2042_v35 }
 0x5af   : > { %2081 = vmatmul.bf16.gmra.mxu0 %v1849_v6  ;;  %v2133_v4 = vmax.f32 %v2043_v10, 0.0 }
 0x5b0   : > { %v2332_v8 = vpop.f32.mrf.mxu1 }
 0x5b1   : > { %v2333_v9 = vadd.f32 %v3709_v58, %v2332_v8 }
 0x5b3   : > { %v2925_v11 = vpack.c.bf16 %v2333_v9, %v2331_v1 }
 0x5b4   : > { %v2044_v12 = vpop.f32.mrf.mxu0 }
 0x5b5   : > { %3025 = vst [vmem:[%s3717_s26 + $0x70] sm:$0xff] %v2925_v11   ;;  %v2045_v37 = vadd.f32 %v3819_v23, %v2044_v12 }
 0x5b7   : > { %v2134_v15 = vmax.f32 %v2045_v37, 0.0 }
 0x5b8   : > { %v2335_v17 = vpop.f32.mrf.mxu1 }
 0x5b9   : > { %v2174_v16 = vpack.c.bf16 %v2134_v15, %v2133_v4  ;;  %v2336_v5 = vadd.f32 %v3709_v58, %v2335_v17 }
 0x5bb   : > { %2374 = vmatmul.bf16.gmra.mxu1 %v2174_v16 }
 0x5bc   : > { %v2047_v18 = vpop.f32.mrf.mxu0 }
 0x5bd   : > { %v2048_v63 = vadd.f32 %v3819_v23, %v2047_v18 }
 0x5bf   : > { %v2135_v25 = vmax.f32 %v2048_v63, 0.0 }
 0x5c0   : > { %v2337_v19 = vpop.f32.mrf.mxu1 }
 0x5c1   : > { %v2338_v20 = vadd.f32 %v3709_v58, %v2337_v19 }
 0x5c3   : > { %v2930_v21 = vpack.c.bf16 %v2338_v20, %v2336_v5 }
 0x5c4   : > { %v2049_v14 = vpop.f32.mrf.mxu0 }
 0x5c5   : > { %3026 = vst [vmem:[%s3717_s26 + $0x78] sm:$0xff] %v2930_v21   ;;  %v2050_v22 = vadd.f32 %v3819_v23, %v2049_v14 }
 0x5c7   : > { %v2136_v27 = vmax.f32 %v2050_v22, 0.0 }
 0x5c8   : > { %v2340_v30 = vpop.f32.mrf.mxu1 }
 0x5c9   : > { %v2175_v26 = vpack.c.bf16 %v2136_v27, %v2135_v25  ;;  %v2341_v38 = vadd.f32 %v3709_v58, %v2340_v30 }
 0x5cb   : > { %2379 = vmatmul.bf16.gmra.mxu1 %v2175_v26 }
 0x5cc   : > { %v2052_v31 = vpop.f32.mrf.mxu0 }
 0x5cd   : > { %v2053_v34 = vadd.f32 %v3819_v23, %v2052_v31 }
 0x5cf   : > { %v2137_v39 = vmax.f32 %v2053_v34, 0.0 }
 0x5d0   : > { %v2342_v54 = vpop.f32.mrf.mxu1 }
 0x5d1   : > { %v2343_v32 = vadd.f32 %v3709_v58, %v2342_v54 }
 0x5d3   : > { %v2935_v36 = vpack.c.bf16 %v2343_v32, %v2341_v38 }
 0x5d4   : > { %v2054_v43 = vpop.f32.mrf.mxu0 }
 0x5d5   : > { %3027 = vst [vmem:[%s3717_s26 + $0x80] sm:$0xff] %v2935_v36   ;;  %v2055_v28 = vadd.f32 %v3819_v23, %v2054_v43 }
 0x5d7   : > { %v2138_v52 = vmax.f32 %v2055_v28, 0.0 }
 0x5d8   : > { %v2345_v29 = vpop.f32.mrf.mxu1 }
 0x5d9   : > { %v2176_v13 = vpack.c.bf16 %v2138_v52, %v2137_v39  ;;  %v2346_v45 = vadd.f32 %v3709_v58, %v2345_v29 }
 0x5db   : > { %2384 = vmatmul.bf16.gmra.mxu1 %v2176_v13 }
 0x5dc   : > { %v2057_v40 = vpop.f32.mrf.mxu0 }
 0x5dd   : > { %v2058_v47 = vadd.f32 %v3819_v23, %v2057_v40 }
 0x5df   : > { %v2139_v49 = vmax.f32 %v2058_v47, 0.0 }
 0x5e0   : > { %v2347_v41 = vpop.f32.mrf.mxu1 }
 0x5e1   : > { %v2348_v46 = vadd.f32 %v3709_v58, %v2347_v41 }
 0x5e3   : > { %v2940_v42 = vpack.c.bf16 %v2348_v46, %v2346_v45 }
 0x5e4   : > { %v2059_v48 = vpop.f32.mrf.mxu0 }
 0x5e5   : > { %3028 = vst [vmem:[%s3717_s26 + $0x88] sm:$0xff] %v2940_v42   ;;  %v2060_v44 = vadd.f32 %v3819_v23, %v2059_v48 }
 0x5e7   : > { %v2140_v50 = vmax.f32 %v2060_v44, 0.0 }
 0x5e8   : > { %v2350_v51 = vpop.f32.mrf.mxu1 }
 0x5e9   : > { %v2177_v7 = vpack.c.bf16 %v2140_v50, %v2139_v49  ;;  %v2351_v24 = vadd.f32 %v3709_v58, %v2350_v51 }
 0x5eb   : > { %2389 = vmatmul.bf16.gmra.mxu1 %v2177_v7 }
 0x5ec   : > { %v2062_v55 = vpop.f32.mrf.mxu0 }
 0x5ed   : > { %v2063_v53 = vadd.f32 %v3819_v23, %v2062_v55 }
 0x5ef   : > { %v2141_v60 = vmax.f32 %v2063_v53, 0.0 }
 0x5f0   : > { %v2352_v56 = vpop.f32.mrf.mxu1 }
 0x5f1   : > { %v2353_v61 = vadd.f32 %v3709_v58, %v2352_v56 }
 0x5f3   : > { %v2945_v57 = vpack.c.bf16 %v2353_v61, %v2351_v24 }
 0x5f4   : > { %v2064_v59 = vpop.f32.mrf.mxu0 }
 0x5f5   : > { %3029 = vst [vmem:[%s3717_s26 + $0x90] sm:$0xff] %v2945_v57   ;;  %v2065_v33 = vadd.f32 %v3819_v23, %v2064_v59 }
 0x5f7   : > { %v2142_v62 = vmax.f32 %v2065_v33, 0.0 }
 0x5f8   : > { %v2355_v2 = vpop.f32.mrf.mxu1 }
 0x5f9   : > { %v2178_v0 = vpack.c.bf16 %v2142_v62, %v2141_v60  ;;  %v2356_v6 = vadd.f32 %v3709_v58, %v2355_v2 }
 0x5fb   : > { %2394 = vmatmul.bf16.gmra.mxu1 %v2178_v0 }
 0x5fc   : > { %v2067_v3 = vpop.f32.mrf.mxu0 }
 0x5fd   : > { %v2068_v1 = vadd.f32 %v3819_v23, %v2067_v3 }
 0x5ff   : > { %v2143_v12 = vmax.f32 %v2068_v1, 0.0 }
 0x600   : > { %v2357_v35 = vpop.f32.mrf.mxu1 }
 0x601   : > { %v2358_v8 = vadd.f32 %v3709_v58, %v2357_v35 }
 0x603   : > { %v2950_v9 = vpack.c.bf16 %v2358_v8, %v2356_v6 }
 0x604   : > { %v2069_v10 = vpop.f32.mrf.mxu0 }
 0x605   : > { %3030 = vst [vmem:[%s3717_s26 + $0x98] sm:$0xff] %v2950_v9   ;;  %v2070_v11 = vadd.f32 %v3819_v23, %v2069_v10 }
 0x607   : > { %v2144_v37 = vmax.f32 %v2070_v11, 0.0 }
 0x608   : > { %v2360_v4 = vpop.f32.mrf.mxu1 }
 0x609   : > { %v2179_v15 = vpack.c.bf16 %v2144_v37, %v2143_v12  ;;  %v2361_v18 = vadd.f32 %v3709_v58, %v2360_v4 }
 0x60b   : > { %2399 = vmatmul.bf16.gmra.mxu1 %v2179_v15 }
 0x60c   : > { %v2072_v17 = vpop.f32.mrf.mxu0 }
 0x60d   : > { %v2073_v5 = vadd.f32 %v3819_v23, %v2072_v17 }
 0x60f   : > { %v2145_v14 = vmax.f32 %v2073_v5, 0.0  ;;  %v3070_v5 = vld [vmem:[%s3924_s12] ss:$0 sm:$0xff] }
 0x610   : > { %v2362_v16 = vpop.f32.mrf.mxu1 }
 0x611   : > { %v2363_v19 = vadd.f32 %v3709_v58, %v2362_v16 }
 0x613   : > { %v2955_v20 = vpack.c.bf16 %v2363_v19, %v2361_v18 }
 0x614   : > { %v2074_v63 = vpop.f32.mrf.mxu0 }
 0x615   : > { %3031 = vst [vmem:[%s3717_s26 + $0xa0] sm:$0xff] %v2955_v20   ;;  %v2075_v21 = vadd.f32 %v3819_v23, %v2074_v63 }
 0x617   : > { %v2146_v22 = vmax.f32 %v2075_v21, 0.0 }
 0x618   : > { %v2365_v25 = vpop.f32.mrf.mxu1 }
 0x619   : > { %v2180_v27 = vpack.c.bf16 %v2146_v22, %v2145_v14  ;;  %v2366_v31 = vadd.f32 %v3709_v58, %v2365_v25 }
 0x61b   : > { %2404 = vmatmul.bf16.gmra.mxu1 %v2180_v27 }
 0x61c   : > { %v2077_v30 = vpop.f32.mrf.mxu0 }
 0x61d   : > { %v2078_v38 = vadd.f32 %v3819_v23, %v2077_v30 }
 0x61f   : > { %v2147_v43 = vmax.f32 %v2078_v38, 0.0 }
 0x620   : > { %v2367_v26 = vpop.f32.mrf.mxu1 }
 0x621   : > { %v2368_v54 = vadd.f32 %v3709_v58, %v2367_v26 }
 0x623   : > { %v2960_v32 = vpack.c.bf16 %v2368_v54, %v2366_v31 }
 0x624   : > { %v2079_v34 = vpop.f32.mrf.mxu0 }
 0x625   : > { %3032 = vst [vmem:[%s3717_s26 + $0xa8] sm:$0xff] %v2960_v32   ;;  %v2080_v36 = vadd.f32 %v3819_v23, %v2079_v34 }
 0x627   : > { %v2148_v28 = vmax.f32 %v2080_v36, 0.0 }
 0x628   : > { %v2370_v39 = vpop.f32.mrf.mxu1 }
 0x629   : > { %v2181_v52 = vpack.c.bf16 %v2148_v28, %v2147_v43  ;;  %v2371_v40 = vadd.f32 %v3709_v58, %v2370_v39 }
 0x62b   : > { %2409 = vmatmul.bf16.gmra.mxu1 %v2181_v52 }
 0x62c   : > { %v2082_v29 = vpop.f32.mrf.mxu0 }
 0x62d   : > { %v2083_v45 = vadd.f32 %v3819_v23, %v2082_v29 }
 0x62f   : > { %v2149_v48 = vmax.f32 %v2083_v45, 0.0 }
 0x630   : > { %v2372_v13 = vpop.f32.mrf.mxu1 }
 0x631   : > { %v2373_v41 = vadd.f32 %v3709_v58, %v2372_v13 }
 0x633   : > { %v2965_v46 = vpack.c.bf16 %v2373_v41, %v2371_v40 }
 0x634   : > { %v2084_v47 = vpop.f32.mrf.mxu0 }
 0x635   : > { %3033 = vst [vmem:[%s3717_s26 + $0xb0] sm:$0xff] %v2965_v46   ;;  %v2085_v42 = vadd.f32 %v3819_v23, %v2084_v47 }
 0x637   : > { %v2150_v44 = vmax.f32 %v2085_v42, 0.0 }
 0x638   : > { %v2375_v49 = vpop.f32.mrf.mxu1 }
 0x639   : > { %v2182_v50 = vpack.c.bf16 %v2150_v44, %v2149_v48  ;;  %v2376_v7 = vadd.f32 %v3709_v58, %v2375_v49 }
 0x63b   : > { %2414 = vmatmul.bf16.gmra.mxu1 %v2182_v50 }
 0x640   : > { %v2377_v51 = vpop.f32.mrf.mxu1 }
 0x641   : > { %v2378_v55 = vadd.f32 %v3709_v58, %v2377_v51 }
 0x643   : > { %v2970_v56 = vpack.c.bf16 %v2378_v55, %v2376_v7 }
 0x645   : > { %3034 = vst [vmem:[%s3717_s26 + $0xb8] sm:$0xff] %v2970_v56  }
 0x648   : > { %v2380_v24 = vpop.f32.mrf.mxu1 }
 0x649   : > { %v2381_v53 = vadd.f32 %v3709_v58, %v2380_v24 }
 0x650   : > { %v2382_v61 = vpop.f32.mrf.mxu1 }
 0x651   : > { %v2383_v23 = vadd.f32 %v3709_v58, %v2382_v61 }
 0x653   : > { %v2975_v57 = vpack.c.bf16 %v2383_v23, %v2381_v53 }
 0x655   : > { %3035 = vst [vmem:[%s3717_s26 + $0xc0] sm:$0xff] %v2975_v57  }
 0x658   : > { %v2385_v59 = vpop.f32.mrf.mxu1 }
 0x659   : > { %v2386_v60 = vadd.f32 %v3709_v58, %v2385_v59 }
 0x660   : > { %v2387_v33 = vpop.f32.mrf.mxu1 }
 0x661   : > { %v2388_v62 = vadd.f32 %v3709_v58, %v2387_v33 }
 0x663   : > { %v2980_v2 = vpack.c.bf16 %v2388_v62, %v2386_v60 }
 0x665   : > { %3036 = vst [vmem:[%s3717_s26 + $0xc8] sm:$0xff] %v2980_v2  }
 0x668   : > { %v2390_v0 = vpop.f32.mrf.mxu1 }
 0x669   : > { %v2391_v35 = vadd.f32 %v3709_v58, %v2390_v0 }
 0x670   : > { %v2392_v3 = vpop.f32.mrf.mxu1 }
 0x671   : > { %v2393_v6 = vadd.f32 %v3709_v58, %v2392_v3 }
 0x673   : > { %v2985_v8 = vpack.c.bf16 %v2393_v6, %v2391_v35 }
 0x675   : > { %3037 = vst [vmem:[%s3717_s26 + $0xd0] sm:$0xff] %v2985_v8  }
 0x678   : > { %v2395_v1 = vpop.f32.mrf.mxu1 }
 0x679   : > { %v2396_v10 = vadd.f32 %v3709_v58, %v2395_v1 }
 0x680   : > { %v2397_v9 = vpop.f32.mrf.mxu1 }
 0x681   : > { %v2398_v11 = vadd.f32 %v3709_v58, %v2397_v9 }
 0x683   : > { %v2990_v12 = vpack.c.bf16 %v2398_v11, %v2396_v10 }
 0x685   : > { %3038 = vst [vmem:[%s3717_s26 + $0xd8] sm:$0xff] %v2990_v12  }
 0x688   : > { %v2400_v37 = vpop.f32.mrf.mxu1 }
 0x689   : > { %v2401_v15 = vadd.f32 %v3709_v58, %v2400_v37 }
 0x690   : > { %v2402_v4 = vpop.f32.mrf.mxu1 }
 0x691   : > { %v2403_v17 = vadd.f32 %v3709_v58, %v2402_v4 }
 0x693   : > { %v2995_v16 = vpack.c.bf16 %v2403_v17, %v2401_v15 }
 0x695   : > { %3039 = vst [vmem:[%s3717_s26 + $0xe0] sm:$0xff] %v2995_v16  }
 0x698   : > { %v2405_v18 = vpop.f32.mrf.mxu1 }
 0x699   : > { %v2406_v20 = vadd.f32 %v3070_v5, %v2405_v18 }
 0x6a0   : > { %v2407_v19 = vpop.f32.mrf.mxu1 }
 0x6a1   : > { %v2408_v63 = vadd.f32 %v3070_v5, %v2407_v19 }
 0x6a3   : > { %v3000_v21 = vpack.c.bf16 %v2408_v63, %v2406_v20 }
 0x6a5   : > { %3040 = vst [vmem:[%s3717_s26 + $0xe8] sm:$0xff] %v3000_v21  }
 0x6a8   : > { %v2410_v14 = vpop.f32.mrf.mxu1 }
 0x6a9   : > { %v2411_v25 = vadd.f32 %v3070_v5, %v2410_v14 }
 0x6b0   : > { %v2412_v22 = vpop.f32.mrf.mxu1 }
 0x6b1   : > { %v2413_v27 = vadd.f32 %v3070_v5, %v2412_v22 }
 0x6b3   : > { %v3005_v30 = vpack.c.bf16 %v2413_v27, %v2411_v25 }
 0x6b5   : > { %3041 = vst [vmem:[%s3717_s26 + $0xf0] sm:$0xff] %v3005_v30  }
 0x6b8   : > { %v2415_v58 = vpop.f32.mrf.mxu1 }
 0x6b9   : > { %v2416_v31 = vadd.f32 %v3070_v5, %v2415_v58 }
 0x6c0   : > { %v2417_v26 = vpop.f32.mrf.mxu1 }
 0x6c1   : > { %v2418_v54 = vadd.f32 %v3070_v5, %v2417_v26 }
 0x6c3   : > { %v3010_v38 = vpack.c.bf16 %v2418_v54, %v2416_v31 }
 0x6c5   : > { %3042 = vst [vmem:[%s3717_s26 + $0xf8] sm:$0xff] %v3010_v38  }
 0x6c6 PF: > { %s23_s25 = sadd.s32 1, %s3077_s25  }
 0x6c7   : > { %p20_p4 = scmp.ge.s32.totalorder %s23_s25, 6  }
 0x6c9   :  { %22 = sbr.rel (!%p20_p4) target bundleno = 1 (0x1), region = 102 }

</bundles_post_ra>
